<compile_context>
chip_gen: v6e
topology: v6e:2x2x1
jax: 0.10.0
libtpu: 0.0.40
codegen_flags: <defaults>
</compile_context>

<pallas_src>
import functools

import jax
import jax.numpy as jnp
from jax.experimental import pallas as pl
from jax.experimental.pallas import tpu as pltpu


def _round_up(x, m):
    return ((x + m - 1) // m) * m


def _pick_conv_batch_tile(B, block_b):
    """Largest tile <= block_b, but keep >=2 grid steps whenever B > 1 (megacore)."""
    bt = max(1, min(block_b, B))
    if -(-B // bt) < 2 and B > 1:
        bt = -(-B // 2)
    return bt


# ----------------------------------------------------------------------------
# Banded conv weights: fold the 5 kw taps and Cin into the K dim of a per-kh matmul
# whose N dim is a full lane-dense output row (Wo*Cout).  Even / odd output columns
# (w = 2*wo / 2*wo+1) get separate matrices so the w-pool is an elementwise max.
# ----------------------------------------------------------------------------
def _banded_conv_weights(w_oihw, W):
    Cout, Cin, KH, KW = w_oihw.shape
    Wp = W + KW - 1
    Wo = W // 2
    wt = jnp.transpose(w_oihw, (2, 3, 1, 0))                  # (KH, KW, Cin, Cout)
    w_in = jnp.arange(Wp)[:, None]                            # padded input column
    w_out = jnp.arange(W)[None, :]                            # output column
    kw = w_in - w_out                                         # (Wp, W)
    valid = (kw >= 0) & (kw < KW)
    band = wt[:, jnp.clip(kw, 0, KW - 1)]                     # (KH, Wp, W, Cin, Cout)
    band = jnp.where(valid[None, :, :, None, None], band, 0.0)
    band = jnp.transpose(band, (0, 1, 3, 2, 4))               # (KH, Wp, Cin, W, Cout)
    band = band.reshape(KH, Wp * Cin, W, Cout)
    w_even = band[:, :, 0::2, :].reshape(KH, Wp * Cin, Wo * Cout)
    w_odd = band[:, :, 1::2, :].reshape(KH, Wp * Cin, Wo * Cout)
    return w_even, w_odd


# ----------------------------------------------------------------------------
# Kernel 1/2: fused 5x5 'same' conv + 2x2 max-pool + bias + ReLU (lane-dense)
# ----------------------------------------------------------------------------
def _conv5x5_relu_pool_kernel(x_ref, we_ref, wo_ref, b_ref, o_ref, *,
                              H, W, Cin, Cout, KH, pad_out):
    """x_ref: (bt, H+4, (W+4)*Cin) bf16 (halo-padded, lane-flat in (w, c) order)
    we_ref/wo_ref: (5, (W+4)*Cin, Wo*Cout) bf16 banded weights (even / odd output w)
    b_ref: (1, Wo*Cout) f32 bias tiled over wo
    o_ref: (bt, Ho+4, (Wo+4)*Cout) or (bt, Ho, Wo*Cout) bf16."""
    bt = x_ref.shape[0]
    Wp = W + KH - 1
    Ho, Wo = H // 2, W // 2
    No = Wo * Cout
    M = bt * H
    K = Wp * Cin

    acc_e = jnp.zeros((M, No), jnp.float32)
    acc_o = jnp.zeros((M, No), jnp.float32)
    for kh in range(KH):
        lhs = x_ref[:, kh:kh + H, :].reshape(M, K)            # rows ordered (b, h)
        acc_e = acc_e + jnp.dot(lhs, we_ref[kh], preferred_element_type=jnp.float32)
        acc_o = acc_o + jnp.dot(lhs, wo_ref[kh], preferred_element_type=jnp.float32)

    # 2x2 / stride-2 max-pool.  Bias is per-channel and shared across the window and
    # ReLU is monotone, so pool first, then bias + ReLU (== PyTorch relu->pool order).
    mw = jnp.maximum(acc_e, acc_o)                            # pool over w -> (bt*H, Wo*Cout)
    mh = mw.reshape(bt * Ho, 2, No)
    mh = jnp.maximum(mh[:, 0, :], mh[:, 1, :])                # pool over h -> (bt*Ho, Wo*Cout)

    y = jnp.maximum(mh + b_ref[...], 0.0)                     # bias + ReLU (f32)
    y = y.reshape(bt, Ho, No).astype(o_ref.dtype)

    if pad_out:
        # Emit the 2-px zero halo the next 5x5 'same' conv needs -> no HBM pad round trip.
        zr = jnp.zeros((bt, 2, No), y.dtype)
        y = jnp.concatenate([zr, y, zr], axis=1)              # (bt, Ho+4, Wo*Cout)
        zc = jnp.zeros((bt, Ho + 4, 2 * Cout), y.dtype)
        y = jnp.concatenate([zc, y, zc], axis=2)              # (bt, Ho+4, (Wo+4)*Cout)
    o_ref[...] = y


def conv5x5_relu_pool(xp, w_oihw, bias, *, H, W, block_b, pad_out):
    """xp: (Bp, H+4, (W+4)*Cin) bf16.  Returns bf16 (Bp, Ho+4, (Wo+4)*Cout) if pad_out
    else (Bp, Ho, Wo*Cout), with lane order (w, cout)."""
    Bp = xp.shape[0]
    Cout, Cin, KH, KW = w_oihw.shape
    assert KH == KW == 5
    Wp = W + KW - 1
    Ho, Wo = H // 2, W // 2
    No = Wo * Cout
    assert xp.shape == (Bp, H + KH - 1, Wp * Cin), xp.shape
    assert Bp % block_b == 0
    nb = Bp // block_b

    w_even, w_odd = _banded_conv_weights(w_oihw, W)
    w_even = w_even.astype(jnp.bfloat16)
    w_odd = w_odd.astype(jnp.bfloat16)
    b_tile = jnp.tile(bias.astype(jnp.float32), Wo).reshape(1, No)

    out_rows, out_cols = (Ho + 4, (Wo + 4) * Cout) if pad_out else (Ho, No)

    kernel = functools.partial(_conv5x5_relu_pool_kernel,
                               H=H, W=W, Cin=Cin, Cout=Cout, KH=KH, pad_out=pad_out)
    flops = 2 * 2 * KH * Bp * H * (Wp * Cin) * No             # banded (incl. structural zeros)
    bytes_accessed = (xp.size * 2 + 2 * KH * Wp * Cin * No * 2 + No * 4
                      + Bp * out_rows * out_cols * 2)

    return pl.pallas_call(
        kernel,
        grid=(nb,),
        in_specs=[
            pl.BlockSpec((block_b, H + KH - 1, Wp * Cin), lambda i: (i, 0, 0)),
            pl.BlockSpec((KH, Wp * Cin, No), lambda i: (0, 0, 0)),
            pl.BlockSpec((KH, Wp * Cin, No), lambda i: (0, 0, 0)),
            pl.BlockSpec((1, No), lambda i: (0, 0)),
        ],
        out_specs=pl.BlockSpec((block_b, out_rows, out_cols), lambda i: (i, 0, 0)),
        out_shape=jax.ShapeDtypeStruct((Bp, out_rows, out_cols), jnp.bfloat16),
        compiler_params=pltpu.CompilerParams(
            dimension_semantics=("parallel",),
            vmem_limit_bytes=64 * 1024 * 1024),
        cost_estimate=pl.CostEstimate(flops=flops, transcendentals=0,
                                      bytes_accessed=bytes_accessed),
    )(xp, w_even, w_odd, b_tile)


# ----------------------------------------------------------------------------
# Kernel 3: fused fc1 (+ReLU) + fc2, lane-dense (N2 padded to 128)
# ----------------------------------------------------------------------------
def _fc_fused_kernel(x_ref, w1_ref, b1_ref, w2_ref, b2_ref, o_ref):
    h = jnp.dot(x_ref[...], w1_ref[...], preferred_element_type=jnp.float32)
    h = jnp.maximum(h + b1_ref[...], 0.0).astype(jnp.bfloat16)
    o = jnp.dot(h, w2_ref[...], preferred_element_type=jnp.float32)
    o_ref[...] = (o + b2_ref[...]).astype(o_ref.dtype)


def fc_head(x2d, w1_kn, b1, w2_kn_pad, b2_pad, *, block_b=128):
    """x2d: (B, K); w1_kn: (K, N1); w2_kn_pad: (N1, N2) zero-padded to lane-dense N2."""
    B, K = x2d.shape
    N1 = w1_kn.shape[1]
    N2 = w2_kn_pad.shape[1]

    Bp0 = _round_up(B, 8)                       # 8-sublane granularity, not a blanket 128
    bt = min(block_b, Bp0)
    if Bp0 // bt < 2 and Bp0 >= 16:
        bt = _round_up(Bp0 // 2, 8)             # >=2 grid steps when there is enough work
    Bp = _round_up(B, bt)
    xp = jnp.pad(x2d, ((0, Bp - B), (0, 0))).astype(jnp.bfloat16)

    flops = 2 * Bp * K * N1 + 2 * Bp * N1 * N2
    bytes_accessed = xp.size * 2 + K * N1 * 2 + N1 * N2 * 2 + (N1 + N2) * 4 + Bp * N2 * 4

    out = pl.pallas_call(
        _fc_fused_kernel,
        grid=(Bp // bt,),
        in_specs=[
            pl.BlockSpec((bt, K), lambda i: (i, 0)),
            pl.BlockSpec((K, N1), lambda i: (0, 0)),
            pl.BlockSpec((1, N1), lambda i: (0, 0)),
            pl.BlockSpec((N1, N2), lambda i: (0, 0)),
            pl.BlockSpec((1, N2), lambda i: (0, 0)),
        ],
        out_specs=pl.BlockSpec((bt, N2), lambda i: (i, 0)),
        out_shape=jax.ShapeDtypeStruct((Bp, N2), jnp.float32),
        compiler_params=pltpu.CompilerParams(
            dimension_semantics=("parallel",),
            vmem_limit_bytes=64 * 1024 * 1024),
        cost_estimate=pl.CostEstimate(flops=flops, transcendentals=0,
                                      bytes_accessed=bytes_accessed),
    )(xp,
      w1_kn.astype(jnp.bfloat16),
      b1.reshape(1, N1).astype(jnp.float32),
      w2_kn_pad.astype(jnp.bfloat16),
      b2_pad.reshape(1, N2).astype(jnp.float32))
    return out[:B]


# ----------------------------------------------------------------------------
# Full forward pass
# ----------------------------------------------------------------------------
def cnn_mnist_forward(x_nchw, params, *, conv_block_b=32, fc_block_b=128):
    """x_nchw: (B, 1, 28, 28) float32 -> logits (B, 10) float32."""
    B = x_nchw.shape[0]
    bt = _pick_conv_batch_tile(B, conv_block_b)
    Bp = _round_up(B, bt)

    # Cin == 1: squeeze to (B, 28, 28) and halo-pad once (network input only; the
    # conv1 kernel writes its output already halo-padded for conv2).
    img = x_nchw.reshape(B, 28, 28)
    xp = jnp.pad(img, ((0, Bp - B), (2, 2), (2, 2))).astype(jnp.bfloat16)   # (Bp, 32, 32)

    h1 = conv5x5_relu_pool(xp, params["conv1_w"], params["conv1_b"],
                           H=28, W=28, block_b=bt, pad_out=True)            # (Bp, 18, 288)
    h2 = conv5x5_relu_pool(h1, params["conv2_w"], params["conv2_b"],
                           H=14, W=14, block_b=bt, pad_out=False)           # (Bp, 7, 224)

    # Lane order of h2 is (w, cout); rows (b, h): flatten is a free reshape.
    x2d = h2.reshape(Bp, 7 * 7 * 32)

    # Fold PyTorch's NCHW flatten (c*49 + h*7 + w) into fc1's weight columns (h*224 + w*32 + c).
    w1 = (params["fc1_w"].reshape(128, 32, 7, 7)
          .transpose(0, 2, 3, 1)
          .reshape(128, 7 * 7 * 32)).T                                      # (1568, 128)

    # Lane-dense fc2: zero-pad the 10 output columns up to 128.
    n_pad = 128 - 10
    w2p = jnp.pad(params["fc2_w"].T, ((0, 0), (0, n_pad)))                  # (128, 128)
    b2p = jnp.pad(params["fc2_b"], (0, n_pad))                              # (128,)

    logits_p = fc_head(x2d, w1, params["fc1_b"], w2p, b2p, block_b=fc_block_b)  # (Bp, 128)
    return logits_p[:B, :10]


def init_params(key):
    """Deterministic synthetic parameters with the exact PyTorch shapes."""
    ks = jax.random.split(key, 8)
    s = 0.05
    return {
        "conv1_w": s * jax.random.normal(ks[0], (16, 1, 5, 5), jnp.float32),
        "conv1_b": s * jax.random.normal(ks[1], (16,), jnp.float32),
        "conv2_w": s * jax.random.normal(ks[2], (32, 16, 5, 5), jnp.float32),
        "conv2_b": s * jax.random.normal(ks[3], (32,), jnp.float32),
        "fc1_w": s * jax.random.normal(ks[4], (128, 32 * 7 * 7), jnp.float32),
        "fc1_b": s * jax.random.normal(ks[5], (128,), jnp.float32),
        "fc2_w": s * jax.random.normal(ks[6], (10, 128), jnp.float32),
        "fc2_b": s * jax.random.normal(ks[7], (10,), jnp.float32),
    }


if __name__ == "__main__":
    key = jax.random.PRNGKey(0)
    k_x, k_p = jax.random.split(key)

    # MNIST geometry is required by fc1 (32*7*7): batch=2, channels=1, spatial=28.
    x = jax.random.normal(k_x, (2, 1, 28, 28), jnp.float32)
    params = init_params(k_p)

    logits = jax.jit(cnn_mnist_forward)(x, params)
    jax.block_until_ready(logits)
    assert logits.shape == (2, 10) and logits.dtype == jnp.float32
    assert bool(jnp.all(jnp.isfinite(logits)))
    print("KERNEL_OK")
</pallas_src>

<mosaic_0001>
module attributes {stable_mosaic.version = 11 : i64} {
  func.func @_conv5x5_relu_pool_kernel(%arg0: i32, %arg1: memref<1x32x32xbf16, #tpu.memory_space<vmem>>, %arg2: memref<5x32x224xbf16, #tpu.memory_space<vmem>>, %arg3: memref<5x32x224xbf16, #tpu.memory_space<vmem>>, %arg4: memref<1x224xf32, #tpu.memory_space<vmem>>, %arg5: memref<1x18x288xbf16, #tpu.memory_space<vmem>>) attributes {dimension_semantics = [#tpu.dimension_semantics<parallel>], iteration_bounds = array<i64: 2>, scalar_prefetch = 0 : i64, scratch_operands = 0 : i64, tpu.core_type = #tpu.core_type<tc>, window_params = [{transform_indices = @transform_0, window_bounds = array<i64: 1, 32, 32>}, {pipeline_mode = #tpu.pipeline_mode<synchronous>, transform_indices = @transform_1, window_bounds = array<i64: 5, 32, 224>}, {pipeline_mode = #tpu.pipeline_mode<synchronous>, transform_indices = @transform_2, window_bounds = array<i64: 5, 32, 224>}, {pipeline_mode = #tpu.pipeline_mode<synchronous>, transform_indices = @transform_3, window_bounds = array<i64: 1, 224>}, {transform_indices = @transform_4, window_bounds = array<i64: 1, 18, 288>}]} {
    %cst = arith.constant 0.000000e+00 : f32
    %0 = vector.broadcast %cst : f32 to vector<28x224xf32>
    %cst_0 = arith.constant 0.000000e+00 : f32
    %1 = vector.broadcast %cst_0 : f32 to vector<28x224xf32>
    %c0 = arith.constant 0 : index
    %c0_1 = arith.constant 0 : index
    %c0_2 = arith.constant 0 : index
    %2 = vector.load %arg1[%c0, %c0_1, %c0_2] : memref<1x32x32xbf16, #tpu.memory_space<vmem>>, vector<1x28x32xbf16>
    %3 = vector.shape_cast %2 : vector<1x28x32xbf16> to vector<28x32xbf16>
    %c0_3 = arith.constant 0 : index
    %c0_4 = arith.constant 0 : index
    %c0_5 = arith.constant 0 : index
    %4 = vector.load %arg2[%c0_3, %c0_4, %c0_5] : memref<5x32x224xbf16, #tpu.memory_space<vmem>>, vector<1x32x224xbf16>
    %5 = vector.shape_cast %4 : vector<1x32x224xbf16> to vector<32x224xbf16>
    %cst_6 = arith.constant dense<0.000000e+00> : vector<28x224xf32>
    %6 = tpu.matmul %3, %5, %cst_6 {dimension_numbers = #tpu.dot_dimension_numbers<[1], [0], [0], [1], [0, 0, 1, 1], [], []>} : vector<28x32xbf16>, vector<32x224xbf16>, vector<28x224xf32> -> vector<28x224xf32>
    %7 = arith.addf %0, %6 : vector<28x224xf32>
    %c0_7 = arith.constant 0 : index
    %c0_8 = arith.constant 0 : index
    %c0_9 = arith.constant 0 : index
    %8 = vector.load %arg3[%c0_7, %c0_8, %c0_9] : memref<5x32x224xbf16, #tpu.memory_space<vmem>>, vector<1x32x224xbf16>
    %9 = vector.shape_cast %8 : vector<1x32x224xbf16> to vector<32x224xbf16>
    %cst_10 = arith.constant dense<0.000000e+00> : vector<28x224xf32>
    %10 = tpu.matmul %3, %9, %cst_10 {dimension_numbers = #tpu.dot_dimension_numbers<[1], [0], [0], [1], [0, 0, 1, 1], [], []>} : vector<28x32xbf16>, vector<32x224xbf16>, vector<28x224xf32> -> vector<28x224xf32>
    %11 = arith.addf %1, %10 : vector<28x224xf32>
    %c0_11 = arith.constant 0 : index
    %c1 = arith.constant 1 : index
    %c0_12 = arith.constant 0 : index
    %12 = vector.load %arg1[%c0_11, %c1, %c0_12] : memref<1x32x32xbf16, #tpu.memory_space<vmem>>, vector<1x28x32xbf16>
    %13 = vector.shape_cast %12 : vector<1x28x32xbf16> to vector<28x32xbf16>
    %c1_13 = arith.constant 1 : index
    %c0_14 = arith.constant 0 : index
    %c0_15 = arith.constant 0 : index
    %14 = vector.load %arg2[%c1_13, %c0_14, %c0_15] : memref<5x32x224xbf16, #tpu.memory_space<vmem>>, vector<1x32x224xbf16>
    %15 = vector.shape_cast %14 : vector<1x32x224xbf16> to vector<32x224xbf16>
    %cst_16 = arith.constant dense<0.000000e+00> : vector<28x224xf32>
    %16 = tpu.matmul %13, %15, %cst_16 {dimension_numbers = #tpu.dot_dimension_numbers<[1], [0], [0], [1], [0, 0, 1, 1], [], []>} : vector<28x32xbf16>, vector<32x224xbf16>, vector<28x224xf32> -> vector<28x224xf32>
    %17 = arith.addf %7, %16 : vector<28x224xf32>
    %c1_17 = arith.constant 1 : index
    %c0_18 = arith.constant 0 : index
    %c0_19 = arith.constant 0 : index
    %18 = vector.load %arg3[%c1_17, %c0_18, %c0_19] : memref<5x32x224xbf16, #tpu.memory_space<vmem>>, vector<1x32x224xbf16>
    %19 = vector.shape_cast %18 : vector<1x32x224xbf16> to vector<32x224xbf16>
    %cst_20 = arith.constant dense<0.000000e+00> : vector<28x224xf32>
    %20 = tpu.matmul %13, %19, %cst_20 {dimension_numbers = #tpu.dot_dimension_numbers<[1], [0], [0], [1], [0, 0, 1, 1], [], []>} : vector<28x32xbf16>, vector<32x224xbf16>, vector<28x224xf32> -> vector<28x224xf32>
    %21 = arith.addf %11, %20 : vector<28x224xf32>
    %c0_21 = arith.constant 0 : index
    %c2 = arith.constant 2 : index
    %c0_22 = arith.constant 0 : index
    %22 = vector.load %arg1[%c0_21, %c2, %c0_22] : memref<1x32x32xbf16, #tpu.memory_space<vmem>>, vector<1x28x32xbf16>
    %23 = vector.shape_cast %22 : vector<1x28x32xbf16> to vector<28x32xbf16>
    %c2_23 = arith.constant 2 : index
    %c0_24 = arith.constant 0 : index
    %c0_25 = arith.constant 0 : index
    %24 = vector.load %arg2[%c2_23, %c0_24, %c0_25] : memref<5x32x224xbf16, #tpu.memory_space<vmem>>, vector<1x32x224xbf16>
    %25 = vector.shape_cast %24 : vector<1x32x224xbf16> to vector<32x224xbf16>
    %cst_26 = arith.constant dense<0.000000e+00> : vector<28x224xf32>
    %26 = tpu.matmul %23, %25, %cst_26 {dimension_numbers = #tpu.dot_dimension_numbers<[1], [0], [0], [1], [0, 0, 1, 1], [], []>} : vector<28x32xbf16>, vector<32x224xbf16>, vector<28x224xf32> -> vector<28x224xf32>
    %27 = arith.addf %17, %26 : vector<28x224xf32>
    %c2_27 = arith.constant 2 : index
    %c0_28 = arith.constant 0 : index
    %c0_29 = arith.constant 0 : index
    %28 = vector.load %arg3[%c2_27, %c0_28, %c0_29] : memref<5x32x224xbf16, #tpu.memory_space<vmem>>, vector<1x32x224xbf16>
    %29 = vector.shape_cast %28 : vector<1x32x224xbf16> to vector<32x224xbf16>
    %cst_30 = arith.constant dense<0.000000e+00> : vector<28x224xf32>
    %30 = tpu.matmul %23, %29, %cst_30 {dimension_numbers = #tpu.dot_dimension_numbers<[1], [0], [0], [1], [0, 0, 1, 1], [], []>} : vector<28x32xbf16>, vector<32x224xbf16>, vector<28x224xf32> -> vector<28x224xf32>
    %31 = arith.addf %21, %30 : vector<28x224xf32>
    %c0_31 = arith.constant 0 : index
    %c3 = arith.constant 3 : index
    %c0_32 = arith.constant 0 : index
    %32 = vector.load %arg1[%c0_31, %c3, %c0_32] : memref<1x32x32xbf16, #tpu.memory_space<vmem>>, vector<1x28x32xbf16>
    %33 = vector.shape_cast %32 : vector<1x28x32xbf16> to vector<28x32xbf16>
    %c3_33 = arith.constant 3 : index
    %c0_34 = arith.constant 0 : index
    %c0_35 = arith.constant 0 : index
    %34 = vector.load %arg2[%c3_33, %c0_34, %c0_35] : memref<5x32x224xbf16, #tpu.memory_space<vmem>>, vector<1x32x224xbf16>
    %35 = vector.shape_cast %34 : vector<1x32x224xbf16> to vector<32x224xbf16>
    %cst_36 = arith.constant dense<0.000000e+00> : vector<28x224xf32>
    %36 = tpu.matmul %33, %35, %cst_36 {dimension_numbers = #tpu.dot_dimension_numbers<[1], [0], [0], [1], [0, 0, 1, 1], [], []>} : vector<28x32xbf16>, vector<32x224xbf16>, vector<28x224xf32> -> vector<28x224xf32>
    %37 = arith.addf %27, %36 : vector<28x224xf32>
    %c3_37 = arith.constant 3 : index
    %c0_38 = arith.constant 0 : index
    %c0_39 = arith.constant 0 : index
    %38 = vector.load %arg3[%c3_37, %c0_38, %c0_39] : memref<5x32x224xbf16, #tpu.memory_space<vmem>>, vector<1x32x224xbf16>
    %39 = vector.shape_cast %38 : vector<1x32x224xbf16> to vector<32x224xbf16>
    %cst_40 = arith.constant dense<0.000000e+00> : vector<28x224xf32>
    %40 = tpu.matmul %33, %39, %cst_40 {dimension_numbers = #tpu.dot_dimension_numbers<[1], [0], [0], [1], [0, 0, 1, 1], [], []>} : vector<28x32xbf16>, vector<32x224xbf16>, vector<28x224xf32> -> vector<28x224xf32>
    %41 = arith.addf %31, %40 : vector<28x224xf32>
    %c0_41 = arith.constant 0 : index
    %c4 = arith.constant 4 : index
    %c0_42 = arith.constant 0 : index
    %42 = vector.load %arg1[%c0_41, %c4, %c0_42] : memref<1x32x32xbf16, #tpu.memory_space<vmem>>, vector<1x28x32xbf16>
    %43 = vector.shape_cast %42 : vector<1x28x32xbf16> to vector<28x32xbf16>
    %c4_43 = arith.constant 4 : index
    %c0_44 = arith.constant 0 : index
    %c0_45 = arith.constant 0 : index
    %44 = vector.load %arg2[%c4_43, %c0_44, %c0_45] : memref<5x32x224xbf16, #tpu.memory_space<vmem>>, vector<1x32x224xbf16>
    %45 = vector.shape_cast %44 : vector<1x32x224xbf16> to vector<32x224xbf16>
    %cst_46 = arith.constant dense<0.000000e+00> : vector<28x224xf32>
    %46 = tpu.matmul %43, %45, %cst_46 {dimension_numbers = #tpu.dot_dimension_numbers<[1], [0], [0], [1], [0, 0, 1, 1], [], []>} : vector<28x32xbf16>, vector<32x224xbf16>, vector<28x224xf32> -> vector<28x224xf32>
    %47 = arith.addf %37, %46 : vector<28x224xf32>
    %c4_47 = arith.constant 4 : index
    %c0_48 = arith.constant 0 : index
    %c0_49 = arith.constant 0 : index
    %48 = vector.load %arg3[%c4_47, %c0_48, %c0_49] : memref<5x32x224xbf16, #tpu.memory_space<vmem>>, vector<1x32x224xbf16>
    %49 = vector.shape_cast %48 : vector<1x32x224xbf16> to vector<32x224xbf16>
    %cst_50 = arith.constant dense<0.000000e+00> : vector<28x224xf32>
    %50 = tpu.matmul %43, %49, %cst_50 {dimension_numbers = #tpu.dot_dimension_numbers<[1], [0], [0], [1], [0, 0, 1, 1], [], []>} : vector<28x32xbf16>, vector<32x224xbf16>, vector<28x224xf32> -> vector<28x224xf32>
    %51 = arith.addf %41, %50 : vector<28x224xf32>
    %52 = arith.maximumf %47, %51 : vector<28x224xf32>
    %53 = vector.shape_cast %52 : vector<28x224xf32> to vector<14x2x224xf32>
    %54 = vector.extract_strided_slice %53 {offsets = [0, 0, 0], sizes = [14, 1, 224], strides = [1, 1, 1]} : vector<14x2x224xf32> to vector<14x1x224xf32>
    %55 = vector.shape_cast %54 : vector<14x1x224xf32> to vector<14x224xf32>
    %56 = vector.extract_strided_slice %53 {offsets = [0, 1, 0], sizes = [14, 1, 224], strides = [1, 1, 1]} : vector<14x2x224xf32> to vector<14x1x224xf32>
    %57 = vector.shape_cast %56 : vector<14x1x224xf32> to vector<14x224xf32>
    %58 = arith.maximumf %55, %57 : vector<14x224xf32>
    %c0_51 = arith.constant 0 : index
    %c0_52 = arith.constant 0 : index
    %59 = vector.load %arg4[%c0_51, %c0_52] : memref<1x224xf32, #tpu.memory_space<vmem>>, vector<1x224xf32>
    %60 = vector.broadcast %59 : vector<1x224xf32> to vector<14x224xf32>
    %61 = arith.addf %58, %60 : vector<14x224xf32>
    %cst_53 = arith.constant 0.000000e+00 : f32
    %62 = vector.broadcast %cst_53 : f32 to vector<14x224xf32>
    %63 = arith.maximumf %61, %62 : vector<14x224xf32>
    %64 = vector.shape_cast %63 : vector<14x224xf32> to vector<1x14x224xf32>
    %65 = arith.truncf %64 : vector<1x14x224xf32> to vector<1x14x224xbf16>
    %cst_54 = arith.constant 0.000000e+00 : bf16
    %66 = vector.broadcast %cst_54 : bf16 to vector<1x2x224xbf16>
    %67 = tpu.concatenate %66, %65, %66 in 1 : vector<1x2x224xbf16>, vector<1x14x224xbf16>, vector<1x2x224xbf16> -> vector<1x18x224xbf16>
    %cst_55 = arith.constant 0.000000e+00 : bf16
    %68 = vector.broadcast %cst_55 : bf16 to vector<1x18x32xbf16>
    %69 = tpu.concatenate %68, %67, %68 in 2 : vector<1x18x32xbf16>, vector<1x18x224xbf16>, vector<1x18x32xbf16> -> vector<1x18x288xbf16>
    %c0_56 = arith.constant 0 : index
    %c0_57 = arith.constant 0 : index
    %c0_58 = arith.constant 0 : index
    %70 = vector.load %arg5[%c0_56, %c0_57, %c0_58] : memref<1x18x288xbf16, #tpu.memory_space<vmem>>, vector<1x18x288xbf16>
    tpu.vector_store %arg5[%c0_56, %c0_57, %c0_58], %69 {strides = array<i32>} : memref<1x18x288xbf16, #tpu.memory_space<vmem>>, vector<1x18x288xbf16>,
    return
  }
  func.func @transform_0(%arg0: i32) -> (i32, i32, i32) {
    %c0_i32 = arith.constant 0 : i32
    %c0_i32_0 = arith.constant 0 : i32
    %c0_i32_1 = arith.constant 0 : i32
    return %arg0, %c0_i32, %c0_i32_0 : i32, i32, i32
  }
  func.func @transform_1(%arg0: i32) -> (i32, i32, i32) {
    %c0_i32 = arith.constant 0 : i32
    %c0_i32_0 = arith.constant 0 : i32
    %c0_i32_1 = arith.constant 0 : i32
    %c0_i32_2 = arith.constant 0 : i32
    return %c0_i32, %c0_i32_0, %c0_i32_1 : i32, i32, i32
  }
  func.func @transform_2(%arg0: i32) -> (i32, i32, i32) {
    %c0_i32 = arith.constant 0 : i32
    %c0_i32_0 = arith.constant 0 : i32
    %c0_i32_1 = arith.constant 0 : i32
    %c0_i32_2 = arith.constant 0 : i32
    return %c0_i32, %c0_i32_0, %c0_i32_1 : i32, i32, i32
  }
  func.func @transform_3(%arg0: i32) -> (i32, i32) {
    %c0_i32 = arith.constant 0 : i32
    %c0_i32_0 = arith.constant 0 : i32
    %c0_i32_1 = arith.constant 0 : i32
    return %c0_i32, %c0_i32_0 : i32, i32
  }
  func.func @transform_4(%arg0: i32) -> (i32, i32, i32) {
    %c0_i32 = arith.constant 0 : i32
    %c0_i32_0 = arith.constant 0 : i32
    %c0_i32_1 = arith.constant 0 : i32
    return %arg0, %c0_i32, %c0_i32_0 : i32, i32, i32
  }
}

module attributes {stable_mosaic.version = 11 : i64} {
  func.func @_conv5x5_relu_pool_kernel(%arg0: i32, %arg1: memref<1x18x288xbf16, #tpu.memory_space<vmem>>, %arg2: memref<5x288x224xbf16, #tpu.memory_space<vmem>>, %arg3: memref<5x288x224xbf16, #tpu.memory_space<vmem>>, %arg4: memref<1x224xf32, #tpu.memory_space<vmem>>, %arg5: memref<1x7x224xbf16, #tpu.memory_space<vmem>>) attributes {dimension_semantics = [#tpu.dimension_semantics<parallel>], iteration_bounds = array<i64: 2>, scalar_prefetch = 0 : i64, scratch_operands = 0 : i64, tpu.core_type = #tpu.core_type<tc>, window_params = [{transform_indices = @transform_0, window_bounds = array<i64: 1, 18, 288>}, {pipeline_mode = #tpu.pipeline_mode<synchronous>, transform_indices = @transform_1, window_bounds = array<i64: 5, 288, 224>}, {pipeline_mode = #tpu.pipeline_mode<synchronous>, transform_indices = @transform_2, window_bounds = array<i64: 5, 288, 224>}, {pipeline_mode = #tpu.pipeline_mode<synchronous>, transform_indices = @transform_3, window_bounds = array<i64: 1, 224>}, {transform_indices = @transform_4, window_bounds = array<i64: 1, 7, 224>}]} {
    %cst = arith.constant 0.000000e+00 : f32
    %0 = vector.broadcast %cst : f32 to vector<14x224xf32>
    %cst_0 = arith.constant 0.000000e+00 : f32
    %1 = vector.broadcast %cst_0 : f32 to vector<14x224xf32>
    %c0 = arith.constant 0 : index
    %c0_1 = arith.constant 0 : index
    %c0_2 = arith.constant 0 : index
    %2 = vector.load %arg1[%c0, %c0_1, %c0_2] : memref<1x18x288xbf16, #tpu.memory_space<vmem>>, vector<1x14x288xbf16>
    %3 = vector.shape_cast %2 : vector<1x14x288xbf16> to vector<14x288xbf16>
    %c0_3 = arith.constant 0 : index
    %c0_4 = arith.constant 0 : index
    %c0_5 = arith.constant 0 : index
    %4 = vector.load %arg2[%c0_3, %c0_4, %c0_5] : memref<5x288x224xbf16, #tpu.memory_space<vmem>>, vector<1x288x224xbf16>
    %5 = vector.shape_cast %4 : vector<1x288x224xbf16> to vector<288x224xbf16>
    %cst_6 = arith.constant dense<0.000000e+00> : vector<14x224xf32>
    %6 = tpu.matmul %3, %5, %cst_6 {dimension_numbers = #tpu.dot_dimension_numbers<[1], [0], [0], [1], [0, 0, 1, 1], [], []>} : vector<14x288xbf16>, vector<288x224xbf16>, vector<14x224xf32> -> vector<14x224xf32>
    %7 = arith.addf %0, %6 : vector<14x224xf32>
    %c0_7 = arith.constant 0 : index
    %c0_8 = arith.constant 0 : index
    %c0_9 = arith.constant 0 : index
    %8 = vector.load %arg3[%c0_7, %c0_8, %c0_9] : memref<5x288x224xbf16, #tpu.memory_space<vmem>>, vector<1x288x224xbf16>
    %9 = vector.shape_cast %8 : vector<1x288x224xbf16> to vector<288x224xbf16>
    %cst_10 = arith.constant dense<0.000000e+00> : vector<14x224xf32>
    %10 = tpu.matmul %3, %9, %cst_10 {dimension_numbers = #tpu.dot_dimension_numbers<[1], [0], [0], [1], [0, 0, 1, 1], [], []>} : vector<14x288xbf16>, vector<288x224xbf16>, vector<14x224xf32> -> vector<14x224xf32>
    %11 = arith.addf %1, %10 : vector<14x224xf32>
    %c0_11 = arith.constant 0 : index
    %c1 = arith.constant 1 : index
    %c0_12 = arith.constant 0 : index
    %12 = vector.load %arg1[%c0_11, %c1, %c0_12] : memref<1x18x288xbf16, #tpu.memory_space<vmem>>, vector<1x14x288xbf16>
    %13 = vector.shape_cast %12 : vector<1x14x288xbf16> to vector<14x288xbf16>
    %c1_13 = arith.constant 1 : index
    %c0_14 = arith.constant 0 : index
    %c0_15 = arith.constant 0 : index
    %14 = vector.load %arg2[%c1_13, %c0_14, %c0_15] : memref<5x288x224xbf16, #tpu.memory_space<vmem>>, vector<1x288x224xbf16>
    %15 = vector.shape_cast %14 : vector<1x288x224xbf16> to vector<288x224xbf16>
    %cst_16 = arith.constant dense<0.000000e+00> : vector<14x224xf32>
    %16 = tpu.matmul %13, %15, %cst_16 {dimension_numbers = #tpu.dot_dimension_numbers<[1], [0], [0], [1], [0, 0, 1, 1], [], []>} : vector<14x288xbf16>, vector<288x224xbf16>, vector<14x224xf32> -> vector<14x224xf32>
    %17 = arith.addf %7, %16 : vector<14x224xf32>
    %c1_17 = arith.constant 1 : index
    %c0_18 = arith.constant 0 : index
    %c0_19 = arith.constant 0 : index
    %18 = vector.load %arg3[%c1_17, %c0_18, %c0_19] : memref<5x288x224xbf16, #tpu.memory_space<vmem>>, vector<1x288x224xbf16>
    %19 = vector.shape_cast %18 : vector<1x288x224xbf16> to vector<288x224xbf16>
    %cst_20 = arith.constant dense<0.000000e+00> : vector<14x224xf32>
    %20 = tpu.matmul %13, %19, %cst_20 {dimension_numbers = #tpu.dot_dimension_numbers<[1], [0], [0], [1], [0, 0, 1, 1], [], []>} : vector<14x288xbf16>, vector<288x224xbf16>, vector<14x224xf32> -> vector<14x224xf32>
    %21 = arith.addf %11, %20 : vector<14x224xf32>
    %c0_21 = arith.constant 0 : index
    %c2 = arith.constant 2 : index
    %c0_22 = arith.constant 0 : index
    %22 = vector.load %arg1[%c0_21, %c2, %c0_22] : memref<1x18x288xbf16, #tpu.memory_space<vmem>>, vector<1x14x288xbf16>
    %23 = vector.shape_cast %22 : vector<1x14x288xbf16> to vector<14x288xbf16>
    %c2_23 = arith.constant 2 : index
    %c0_24 = arith.constant 0 : index
    %c0_25 = arith.constant 0 : index
    %24 = vector.load %arg2[%c2_23, %c0_24, %c0_25] : memref<5x288x224xbf16, #tpu.memory_space<vmem>>, vector<1x288x224xbf16>
    %25 = vector.shape_cast %24 : vector<1x288x224xbf16> to vector<288x224xbf16>
    %cst_26 = arith.constant dense<0.000000e+00> : vector<14x224xf32>
    %26 = tpu.matmul %23, %25, %cst_26 {dimension_numbers = #tpu.dot_dimension_numbers<[1], [0], [0], [1], [0, 0, 1, 1], [], []>} : vector<14x288xbf16>, vector<288x224xbf16>, vector<14x224xf32> -> vector<14x224xf32>
    %27 = arith.addf %17, %26 : vector<14x224xf32>
    %c2_27 = arith.constant 2 : index
    %c0_28 = arith.constant 0 : index
    %c0_29 = arith.constant 0 : index
    %28 = vector.load %arg3[%c2_27, %c0_28, %c0_29] : memref<5x288x224xbf16, #tpu.memory_space<vmem>>, vector<1x288x224xbf16>
    %29 = vector.shape_cast %28 : vector<1x288x224xbf16> to vector<288x224xbf16>
    %cst_30 = arith.constant dense<0.000000e+00> : vector<14x224xf32>
    %30 = tpu.matmul %23, %29, %cst_30 {dimension_numbers = #tpu.dot_dimension_numbers<[1], [0], [0], [1], [0, 0, 1, 1], [], []>} : vector<14x288xbf16>, vector<288x224xbf16>, vector<14x224xf32> -> vector<14x224xf32>
    %31 = arith.addf %21, %30 : vector<14x224xf32>
    %c0_31 = arith.constant 0 : index
    %c3 = arith.constant 3 : index
    %c0_32 = arith.constant 0 : index
    %32 = vector.load %arg1[%c0_31, %c3, %c0_32] : memref<1x18x288xbf16, #tpu.memory_space<vmem>>, vector<1x14x288xbf16>
    %33 = vector.shape_cast %32 : vector<1x14x288xbf16> to vector<14x288xbf16>
    %c3_33 = arith.constant 3 : index
    %c0_34 = arith.constant 0 : index
    %c0_35 = arith.constant 0 : index
    %34 = vector.load %arg2[%c3_33, %c0_34, %c0_35] : memref<5x288x224xbf16, #tpu.memory_space<vmem>>, vector<1x288x224xbf16>
    %35 = vector.shape_cast %34 : vector<1x288x224xbf16> to vector<288x224xbf16>
    %cst_36 = arith.constant dense<0.000000e+00> : vector<14x224xf32>
    %36 = tpu.matmul %33, %35, %cst_36 {dimension_numbers = #tpu.dot_dimension_numbers<[1], [0], [0], [1], [0, 0, 1, 1], [], []>} : vector<14x288xbf16>, vector<288x224xbf16>, vector<14x224xf32> -> vector<14x224xf32>
    %37 = arith.addf %27, %36 : vector<14x224xf32>
    %c3_37 = arith.constant 3 : index
    %c0_38 = arith.constant 0 : index
    %c0_39 = arith.constant 0 : index
    %38 = vector.load %arg3[%c3_37, %c0_38, %c0_39] : memref<5x288x224xbf16, #tpu.memory_space<vmem>>, vector<1x288x224xbf16>
    %39 = vector.shape_cast %38 : vector<1x288x224xbf16> to vector<288x224xbf16>
    %cst_40 = arith.constant dense<0.000000e+00> : vector<14x224xf32>
    %40 = tpu.matmul %33, %39, %cst_40 {dimension_numbers = #tpu.dot_dimension_numbers<[1], [0], [0], [1], [0, 0, 1, 1], [], []>} : vector<14x288xbf16>, vector<288x224xbf16>, vector<14x224xf32> -> vector<14x224xf32>
    %41 = arith.addf %31, %40 : vector<14x224xf32>
    %c0_41 = arith.constant 0 : index
    %c4 = arith.constant 4 : index
    %c0_42 = arith.constant 0 : index
    %42 = vector.load %arg1[%c0_41, %c4, %c0_42] : memref<1x18x288xbf16, #tpu.memory_space<vmem>>, vector<1x14x288xbf16>
    %43 = vector.shape_cast %42 : vector<1x14x288xbf16> to vector<14x288xbf16>
    %c4_43 = arith.constant 4 : index
    %c0_44 = arith.constant 0 : index
    %c0_45 = arith.constant 0 : index
    %44 = vector.load %arg2[%c4_43, %c0_44, %c0_45] : memref<5x288x224xbf16, #tpu.memory_space<vmem>>, vector<1x288x224xbf16>
    %45 = vector.shape_cast %44 : vector<1x288x224xbf16> to vector<288x224xbf16>
    %cst_46 = arith.constant dense<0.000000e+00> : vector<14x224xf32>
    %46 = tpu.matmul %43, %45, %cst_46 {dimension_numbers = #tpu.dot_dimension_numbers<[1], [0], [0], [1], [0, 0, 1, 1], [], []>} : vector<14x288xbf16>, vector<288x224xbf16>, vector<14x224xf32> -> vector<14x224xf32>
    %47 = arith.addf %37, %46 : vector<14x224xf32>
    %c4_47 = arith.constant 4 : index
    %c0_48 = arith.constant 0 : index
    %c0_49 = arith.constant 0 : index
    %48 = vector.load %arg3[%c4_47, %c0_48, %c0_49] : memref<5x288x224xbf16, #tpu.memory_space<vmem>>, vector<1x288x224xbf16>
    %49 = vector.shape_cast %48 : vector<1x288x224xbf16> to vector<288x224xbf16>
    %cst_50 = arith.constant dense<0.000000e+00> : vector<14x224xf32>
    %50 = tpu.matmul %43, %49, %cst_50 {dimension_numbers = #tpu.dot_dimension_numbers<[1], [0], [0], [1], [0, 0, 1, 1], [], []>} : vector<14x288xbf16>, vector<288x224xbf16>, vector<14x224xf32> -> vector<14x224xf32>
    %51 = arith.addf %41, %50 : vector<14x224xf32>
    %52 = arith.maximumf %47, %51 : vector<14x224xf32>
    %53 = vector.shape_cast %52 : vector<14x224xf32> to vector<7x2x224xf32>
    %54 = vector.extract_strided_slice %53 {offsets = [0, 0, 0], sizes = [7, 1, 224], strides = [1, 1, 1]} : vector<7x2x224xf32> to vector<7x1x224xf32>
    %55 = vector.shape_cast %54 : vector<7x1x224xf32> to vector<7x224xf32>
    %56 = vector.extract_strided_slice %53 {offsets = [0, 1, 0], sizes = [7, 1, 224], strides = [1, 1, 1]} : vector<7x2x224xf32> to vector<7x1x224xf32>
    %57 = vector.shape_cast %56 : vector<7x1x224xf32> to vector<7x224xf32>
    %58 = arith.maximumf %55, %57 : vector<7x224xf32>
    %c0_51 = arith.constant 0 : index
    %c0_52 = arith.constant 0 : index
    %59 = vector.load %arg4[%c0_51, %c0_52] : memref<1x224xf32, #tpu.memory_space<vmem>>, vector<1x224xf32>
    %60 = vector.broadcast %59 : vector<1x224xf32> to vector<7x224xf32>
    %61 = arith.addf %58, %60 : vector<7x224xf32>
    %cst_53 = arith.constant 0.000000e+00 : f32
    %62 = vector.broadcast %cst_53 : f32 to vector<7x224xf32>
    %63 = arith.maximumf %61, %62 : vector<7x224xf32>
    %64 = vector.shape_cast %63 : vector<7x224xf32> to vector<1x7x224xf32>
    %65 = arith.truncf %64 : vector<1x7x224xf32> to vector<1x7x224xbf16>
    %c0_54 = arith.constant 0 : index
    %c0_55 = arith.constant 0 : index
    %c0_56 = arith.constant 0 : index
    %66 = vector.load %arg5[%c0_54, %c0_55, %c0_56] : memref<1x7x224xbf16, #tpu.memory_space<vmem>>, vector<1x7x224xbf16>
    tpu.vector_store %arg5[%c0_54, %c0_55, %c0_56], %65 {strides = array<i32>} : memref<1x7x224xbf16, #tpu.memory_space<vmem>>, vector<1x7x224xbf16>,
    return
  }
  func.func @transform_0(%arg0: i32) -> (i32, i32, i32) {
    %c0_i32 = arith.constant 0 : i32
    %c0_i32_0 = arith.constant 0 : i32
    %c0_i32_1 = arith.constant 0 : i32
    return %arg0, %c0_i32, %c0_i32_0 : i32, i32, i32
  }
  func.func @transform_1(%arg0: i32) -> (i32, i32, i32) {
    %c0_i32 = arith.constant 0 : i32
    %c0_i32_0 = arith.constant 0 : i32
    %c0_i32_1 = arith.constant 0 : i32
    %c0_i32_2 = arith.constant 0 : i32
    return %c0_i32, %c0_i32_0, %c0_i32_1 : i32, i32, i32
  }
  func.func @transform_2(%arg0: i32) -> (i32, i32, i32) {
    %c0_i32 = arith.constant 0 : i32
    %c0_i32_0 = arith.constant 0 : i32
    %c0_i32_1 = arith.constant 0 : i32
    %c0_i32_2 = arith.constant 0 : i32
    return %c0_i32, %c0_i32_0, %c0_i32_1 : i32, i32, i32
  }
  func.func @transform_3(%arg0: i32) -> (i32, i32) {
    %c0_i32 = arith.constant 0 : i32
    %c0_i32_0 = arith.constant 0 : i32
    %c0_i32_1 = arith.constant 0 : i32
    return %c0_i32, %c0_i32_0 : i32, i32
  }
  func.func @transform_4(%arg0: i32) -> (i32, i32, i32) {
    %c0_i32 = arith.constant 0 : i32
    %c0_i32_0 = arith.constant 0 : i32
    %c0_i32_1 = arith.constant 0 : i32
    return %arg0, %c0_i32, %c0_i32_0 : i32, i32, i32
  }
}

module attributes {stable_mosaic.version = 11 : i64} {
  func.func @_fc_fused_kernel(%arg0: i32, %arg1: memref<8x1568xbf16, #tpu.memory_space<vmem>>, %arg2: memref<1568x128xbf16, #tpu.memory_space<vmem>>, %arg3: memref<1x128xf32, #tpu.memory_space<vmem>>, %arg4: memref<128x128xbf16, #tpu.memory_space<vmem>>, %arg5: memref<1x128xf32, #tpu.memory_space<vmem>>, %arg6: memref<8x128xf32, #tpu.memory_space<vmem>>) attributes {dimension_semantics = [#tpu.dimension_semantics<parallel>], iteration_bounds = array<i64: 1>, scalar_prefetch = 0 : i64, scratch_operands = 0 : i64, tpu.core_type = #tpu.core_type<tc>, window_params = [{transform_indices = @transform_0, window_bounds = array<i64: 8, 1568>}, {pipeline_mode = #tpu.pipeline_mode<synchronous>, transform_indices = @transform_1, window_bounds = array<i64: 1568, 128>}, {pipeline_mode = #tpu.pipeline_mode<synchronous>, transform_indices = @transform_2, window_bounds = array<i64: 1, 128>}, {pipeline_mode = #tpu.pipeline_mode<synchronous>, transform_indices = @transform_3, window_bounds = array<i64: 128, 128>}, {pipeline_mode = #tpu.pipeline_mode<synchronous>, transform_indices = @transform_4, window_bounds = array<i64: 1, 128>}, {transform_indices = @transform_5, window_bounds = array<i64: 8, 128>}]} {
    %c0 = arith.constant 0 : index
    %c0_0 = arith.constant 0 : index
    %0 = vector.load %arg1[%c0, %c0_0] : memref<8x1568xbf16, #tpu.memory_space<vmem>>, vector<8x1568xbf16>
    %c0_1 = arith.constant 0 : index
    %c0_2 = arith.constant 0 : index
    %1 = vector.load %arg2[%c0_1, %c0_2] : memref<1568x128xbf16, #tpu.memory_space<vmem>>, vector<1568x128xbf16>
    %cst = arith.constant dense<0.000000e+00> : vector<8x128xf32>
    %2 = tpu.matmul %0, %1, %cst {dimension_numbers = #tpu.dot_dimension_numbers<[1], [0], [0], [1], [0, 0, 1, 1], [], []>} : vector<8x1568xbf16>, vector<1568x128xbf16>, vector<8x128xf32> -> vector<8x128xf32>
    %c0_3 = arith.constant 0 : index
    %c0_4 = arith.constant 0 : index
    %3 = vector.load %arg3[%c0_3, %c0_4] : memref<1x128xf32, #tpu.memory_space<vmem>>, vector<1x128xf32>
    %4 = vector.broadcast %3 : vector<1x128xf32> to vector<8x128xf32>
    %5 = arith.addf %2, %4 : vector<8x128xf32>
    %cst_5 = arith.constant 0.000000e+00 : f32
    %6 = vector.broadcast %cst_5 : f32 to vector<8x128xf32>
    %7 = arith.maximumf %5, %6 : vector<8x128xf32>
    %8 = arith.truncf %7 : vector<8x128xf32> to vector<8x128xbf16>
    %c0_6 = arith.constant 0 : index
    %c0_7 = arith.constant 0 : index
    %9 = vector.load %arg4[%c0_6, %c0_7] : memref<128x128xbf16, #tpu.memory_space<vmem>>, vector<128x128xbf16>
    %cst_8 = arith.constant dense<0.000000e+00> : vector<8x128xf32>
    %10 = tpu.matmul %8, %9, %cst_8 {dimension_numbers = #tpu.dot_dimension_numbers<[1], [0], [0], [1], [0, 0, 1, 1], [], []>} : vector<8x128xbf16>, vector<128x128xbf16>, vector<8x128xf32> -> vector<8x128xf32>
    %c0_9 = arith.constant 0 : index
    %c0_10 = arith.constant 0 : index
    %11 = vector.load %arg5[%c0_9, %c0_10] : memref<1x128xf32, #tpu.memory_space<vmem>>, vector<1x128xf32>
    %12 = vector.broadcast %11 : vector<1x128xf32> to vector<8x128xf32>
    %13 = arith.addf %10, %12 : vector<8x128xf32>
    %c0_11 = arith.constant 0 : index
    %c0_12 = arith.constant 0 : index
    %14 = vector.load %arg6[%c0_11, %c0_12] : memref<8x128xf32, #tpu.memory_space<vmem>>, vector<8x128xf32>
    tpu.vector_store %arg6[%c0_11, %c0_12], %13 {strides = array<i32>} : memref<8x128xf32, #tpu.memory_space<vmem>>, vector<8x128xf32>,
    return
  }
  func.func @transform_0(%arg0: i32) -> (i32, i32) {
    %c0_i32 = arith.constant 0 : i32
    %c0_i32_0 = arith.constant 0 : i32
    return %arg0, %c0_i32 : i32, i32
  }
  func.func @transform_1(%arg0: i32) -> (i32, i32) {
    %c0_i32 = arith.constant 0 : i32
    %c0_i32_0 = arith.constant 0 : i32
    %c0_i32_1 = arith.constant 0 : i32
    return %c0_i32, %c0_i32_0 : i32, i32
  }
  func.func @transform_2(%arg0: i32) -> (i32, i32) {
    %c0_i32 = arith.constant 0 : i32
    %c0_i32_0 = arith.constant 0 : i32
    %c0_i32_1 = arith.constant 0 : i32
    return %c0_i32, %c0_i32_0 : i32, i32
  }
  func.func @transform_3(%arg0: i32) -> (i32, i32) {
    %c0_i32 = arith.constant 0 : i32
    %c0_i32_0 = arith.constant 0 : i32
    %c0_i32_1 = arith.constant 0 : i32
    return %c0_i32, %c0_i32_0 : i32, i32
  }
  func.func @transform_4(%arg0: i32) -> (i32, i32) {
    %c0_i32 = arith.constant 0 : i32
    %c0_i32_0 = arith.constant 0 : i32
    %c0_i32_1 = arith.constant 0 : i32
    return %c0_i32, %c0_i32_0 : i32, i32
  }
  func.func @transform_5(%arg0: i32) -> (i32, i32) {
    %c0_i32 = arith.constant 0 : i32
    %c0_i32_0 = arith.constant 0 : i32
    return %arg0, %c0_i32 : i32, i32
  }
}

</mosaic_0001>

<bundles_post_ra>
// kernel: tile.13
= control target key start
LH: loop header
LB: loop body
LE: loop exit
PB: predicated region body
PF: predicated region fallthrough
CT: control target
= control target key end

     0   :  { %s28_s0 = inlined_call_operand.vmem [shape: f32[16], index: 0, kind: input, shape index: {}]   ;;  %s29_s1 = inlined_call_operand.vmem [shape: f32[14,16], index: 1, kind: output, shape index: {}]  }
   0x1   :  { %v4_v0 = vld [vmem:[%s28_s0] ss:$0 sm:$0xff] }
   0x2   :  { %5 = vst [vmem:[%s29_s1] sm:$0xff] %v4_v0  ;;  %8 = vst [vmem:[%s29_s1 + $0x8] sm:$0xff] %v4_v0 }

// kernel: tile.14
= control target key start
LH: loop header
LB: loop body
LE: loop exit
PB: predicated region body
PF: predicated region fallthrough
CT: control target
= control target key end

     0   :  { %s19_s8 = smov 3  ;;  %s82_s9 = smov 112   ;;  %vm4_vm0 = vcmask 130048   ;;  %vm10_vm1 = vcmask 1048448   ;;  %vm16_vm2 = vcmask 917248   ;;  %vm23_vm3 = vcmask 786048   ;;  %s129_s0 = inlined_call_operand.vmem [shape: f32[14,16], index: 0, kind: input, shape index: {}]   ;;  %s130_s1 = inlined_call_operand.vmem [shape: f32[1,224], index: 1, kind: output, shape index: {}]  }
   0x1   :  { %v67_v0 = vld [vmem:[%s129_s0 + $0x7] sm:$0x1]   ;;  %v69_v1 = vld [vmem:[%s129_s0 + $0x5] ss:$8 sm:%s19_s8]   ;;  %s83_s12 = smov 80   ;;  %s26_s15 = smov 3 }
   0x2   :  { %8 = vrot.lane.b32.xlu0 %v67_v0, %s82_s9  ;;  %21 = vrot.lane.b32.xlu1 %v69_v1, %s83_s12  ;;  %v68_v2 = vld [vmem:[%s129_s0 + $0x6] sm:$0x1]   ;;  %s33_s18 = smov 3  ;;  %s40_s19 = smov 3  ;;  %vm30_vm4 = vcmask 654848   ;;  %vm37_vm5 = vcmask 523648  }
   0x3   :  { %v70_v3 = vld [vmem:[%s129_s0 + $0x4] ss:$8 sm:%s26_s15]   ;;  %s84_s20 = smov 96   ;;  %s85_s21 = smov 64   ;;  %v71_v4 = vld [vmem:[%s129_s0 + $0x3] ss:$8 sm:%s33_s18]  }
   0x4   :  { %s2_s24 = smov 3  ;;  %v72_v5 = vld [vmem:[%s129_s0 + $0x2] ss:$8 sm:%s40_s19]   ;;  %s47_s27 = smov 3  ;;  %vm44_vm6 = vcmask 392448   ;;  %vm51_vm7 = vcmask 261248  }
   0x5   :  { %v3_v6 = vld [vmem:[%s129_s0] ss:$8 sm:%s2_s24]   ;;  %s86_s30 = smov 48   ;;  %s87_s2 = smov 32   ;;  %v73_v7 = vld [vmem:[%s129_s0 + $0x1] ss:$8 sm:%s47_s27]  }
   0x6   :  { %14 = vrot.lane.b32.xlu0 %v68_v2, %s84_s20  ;;  %28 = vrot.lane.b32.xlu1 %v70_v3, %s85_s21  ;;  %5 = vst.msk [vmem:[#allocation0] ss:$8 sm:$0x3] %vm4_vm0, %v3_v6   ;;  %s88_s0 = smov 16  }
   0xa   :  { %35 = vrot.lane.b32.xlu0 %v71_v4, %s86_s30  ;;  %42 = vrot.lane.b32.xlu1 %v72_v5, %s87_s2 }
   0xe   :  { %49 = vrot.lane.b32.xlu0 %v73_v7, %s88_s0 }
  0x74   :  { %v9_v8 = vpop.permute.xlu0 %8   ;;  %v22_v9 = vpop.permute.xlu1 %21  }
  0x75   :  { %11 = vst.msk [vmem:[#allocation0] sm:$0x1] %vm10_vm1, %v9_v8  }
  0x78   :  { %v15_v10 = vpop.permute.xlu0 %14   ;;  %v29_v11 = vpop.permute.xlu1 %28  }
  0x79   :  { %17 = vst.msk [vmem:[#allocation0] sm:$0x1] %vm16_vm2, %v15_v10  }
  0x7a   :  { %24 = vst.msk [vmem:[#allocation0] ss:$8 sm:$0x3] %vm23_vm3, %v22_v9  }
  0x7b   :  { %31 = vst.msk [vmem:[#allocation0] ss:$8 sm:$0x3] %vm30_vm4, %v29_v11  }
  0x7c   :  { %v36_v12 = vpop.permute.xlu0 %35   ;;  %v43_v13 = vpop.permute.xlu1 %42  }
  0x7d   :  { %38 = vst.msk [vmem:[#allocation0] ss:$8 sm:$0x3] %vm37_vm5, %v36_v12  }
  0x7e   :  { %45 = vst.msk [vmem:[#allocation0] ss:$8 sm:$0x3] %vm44_vm6, %v43_v13  }
  0x80   :  { %v50_v14 = vpop.permute.xlu0 %49  }
  0x81   :  { %52 = vst.msk [vmem:[#allocation0] ss:$8 sm:$0x3] %vm51_vm7, %v50_v14  }
  0x88   :  { %v57_v15 = vld [vmem:[#allocation0] sm:$0x1]  ;;  %v62_v16 = vld [vmem:[#allocation0 + $0x8] sm:$0x1] }
  0x89   :  { %60 = vst [vmem:[%s130_s1] sm:$0x1] %v57_v15  ;;  %74 = vst [vmem:[%s130_s1 + $0x1] sm:$0x1] %v62_v16 }

// kernel: cnn_mnist_forward.3
= control target key start
LH: loop header
LB: loop body
LE: loop exit
PB: predicated region body
PF: predicated region fallthrough
CT: control target
= control target key end

     0   :  { %s1987_s15 = smov 0   ;;  %s2577_s0 = inlined_call_operand.vmem [shape: bf16[2,32,32], index: 0, kind: input, shape index: {}]   ;;  %s2578_s1 = inlined_call_operand.vmem [shape: bf16[5,32,224], index: 1, kind: input, shape index: {}]   ;;  %s2579_s2 = inlined_call_operand.vmem [shape: bf16[5,32,224], index: 2, kind: input, shape index: {}]   ;;  %s2580_s3 = inlined_call_operand.vmem [shape: f32[1,224], index: 3, kind: input, shape index: {}]   ;;  %s2581_s4 = inlined_call_operand.vmem [shape: bf16[2,18,288], index: 4, kind: output, shape index: {}]  }
   0x1 LB: > { %s1745_s16 = sadd.s32 4294967295, %s1957_s15   ;;  %p1749_p0 = scmp.ge.s32.totalorder %s1957_s15, 1  ;;  %s1957_s15 = sphi %s1987_s15, %s14_s15  }
   0x2   : > { %p162_p1 = scmp.lt.s32.totalorder %s1957_s15, 3 }
   0x4   : > { %p163_p2 = pnand %p1749_p0, %p162_p1 }
   0x6   : > { %166 = sbr.rel (%p163_p2) target bundleno = 472 (0x1d8), region = 36 }
   0xb   : > { %v1885_v0 = vld [vmem:[%s2578_s1 + $0x14] ss:$8 sps:$4 sm:$0xff]   ;;  %p188_p3 = scmp.lt.s32.totalorder %s1745_s16, 1  ;;  %v1887_v1 = vld [vmem:[%s2578_s1 + $0x10] ss:$8 sps:$4 sm:$0xff]   ;;  %v2582_v2 = vmov 0  }
   0xc   : > { %383 = vmatprep.mubr.bf16.mxu1 %v2582_v2  ;;  %302 = vmatprep.mubr.bf16.mxu0 %v2582_v2  ;;  %v1888_v3 = vld [vmem:[%s2578_s1 + $0x34] ss:$8 sps:$4 sm:$0xff]   ;;  %v1890_v4 = vld [vmem:[%s2578_s1 + $0x4] ss:$8 sps:$4 sm:$0xff]   ;;  %v1892_v5 = vld [vmem:[%s2578_s1 + $0x30] ss:$8 sps:$4 sm:$0xff]  }
   0xd   : > { %363 = vmatprep.subr.bf16.mxu1 %v1885_v0  ;;  %s2617_s16 = smov (!%p188_p3, %s1745_s16), 1  ;;  %v1893_v6 = vld [vmem:[%s2578_s1] ss:$8 sps:$4 sm:$0xff]   ;;  %282 = vmatprep.subr.bf16.mxu0 %v1888_v3  ;;  %v1894_v7 = vld [vmem:[%s2578_s1 + $0x24] ss:$8 sps:$4 sm:$0xff]   ;;  %vm263_vm0 = vcmask 261120  }
   0xe   : > { %364 = vmatpush1.bf16.msra.mxu1 %v1887_v1  ;;  %s1872_s5 = sshll.u32 %s2617_s16, 4  ;;  %283 = vmatpush1.bf16.msra.mxu0 %v1892_v5  ;;  %v1899_v8 = vld [vmem:[%s2578_s1 + $0x20] ss:$8 sps:$4 sm:$0xff]   ;;  %v1902_v12 = vld [vmem:[%s2579_s2 + $0x34] ss:$8 sps:$4 sm:$0xff]   ;;  %vm564_vm2 = vcmask 1046528  }
   0xf   : > { %365 = vmatprep.subr.bf16.mxu1 %v1890_v4  ;;  %s2024_s8 = scalar_lea.vmem %s2577_s0, %s1872_s5  ;;  %284 = vmatprep.subr.bf16.mxu0 %v1894_v7  ;;  %v1903_v13 = vld [vmem:[%s2579_s2 + $0x10] ss:$8 sps:$4 sm:$0xff]   ;;  %v1905_v14 = vld [vmem:[%s2579_s2 + $0x14] ss:$8 sps:$4 sm:$0xff]   ;;  %vm227_vm1 = vsmask.f32 7424 }
  0x10   : > { %v199_v9 = vld [vmem:[%s2024_s8] sm:$0xf]  ;;  %v2031_v10 = vld [vmem:[%s2024_s8 + $0x4] sm:$0xf]  ;;  %v2044_v15 = vld [vmem:[%s2024_s8 + $0x8] sm:$0xf] }
  0x11   : > { %v1757_v11 = vcombine.low %v199_v9, %v2031_v10  ;;  %v211_v16 = vld [vmem:[%s2024_s8 + $0xc] sm:$0x7]  ;;  %v1912_v23 = vld [vmem:[%s2579_s2] ss:$8 sps:$4 sm:$0xff]   ;;  %v1900_v25 = vld [vmem:[%s2579_s2 + $0x30] ss:$8 sps:$4 sm:$0xff]  }
  0x12   : > { %366 = vmatpush1.bf16.msra.mxu1 %v1893_v6  ;;  %285 = vmatpush1.bf16.msra.mxu0 %v1899_v8  ;;  %v1758_v17 = vcombine.low %v2044_v15, %v211_v16  ;;  %v202_v20 = vld [vmem:[%s2024_s8 + $0xc] sm:$0x3]  ;;  %v1920_v31 = vld [vmem:[%s2579_s2 + $0x54] ss:$8 sps:$4 sm:$0xff]   ;;  %v1909_v33 = vld [vmem:[%s2579_s2 + $0x20] ss:$8 sps:$4 sm:$0xff]  }
  0x13   : > { %441 = vmatprep.subr.bf16.mxu0 %v1902_v12  ;;  %v229_v18 = vshrl.u32 %v1757_v11, 16  ;;  %v231_v19 = vshll.u32 %v1757_v11, 16  ;;  %514 = vmatprep.subr.bf16.mxu1 %v1905_v14  ;;  %v1914_v24 = vld [vmem:[%s2579_s2 + $0x4] ss:$8 sps:$4 sm:$0xff]   ;;  %v1765_v28 = vcombine.low %v2044_v15, %v202_v20  ;;  %v1917_v34 = vld [vmem:[%s2578_s1 + $0x54] ss:$8 sps:$4 sm:$0xff]  }
  0x14   : > { %v236_v22 = vshll.u32 %v1758_v17, 16  ;;  %v1911_v29 = vld [vmem:[%s2579_s2 + $0x24] ss:$8 sps:$4 sm:$0xff]   ;;  %v240_v32 = vshrl.u32 %v1758_v17, 16  ;;  %v1918_v36 = vld [vmem:[%s2579_s2 + $0x50] ss:$8 sps:$4 sm:$0xff]  }
  0x15   : > { %1770 = vmatmul.mubr.msk.bf16.vlgmr.msra.gmra.mxu1 %vm263_vm0, %v1757_v11  ;;  %v233_v21 = vrot.slane %v231_v19, 1  ;;  %v1926_v37 = vld [vmem:[%s2579_s2 + $0x44] ss:$8 sps:$4 sm:$0xff]   ;;  %v555_v38 = vld [vmem:[%s2024_s8] sm:$0xe]  ;;  %v566_v46 = vrot.slane %v1758_v17, 1 }
  0x16   : > { %393 = vmatprep.mubr.bf16.mxu1 %v2582_v2  ;;  %515 = vmatpush1.bf16.msra.mxu1 %v1903_v13  ;;  %v238_v27 = vrot.slane %v236_v22, 1  ;;  %v1924_v39 = vld [vmem:[%s2579_s2 + $0x40] ss:$8 sps:$4 sm:$0xff]   ;;  %v1932_v40 = vld [vmem:[%s2579_s2 + $0x74] ss:$8 sps:$4 sm:$0xff]   ;;  %v1792_v42 = vcombine.low %v555_v38, %v2031_v10  ;;  %vm950_vm4 = vcmask 1045504  }
  0x17   : > { %v234_v26 = vor.u32 %v233_v21, %v229_v18  ;;  %516 = vmatprep.subr.bf16.mxu1 %v1914_v24  ;;  %v1915_v41 = vld [vmem:[%s2578_s1 + $0x50] ss:$8 sps:$4 sm:$0xff]   ;;  %v1923_v43 = vld [vmem:[%s2578_s1 + $0x44] ss:$8 sps:$4 sm:$0xff]   ;;  %v1921_v44 = vld [vmem:[%s2578_s1 + $0x40] ss:$8 sps:$4 sm:$0xff]  }
  0x18   : > { %v242_v35 = vor.u32 %v240_v32, %v238_v27  ;;  %v565_v45 = vrot.slane %v1792_v42, 1  ;;  %v1929_v47 = vld [vmem:[%s2578_s1 + $0x74] ss:$8 sps:$4 sm:$0xff]   ;;  %v741_v48 = vld [vmem:[%s2024_s8 + $0xc] sm:$0xf]  ;;  %v752_v54 = vshrl.u32 %v1792_v42, 16 }
  0x19   : > { %v239_v30 = vsel %vm227_vm1, %v234_v26, %v238_v27  ;;  %v1813_v49 = vcombine.low %v2044_v15, %v741_v48  ;;  %v1930_v51 = vld [vmem:[%s2579_s2 + $0x70] ss:$8 sps:$4 sm:$0xff]   ;;  %v1938_v52 = vld [vmem:[%s2579_s2 + $0x64] ss:$8 sps:$4 sm:$0xff]   ;;  %v1936_v53 = vld [vmem:[%s2579_s2 + $0x60] ss:$8 sps:$4 sm:$0xff]  }
  0x1a   : > { %517 = vmatpush1.bf16.msra.mxu1 %v1912_v23  ;;  %1763 = vmatmul.mubr.msk.bf16.vlgmr.msra.gmra.mxu0 %vm263_vm0, %v239_v30  ;;  %v567_v50 = vsel %vm564_vm2, %v565_v45, %v566_v46  ;;  %v755_v55 = vshll.u32 %v1792_v42, 16  ;;  %v1944_v58 = vld [vmem:[%s2579_s2 + $0x94] ss:$8 sps:$4 sm:$0xff]   ;;  %v1927_v59 = vld [vmem:[%s2578_s1 + $0x70] ss:$8 sps:$4 sm:$0xff]   ;;  %v754_v61 = vrot.slane %v752_v54, 1  ;;  %v1148_v54 = vlaneseq }
  0x1b   : > { %442 = vmatpush1.bf16.msra.mxu0 %v1900_v25  ;;  %312 = vmatprep.mubr.bf16.mxu0 %v2582_v2  ;;  %v760_v56 = vshrl.u32 %v1813_v49, 16  ;;  %v763_v57 = vshll.u32 %v1813_v49, 16  ;;  %v1935_v60 = vld [vmem:[%s2578_s1 + $0x64] ss:$8 sps:$4 sm:$0xff]   ;;  %v1933_v1 = vld [vmem:[%s2578_s1 + $0x60] ss:$8 sps:$4 sm:$0xff]  }
  0x1c   : > { %443 = vmatprep.subr.bf16.mxu0 %v1911_v29  ;;  %692 = vmatprep.subr.bf16.mxu1 %v1920_v31  ;;  %v757_v62 = vrot.slane %v755_v55, 2  ;;  %v1941_v5 = vld [vmem:[%s2578_s1 + $0x94] ss:$8 sps:$4 sm:$0xff]   ;;  %vm750_vm3 = vsmask.f32 6400  ;;  %v952_v17 = vrot.slane %v1813_v49, 2 }
  0x1d   : > { %1771 = vmatmul.mubr.msk.bf16.gmra.mxu1 %vm263_vm0, %v1765_v28  ;;  %v762_v63 = vrot.slane %v760_v56, 1  ;;  %v765_v0 = vrot.slane %v763_v57, 2  ;;  %v1942_v7 = vld [vmem:[%s2579_s2 + $0x90] ss:$8 sps:$4 sm:$0xff]   ;;  %v1950_v8 = vld [vmem:[%s2579_s2 + $0x84] ss:$8 sps:$4 sm:$0xff]  }
  0x1e   : > { %534 = vmatprep.mubr.bf16.mxu1 %v2582_v2  ;;  %v758_v3 = vor.u32 %v757_v62, %v754_v61  ;;  %v1948_v9 = vld [vmem:[%s2579_s2 + $0x80] ss:$8 sps:$4 sm:$0xff]   ;;  %v1939_v12 = vld [vmem:[%s2578_s1 + $0x90] ss:$8 sps:$4 sm:$0xff]   ;;  %v1947_v14 = vld [vmem:[%s2578_s1 + $0x84] ss:$8 sps:$4 sm:$0xff]  }
  0x1f   : > { %444 = vmatpush1.bf16.msra.mxu0 %v1909_v33  ;;  %v766_v4 = vor.u32 %v765_v0, %v762_v63  ;;  %v1945_v15 = vld [vmem:[%s2578_s1 + $0x80] ss:$8 sps:$4 sm:$0xff]   ;;  %vm1610_vm5 = vcmask 1041409   ;;  %vm1584_vm6 = vcmask 1043459   ;;  %vm1613_vm7 = vcmask 1042434   ;;  %s1873_s7 = smul.u32 36, %s2617_s16 }
  0x20   : > { %606 = vmatprep.subr.bf16.mxu0 %v1917_v34  ;;  %vm1587_vm8 = vcmask 1044484   ;;  %vm1590_vm9 = vcmask 1045509   ;;  %vm1593_vm10 = vcmask 1046534   ;;  %vm1596_vm11 = vcmask 1047559  }
  0x21   : > { %v767_v6 = vsel %vm750_vm3, %v758_v3, %v766_v4  ;;  %vm1641_vm12 = vcmask 1040384   ;;  %vm1683_vm13 = vcmask 257024   ;;  %vm1688_vm14 = vcmask 253952   ;;  %s197_s10 = scalar_lea.vmem %s2581_s4, %s1873_s7 }
  0x22   : > { %1764 = vmatmul.mubr.msk.bf16.gmra.mxu0 %vm263_vm0, %v242_v35 }
  0x23   : > { %461 = vmatprep.mubr.bf16.mxu0 %v2582_v2 }
  0x25   : > { %1786 = vmatmul.mubr.msk.bf16.vlgmr.msra.gmra.mxu1 %vm263_vm0, %v1757_v11  ;;  %v941_v11 = vld [vmem:[%s2024_s8] sm:$0xc]  ;;  %s1960_s8 = smov 32  }
  0x26   : > { %693 = vmatpush1.bf16.msra.mxu1 %v1918_v36  ;;  %544 = vmatprep.mubr.bf16.mxu1 %v2582_v2  ;;  %v1834_v13 = vcombine.low %v941_v11, %v2031_v10 }
  0x27   : > { %694 = vmatprep.subr.bf16.mxu1 %v1926_v37  ;;  %1654 = vrot.lane.b32.xlu1 %v2582_v2, %s1960_s8 }
  0x28   : > { %v951_v16 = vrot.slane %v1834_v13, 2 }
  0x2a   : > { %695 = vmatpush1.bf16.msra.mxu1 %v1924_v39  ;;  %1780 = vmatmul.mubr.msk.bf16.vlgmr.msra.gmra.mxu0 %vm263_vm0, %v239_v30  ;;  %v953_v10 = vsel %vm950_vm4, %v951_v16, %v952_v17 }
  0x2b   : > { %892 = vmatprep.subr.bf16.mxu1 %v1932_v40  ;;  %607 = vmatpush1.bf16.msra.mxu0 %v1915_v41 }
  0x2c   : > { %471 = vmatprep.mubr.bf16.mxu0 %v2582_v2  ;;  %608 = vmatprep.subr.bf16.mxu0 %v1923_v43 }
  0x2d   : > { %1787 = vmatmul.mubr.msk.bf16.gmra.mxu1 %vm263_vm0, %v1765_v28 }
  0x2e   : > { %712 = vmatprep.mubr.bf16.mxu1 %v2582_v2 }
  0x2f   : > { %609 = vmatpush1.bf16.msra.mxu0 %v1921_v44 }
  0x30   : > { %806 = vmatprep.subr.bf16.mxu0 %v1929_v47 }
  0x32   : > { %1781 = vmatmul.mubr.msk.bf16.gmra.mxu0 %vm263_vm0, %v242_v35 }
  0x33   : > { %626 = vmatprep.mubr.bf16.mxu0 %v2582_v2 }
  0x35   : > { %1807 = vmatmul.mubr.msk.bf16.vlgmr.msra.gmra.mxu1 %vm263_vm0, %v567_v50 }
  0x36   : > { %893 = vmatpush1.bf16.msra.mxu1 %v1930_v51  ;;  %722 = vmatprep.mubr.bf16.mxu1 %v2582_v2 }
  0x37   : > { %894 = vmatprep.subr.bf16.mxu1 %v1938_v52 }
  0x3a   : > { %895 = vmatpush1.bf16.msra.mxu1 %v1936_v53  ;;  %1797 = vmatmul.mubr.msk.bf16.vlgmr.msra.gmra.mxu0 %vm263_vm0, %v567_v50 }
  0x3b   : > { %1078 = vmatprep.subr.bf16.mxu1 %v1944_v58  ;;  %807 = vmatpush1.bf16.msra.mxu0 %v1927_v59  ;;  %v1149_v59 = vshrl.u32 %v1148_v54, 7 }
  0x3c   : > { %636 = vmatprep.mubr.bf16.mxu0 %v2582_v2  ;;  %808 = vmatprep.subr.bf16.mxu0 %v1935_v60 }
  0x3d   : > { %1808 = vmatmul.mubr.msk.bf16.gmra.mxu1 %vm263_vm0, %v566_v46  ;;  %v2263_v0 = vsub.s32 0, %v1149_v59 }
  0x3e   : > { %912 = vmatprep.mubr.bf16.mxu1 %v2582_v2 }
  0x3f   : > { %809 = vmatpush1.bf16.msra.mxu0 %v1933_v1  ;;  %2588 = vst [vmem:[#allocation2_spill] sm:$0xff] %v2263_v0  ;;  %v1284_v1 = vsub.s32 1, %v1149_v59 }
  0x40   : > { %992 = vmatprep.subr.bf16.mxu0 %v1941_v5 }
  0x42   : > { %1798 = vmatmul.mubr.msk.bf16.gmra.mxu0 %vm263_vm0, %v566_v46 }
  0x43   : > { %826 = vmatprep.mubr.bf16.mxu0 %v2582_v2 }
  0x45   : > { %1828 = vmatmul.mubr.msk.bf16.vlgmr.msra.gmra.mxu1 %vm263_vm0, %v767_v6 }
  0x46   : > { %1079 = vmatpush1.bf16.msra.mxu1 %v1942_v7  ;;  %922 = vmatprep.mubr.bf16.mxu1 %v2582_v2 }
  0x47   : > { %1080 = vmatprep.subr.bf16.mxu1 %v1950_v8 }
  0x4a   : > { %1081 = vmatpush1.bf16.msra.mxu1 %v1948_v9  ;;  %1818 = vmatmul.mubr.msk.bf16.vlgmr.msra.gmra.mxu0 %vm263_vm0, %v767_v6  ;;  %v1961_v6 = vmov 1983009808  }
  0x4b   : > { %993 = vmatpush1.bf16.msra.mxu0 %v1939_v12  ;;  %836 = vmatprep.mubr.bf16.mxu0 %v2582_v2  ;;  %v1146_v7 = vunpack.c.l.s4 %v1961_v6 }
  0x4c   : > { %994 = vmatprep.subr.bf16.mxu0 %v1947_v14 }
  0x4d   : > { %1829 = vmatmul.mubr.msk.bf16.gmra.mxu1 %vm263_vm0, %v766_v4 }
  0x4e   : > { %1098 = vmatprep.mubr.bf16.mxu1 %v2582_v2 }
  0x4f   : > { %995 = vmatpush1.bf16.msra.mxu0 %v1945_v15  ;;  %v1147_v15 = vunpack.c.0.s8 %v1146_v7 }
  0x52   : > { %1819 = vmatmul.mubr.msk.bf16.gmra.mxu0 %vm263_vm0, %v766_v4  ;;  %v1276_v4 = vld [vmem:[%s2580_s3] sm:$0x3] }
  0x53   : > { %1012 = vmatprep.mubr.bf16.mxu0 %v2582_v2  ;;  %v1281_v11 = vrot.slane %v1276_v4, %v2263_v0  ;;  %v1285_v12 = vrot.slane %v1276_v4, %v1284_v1 }
  0x55   : > { %1849 = vmatmul.mubr.msk.bf16.vlgmr.msra.gmra.mxu1 %vm263_vm0, %v953_v10 }
  0x56   : > { %1108 = vmatprep.mubr.bf16.mxu1 %v2582_v2 }
  0x5a   : > { %1839 = vmatmul.mubr.msk.bf16.vlgmr.msra.gmra.mxu0 %vm263_vm0, %v953_v10  ;;  %v1286_v10 = vcombine.low %v1281_v11, %v1285_v12 }
  0x5b   : > { %1022 = vmatprep.mubr.bf16.mxu0 %v2582_v2 }
  0x5d   : > { %1850 = vmatmul.mubr.msk.bf16.gmra.mxu1 %vm263_vm0, %v952_v17 }
  0x62   : > { %1840 = vmatmul.mubr.msk.bf16.gmra.mxu0 %vm263_vm0, %v952_v17 }
  0xd5   : > { %v385_v18 = vpop.f32.mrf.mxu1 }
  0xd7   : > { %v387_v19 = vpop.f32.mrf.mxu1 }
  0xd9   : > { %v2183_v20 = vpop.f32.mrf.mxu1 }
  0xda   : > { %v304_v22 = vpop.f32.mrf.mxu0 }
  0xdb   : > { %v2185_v21 = vpop.f32.mrf.mxu1  ;;  %v2187_v23 = vadd.f32 %v385_v18, %v304_v22  ;;  %v1287_v18 = vcombine.high %v1281_v11, %v1285_v12 }
  0xdc   : > { %v306_v25 = vpop.f32.mrf.mxu0 }
  0xdd   : > { %v2189_v24 = vpop.f32.mrf.mxu1  ;;  %v2191_v26 = vadd.f32 %v387_v19, %v306_v25  ;;  %v2289_v25 = vsub.s32 %v1147_v15, %v1149_v59 }
  0xde   : > { %v2195_v28 = vpop.f32.mrf.mxu0 }
  0xdf   : > { %v2193_v27 = vpop.f32.mrf.mxu1  ;;  %2592 = vst [vmem:[#allocation6_spill] sm:$0xff] %v2289_v25  ;;  %v2294_v1 = vrot.slane %v1286_v10, %v2289_v25  ;;  %v2297_v4 = vrot.slane %v1287_v18, %v2289_v25 }
  0xe0   : > { %v2199_v30 = vpop.f32.mrf.mxu0 }
  0xe1   : > { %v2197_v29 = vpop.f32.mrf.mxu1  ;;  %v2307_v12 = vcombine.high %v2294_v1, %v2294_v1  ;;  %v2311_v15 = vcombine.high %v2297_v4, %v2297_v4 }
  0xe2   : > { %v2203_v32 = vpop.f32.mrf.mxu0 }
  0xe3   : > { %v2201_v31 = vpop.f32.mrf.mxu1 }
  0xe4   : > { %v2207_v34 = vpop.f32.mrf.mxu0 }
  0xe5   : > { %v2205_v33 = vpop.f32.mrf.mxu1 }
  0xe6   : > { %v2211_v36 = vpop.f32.mrf.mxu0 }
  0xe7   : > { %v2209_v35 = vpop.f32.mrf.mxu1 }
  0xe8   : > { %v2215_v38 = vpop.f32.mrf.mxu0 }
  0xe9   : > { %v2213_v37 = vpop.f32.mrf.mxu1 }
  0xea   : > { %v2219_v40 = vpop.f32.mrf.mxu0 }
  0xeb   : > { %v2217_v39 = vpop.f32.mrf.mxu1 }
  0xec   : > { %v2223_v42 = vpop.f32.mrf.mxu0 }
  0xed   : > { %v2221_v41 = vpop.f32.mrf.mxu1 }
  0xee   : > { %v2227_v44 = vpop.f32.mrf.mxu0 }
  0xef   : > { %v2225_v43 = vpop.f32.mrf.mxu1 }
  0xf0   : > { %v2231_v46 = vpop.f32.mrf.mxu0 }
  0xf1   : > { %v2229_v45 = vpop.f32.mrf.mxu1 }
  0xf2   : > { %v2235_v48 = vpop.f32.mrf.mxu0 }
  0xf3   : > { %v2233_v47 = vpop.f32.mrf.mxu1 }
  0xf4   : > { %v2239_v50 = vpop.f32.mrf.mxu0 }
  0xf5   : > { %v2237_v49 = vpop.f32.mrf.mxu1 }
  0xf6   : > { %v2243_v52 = vpop.f32.mrf.mxu0 }
  0xf7   : > { %v2241_v51 = vpop.f32.mrf.mxu1 }
  0xf8   : > { %v2247_v55 = vpop.f32.mrf.mxu0 }
  0xf9   : > { %v2245_v53 = vpop.f32.mrf.mxu1 }
  0xfa   : > { %v2251_v57 = vpop.f32.mrf.mxu0 }
  0xfb   : > { %v2249_v56 = vpop.f32.mrf.mxu1 }
  0xfc   : > { %v2255_v60 = vpop.f32.mrf.mxu0 }
  0xfd   : > { %v2253_v58 = vpop.f32.mrf.mxu1 }
  0xfe   : > { %v2259_v62 = vpop.f32.mrf.mxu0 }
  0xff   : > { %v2257_v61 = vpop.f32.mrf.mxu1 }
 0x100   : > { %v2265_v3 = vpop.f32.mrf.mxu0 }
 0x101   : > { %v2261_v63 = vpop.f32.mrf.mxu1 }
 0x102   : > { %v2272_v8 = vpop.f32.mrf.mxu0 }
 0x103   : > { %v2270_v5 = vpop.f32.mrf.mxu1 }
 0x104   : > { %v2277_v13 = vpop.f32.mrf.mxu0 }
 0x105   : > { %v2274_v9 = vpop.f32.mrf.mxu1 }
 0x106   : > { %v2281_v16 = vpop.f32.mrf.mxu0 }
 0x107   : > { %v2279_v14 = vpop.f32.mrf.mxu1 }
 0x108   : > { %v2285_v19 = vpop.f32.mrf.mxu0 }
 0x109   : > { %v2283_v17 = vpop.f32.mrf.mxu1  ;;  %2590 = vst [vmem:[#allocation4_spill] sm:$0xff] %v2285_v19  ;;  %v390_v19 = vadd.f32 %v2183_v20, %v2195_v28  ;;  %v539_v20 = vadd.f32 %v2209_v35, %v2223_v42 }
 0x10a   : > { %2589 = vst [vmem:[#allocation3_spill] sm:$0xff] %v2283_v17  ;;  %v828_v54 = vpop.f32.mrf.mxu0  ;;  %v392_v17 = vadd.f32 %v2185_v21, %v2199_v30  ;;  %v402_v21 = vadd.f32 %v2201_v31, %v2215_v38  ;;  %v543_v30 = vadd.f32 %v2217_v39, %v2231_v46  ;;  %v647_v31 = vadd.f32 %v2251_v57, %v2187_v23 }
 0x10b   : > { %v2287_v22 = vpop.f32.mrf.mxu1  ;;  %v649_v46 = vadd.f32 %v2259_v62, %v390_v19 }
 0x10c   : > { %2591 = vst [vmem:[#allocation5_spill] sm:$0xff] %v2287_v22  ;;  %v830_v7 = vpop.f32.mrf.mxu0  ;;  %v537_v22 = vadd.f32 %v2205_v33, %v2219_v40  ;;  %v736_v39 = vadd.f32 %v2249_v56, %v543_v30  ;;  %v847_v23 = vadd.f32 %v828_v54, %v647_v31 }
 0x10d   : > { %v2291_v6 = vpop.f32.mrf.mxu1 }
 0x10e   : > { %2593 = vst [vmem:[#allocation7_spill] sm:$0xff] %v2291_v6  ;;  %v2301_v0 = vpop.f32.mrf.mxu0  ;;  %v733_v33 = vadd.f32 %v2237_v49, %v537_v22 }
 0x10f   : > { %v2299_v2 = vpop.f32.mrf.mxu1  ;;  %2595 = vst [vmem:[#allocation9_spill] sm:$0xff] %v2301_v0  ;;  %v1305_v0 = vrot.slane %v2307_v12, 1 }
 0x110   : > { %2594 = vst [vmem:[#allocation8_spill] sm:$0xff] %v2299_v2  ;;  %v2313_v10 = vpop.f32.mrf.mxu0  ;;  %v398_v2 = vadd.f32 %v2193_v27, %v2207_v34  ;;  %v547_v27 = vadd.f32 %v2221_v41, %v2235_v48  ;;  %v734_v34 = vadd.f32 %v2241_v51, %v539_v20  ;;  %v648_v41 = vadd.f32 %v2255_v60, %v2191_v26  ;;  %v2601_v62 = vld [vmem:[#allocation4_spill] sm:$0xff] }
 0x111   : > { %v2303_v11 = vpop.f32.mrf.mxu1  ;;  %2597 = vst [vmem:[#allocation11_spill] sm:$0xff] %v2313_v10 }
 0x112   : > { %2596 = vst [vmem:[#allocation10_spill] sm:$0xff] %v2303_v11  ;;  %v2317_v18 = vpop.f32.mrf.mxu0  ;;  %v2321_v11 = vsub.s32 2, %v1149_v59  ;;  %v400_v59 = vadd.f32 %v2197_v29, %v2211_v36  ;;  %v551_v36 = vadd.f32 %v2229_v45, %v2243_v52  ;;  %v737_v42 = vadd.f32 %v2253_v58, %v547_v27  ;;  %v2600_v58 = vld [vmem:[#allocation3_spill] sm:$0xff] }
 0x113   : > { %v2315_v6 = vpop.f32.mrf.mxu1  ;;  %2599 = vst [vmem:[#allocation13_spill] sm:$0xff] %v2317_v18  ;;  %v1306_v18 = vrot.slane %v2297_v4, 1  ;;  %v650_v45 = vadd.f32 %v2265_v3, %v392_v17  ;;  %v934_v51 = vadd.f32 %v2279_v14, %v734_v34  ;;  %v848_v26 = vadd.f32 %v830_v7, %v648_v41  ;;  %v2602_v19 = vld [vmem:[#allocation5_spill] sm:$0xff] }
 0x114   : > { %2598 = vst [vmem:[#allocation12_spill] sm:$0xff] %v2315_v6  ;;  %v396_v6 = vadd.f32 %v2189_v24, %v2203_v32  ;;  %v840_v10 = vpop.f32.mrf.mxu0  ;;  %v541_v24 = vadd.f32 %v2213_v37, %v2227_v44  ;;  %v549_v32 = vadd.f32 %v2225_v43, %v2239_v50  ;;  %v553_v37 = vadd.f32 %v2233_v47, %v2247_v55 }
 0x115   : > { %v1100_v25 = vpop.f32.mrf.mxu1  ;;  %v739_v47 = vadd.f32 %v2261_v63, %v551_v36  ;;  %v933_v50 = vadd.f32 %v2274_v9, %v733_v33  ;;  %v652_v56 = vadd.f32 %v2277_v13, %v398_v2  ;;  %v653_v57 = vadd.f32 %v2281_v16, %v400_v59  ;;  %v2603_v22 = vld [vmem:[#allocation7_spill] sm:$0xff] }
 0x116   : > { %v842_v29 = vpop.f32.mrf.mxu0  ;;  %v735_v38 = vadd.f32 %v2245_v53, %v541_v24  ;;  %v738_v43 = vadd.f32 %v2257_v61, %v549_v32  ;;  %v740_v48 = vadd.f32 %v2270_v5, %v553_v37  ;;  %v651_v55 = vadd.f32 %v2272_v8, %v396_v6  ;;  %v2604_v7 = vld [vmem:[#allocation9_spill] sm:$0xff] }
 0x117   : > { %v1102_v28 = vpop.f32.mrf.mxu1  ;;  %v654_v63 = vadd.f32 %v2601_v62, %v402_v21  ;;  %v1119_v3 = vadd.f32 %v1100_v25, %v933_v50  ;;  %v936_v14 = vadd.f32 %v2602_v19, %v736_v39  ;;  %v937_v54 = vadd.f32 %v2603_v22, %v737_v42  ;;  %v2605_v8 = vld [vmem:[#allocation8_spill] sm:$0xff] }
 0x118   : > { %v844_v40 = vpop.f32.mrf.mxu0  ;;  %v935_v60 = vadd.f32 %v2600_v58, %v735_v38  ;;  %v1120_v5 = vadd.f32 %v1102_v28, %v934_v51  ;;  %v849_v20 = vadd.f32 %v2604_v7, %v649_v46  ;;  %v938_v6 = vadd.f32 %v2605_v8, %v738_v43  ;;  %v2606_v13 = vld [vmem:[#allocation11_spill] sm:$0xff] }
 0x119   : > { %v1104_v35 = vpop.f32.mrf.mxu1  ;;  %v850_v16 = vadd.f32 %v2606_v13, %v650_v45  ;;  %v2607_v59 = vld [vmem:[#allocation10_spill] sm:$0xff]  ;;  %v852_v34 = vadd.f32 %v840_v10, %v652_v56  ;;  %v853_v43 = vadd.f32 %v842_v29, %v653_v57 }
 0x11a   : > { %v1014_v49 = vpop.f32.mrf.mxu0  ;;  %v939_v24 = vadd.f32 %v2607_v59, %v739_v47  ;;  %v2608_v25 = vld [vmem:[#allocation13_spill] sm:$0xff]  ;;  %v1121_v46 = vadd.f32 %v1104_v35, %v935_v60  ;;  %v2611_v59 = vrot.slane %v2294_v1, 1 }
 0x11b   : > { %v1106_v44 = vpop.f32.mrf.mxu1  ;;  %v1033_v52 = vadd.f32 %v1014_v49, %v847_v23  ;;  %v851_v28 = vadd.f32 %v2608_v25, %v651_v55  ;;  %v2609_v32 = vld [vmem:[#allocation12_spill] sm:$0xff]  ;;  %v2382_v23 = vadd.f32 %v844_v40, %v654_v63  ;;  %v2610_v49 = vld [vmem:[#allocation6_spill] sm:$0xff] }
 0x11c   : > { %v1016_v61 = vpop.f32.mrf.mxu0  ;;  %v940_v33 = vadd.f32 %v2609_v32, %v740_v48  ;;  %v1122_v37 = vadd.f32 %v1106_v44, %v936_v14 }
 0x11d   : > { %v1110_v53 = vpop.f32.mrf.mxu1  ;;  %v1034_v17 = vadd.f32 %v1016_v61, %v848_v26  ;;  %v1127_v30 = vmax.f32 %v1033_v52, %v1119_v3 }
 0x11e   : > { %v1018_v2 = vpop.f32.mrf.mxu0  ;;  %v1123_v45 = vadd.f32 %v1110_v53, %v937_v54 }
 0x11f   : > { %v1112_v9 = vpop.f32.mrf.mxu1  ;;  %v1128_v27 = vmax.f32 %v1034_v17, %v1120_v5  ;;  %v1035_v31 = vadd.f32 %v1018_v2, %v849_v20 }
 0x120   : > { %v1020_v36 = vpop.f32.mrf.mxu0  ;;  %v1124_v52 = vadd.f32 %v1112_v9, %v938_v6 }
 0x121   : > { %v1114_v21 = vpop.f32.mrf.mxu1  ;;  %v1143_v38 = vcombine.low %v1127_v30, %v1128_v27  ;;  %v1144_v39 = vcombine.high %v1127_v30, %v1128_v27  ;;  %v1036_v41 = vadd.f32 %v1020_v36, %v850_v16  ;;  %v1129_v10 = vmax.f32 %v1035_v31, %v1121_v46  ;;  %v2612_v36 = vld [vmem:[#allocation2_spill] sm:$0xff] }
 0x122   : > { %v1024_v47 = vpop.f32.mrf.mxu0  ;;  %v2386_v55 = vadd.f32 %v1114_v21, %v939_v24 }
 0x123   : > { %v1116_v42 = vpop.f32.mrf.mxu1  ;;  %v1151_v50 = vrot.slane %v1143_v38, %v2610_v49  ;;  %v1158_v51 = vrot.slane %v1144_v39, %v2610_v49  ;;  %v1130_v26 = vmax.f32 %v1036_v41, %v1122_v37  ;;  %v1037_v48 = vadd.f32 %v1024_v47, %v851_v28 }
 0x124   : > { %v2388_v44 = vadd.f32 %v1116_v42, %v940_v33  ;;  %v1026_v56 = vpop.f32.mrf.mxu0 }
 0x125   : > { %v1159_v58 = vcombine.high %v1151_v50, %v1151_v50  ;;  %v1160_v29 = vcombine.high %v1158_v51, %v1158_v51  ;;  %v1851_v40 = vrot.slane %v1151_v50, 9  ;;  %v1853_v57 = vrot.slane %v1158_v51, 9 }
 0x126   : > { %v1161_v35 = vcombine.low %v1129_v10, %v1130_v26  ;;  %v1162_v53 = vcombine.high %v1129_v10, %v1130_v26  ;;  %v1131_v60 = vmax.f32 %v1037_v48, %v1123_v45  ;;  %v1038_v61 = vadd.f32 %v1026_v56, %v852_v34  ;;  %v1028_v62 = vpop.f32.mrf.mxu0 }
 0x127   : > { %v1852_v63 = vrot.slane %v1159_v58, 9  ;;  %v1854_v3 = vrot.slane %v1160_v29, 9  ;;  %v1262_v5 = vmax.f32 %v1151_v50, %v1851_v40  ;;  %v1264_v17 = vmax.f32 %v1158_v51, %v1853_v57 }
 0x128   : > { %v1169_v9 = vrot.slane %v1161_v35, %v2610_v49  ;;  %v1176_v19 = vrot.slane %v1162_v53, %v2610_v49  ;;  %v1132_v14 = vmax.f32 %v1038_v61, %v1124_v52  ;;  %v2392_v22 = vadd.f32 %v1028_v62, %v853_v43  ;;  %v1030_v62 = vpop.f32.mrf.mxu0 }
 0x129   : > { %v1263_v54 = vmax.f32 %v1159_v58, %v1852_v63  ;;  %v1265_v7 = vmax.f32 %v1160_v29, %v1854_v3  ;;  %v1316_v20 = vadd.f32 %v2294_v1, %v1262_v5  ;;  %v1318_v8 = vadd.f32 %v2307_v12, %v1264_v17 }
 0x12a   : > { %v1177_v6 = vcombine.high %v1169_v9, %v1169_v9  ;;  %v1178_v2 = vcombine.high %v1176_v19, %v1176_v19  ;;  %v1855_v13 = vrot.slane %v1169_v9, 9  ;;  %v1857_v16 = vrot.slane %v1176_v19, 9 }
 0x12b   : > { %v1317_v24 = vadd.f32 %v2611_v59, %v1263_v54  ;;  %v2400_v30 = vadd.f32 %v1305_v0, %v1265_v7  ;;  %v1330_v27 = vmax.f32 %v1316_v20, 0.0  ;;  %v1332_v21 = vmax.f32 %v1318_v8, 0.0 }
 0x12c   : > { %v1856_v25 = vrot.slane %v1177_v6, 9  ;;  %v1858_v28 = vrot.slane %v1178_v2, 9  ;;  %v1266_v32 = vmax.f32 %v1169_v9, %v1855_v13  ;;  %v1268_v33 = vmax.f32 %v1176_v19, %v1857_v16 }
 0x12d   : > { %v1331_v34 = vmax.f32 %v1317_v24, 0.0  ;;  %v1333_v31 = vmax.f32 %v2400_v30, 0.0  ;;  %v1361_v37 = vrot.slane %v1330_v27, %v2612_v36  ;;  %v1365_v38 = vrot.slane %v1330_v27, %v2321_v11 }
 0x12e   : > { %v2406_v39 = vrot.slane %v1332_v21, %v2612_v36  ;;  %v2409_v41 = vrot.slane %v1332_v21, %v2321_v11  ;;  %v1267_v42 = vmax.f32 %v1177_v6, %v1856_v25  ;;  %v1269_v43 = vmax.f32 %v1178_v2, %v1858_v28 }
 0x12f   : > { %v2412_v46 = vrot.slane %v1331_v34, %v2612_v36  ;;  %v1373_v45 = vrot.slane %v1331_v34, %v2321_v11  ;;  %v1498_v47 = vpack.c.bf16 %v1361_v37, %v1361_v37  ;;  %v1499_v50 = vpack.c.bf16 %v1365_v38, %v1365_v38 }
 0x130   : > { %v1503_v51 = vpack.c.bf16 %v2409_v41, %v2409_v41  ;;  %v2418_v26 = vadd.f32 %v2297_v4, %v1266_v32  ;;  %v1322_v48 = vadd.f32 %v2311_v15, %v1268_v33  ;;  %v2613_v10 = vrot.slane %v2311_v15, 1 }
 0x131   : > { %v1501_v56 = vpack.c.bf16 %v1373_v45, %v1373_v45  ;;  %v2423_v58 = vunpack.c.l.b16 %v1498_v47  ;;  %v2425_v29 = vunpack.c.l.b16 %v1499_v50  ;;  %v1179_v40 = vcombine.low %v1131_v60, %v1132_v14 }
 0x132   : > { %v1323_v52 = vadd.f32 %v2613_v10, %v1269_v43  ;;  %v1334_v57 = vmax.f32 %v2418_v26, 0.0  ;;  %v1336_v35 = vmax.f32 %v1322_v48, 0.0  ;;  %v1180_v61 = vcombine.high %v1131_v60, %v1132_v14 }
 0x133   : > { %v2428_v63 = vunpack.c.l.b16 %v1501_v56  ;;  %v1598_v3 = vrot.slane %v2425_v29, 6  ;;  %v1187_v5 = vrot.slane %v1179_v40, %v2610_v49  ;;  %v1133_v15 = vmax.f32 %v2392_v22, %v2386_v55 }
 0x134   : > { %v1337_v53 = vmax.f32 %v1323_v52, 0.0  ;;  %v1409_v17 = vrot.slane %v1336_v35, %v2612_v36  ;;  %v1413_v9 = vrot.slane %v1336_v35, %v2321_v11  ;;  %v1194_v60 = vrot.slane %v1180_v61, %v2610_v49 }
 0x135   : > { %v1195_v14 = vcombine.high %v1187_v5, %v1187_v5  ;;  %v1859_v7 = vrot.slane %v1187_v5, 9  ;;  %v1040_v20 = vadd.f32 %v1030_v62, %v2382_v23  ;;  %v2454_v43 = vadd.f32 %v1306_v18, %v1267_v42 }
 0x136   : > { %v1417_v19 = vrot.slane %v1337_v53, %v2612_v36  ;;  %v1421_v54 = vrot.slane %v1337_v53, %v2321_v11  ;;  %v1510_v8 = vpack.c.bf16 %v1409_v17, %v1409_v17  ;;  %v1511_v6 = vpack.c.bf16 %v1413_v9, %v1413_v9 }
 0x137   : > { %v1196_v16 = vcombine.high %v1194_v60, %v1194_v60  ;;  %v1860_v55 = vrot.slane %v1195_v14, 9  ;;  %v1861_v22 = vrot.slane %v1194_v60, 9  ;;  %v1270_v59 = vmax.f32 %v1187_v5, %v1859_v7 }
 0x138   : > { %v1512_v2 = vpack.c.bf16 %v1417_v19, %v1417_v19  ;;  %v1513_v13 = vpack.c.bf16 %v1421_v54, %v1421_v54  ;;  %v2440_v24 = vunpack.c.l.b16 %v1510_v8  ;;  %v2442_v27 = vunpack.c.l.b16 %v1511_v6 }
 0x139   : > { %v1862_v28 = vrot.slane %v1196_v16, 9  ;;  %v1271_v32 = vmax.f32 %v1195_v14, %v1860_v55  ;;  %v1272_v33 = vmax.f32 %v1194_v60, %v1861_v22  ;;  %v1324_v23 = vadd.f32 %v2294_v1, %v1270_v59 }
 0x13a   : > { %v2444_v21 = vunpack.c.l.b16 %v1512_v2  ;;  %v2446_v25 = vunpack.c.l.b16 %v1513_v13  ;;  %v1134_v38 = vmax.f32 %v1040_v20, %v2388_v44  ;;  %v2614_v47 = vrot.slane %v2294_v1, 1 }
 0x13b   : > { %v1273_v45 = vmax.f32 %v1196_v16, %v1862_v28  ;;  %v1326_v48 = vadd.f32 %v2307_v12, %v1272_v33  ;;  %v1338_v10 = vmax.f32 %v1324_v23, 0.0  ;;  %v1335_v56 = vmax.f32 %v2454_v43, 0.0 }
 0x13c   : > { %v1609_v34 = vrot.slane %v2444_v21, 7  ;;  %v1625_v37 = vrot.slane %v2446_v25, 7  ;;  %v1325_v50 = vadd.f32 %v2614_v47, %v1271_v32  ;;  %v1197_v52 = vcombine.low %v1133_v15, %v1134_v38 }
 0x13d   : > { %v1385_v40 = vrot.slane %v1333_v31, %v2612_v36  ;;  %v1393_v44 = vrot.slane %v1334_v57, %v2612_v36  ;;  %v2468_v42 = vadd.f32 %v1305_v0, %v1273_v45  ;;  %v1340_v35 = vmax.f32 %v1326_v48, 0.0 }
 0x13e   : > { %v1339_v1 = vmax.f32 %v1325_v50, 0.0  ;;  %v1425_v53 = vrot.slane %v1338_v10, %v2612_v36  ;;  %v1429_v61 = vrot.slane %v1338_v10, %v2321_v11  ;;  %v1204_v62 = vrot.slane %v1197_v52, %v2610_v49 }
 0x13f   : > { %v1401_v5 = vrot.slane %v1335_v56, %v2612_v36  ;;  %v1500_v15 = vpack.c.bf16 %v2412_v46, %v2412_v46  ;;  %v1341_v17 = vmax.f32 %v2468_v42, 0.0  ;;  %v1441_v9 = vrot.slane %v1340_v35, %v2612_v36 }
 0x140   : > { %v1433_v0 = vrot.slane %v1339_v1, %v2612_v36  ;;  %v1437_v12 = vrot.slane %v1339_v1, %v2321_v11  ;;  %v2483_v19 = vrot.slane %v1340_v35, %v2321_v11  ;;  %v1514_v49 = vpack.c.bf16 %v1425_v53, %v1425_v53 }
 0x141   : > { %v1515_v54 = vpack.c.bf16 %v1429_v61, %v1429_v61  ;;  %v1205_v60 = vcombine.high %v1204_v62, %v1204_v62  ;;  %v1863_v7 = vrot.slane %v1204_v62, 9  ;;  %v1449_v46 = vrot.slane %v1341_v17, %v2612_v36 }
 0x142   : > { %v1517_v14 = vpack.c.bf16 %v1437_v12, %v1437_v12  ;;  %v1502_v20 = vpack.c.bf16 %v2406_v39, %v2406_v39  ;;  %v1519_v8 = vpack.c.bf16 %v2483_v19, %v2483_v19  ;;  %v1570_v6 = vunpack.c.l.b16 %v1514_v49 }
 0x143   : > { %v2492_v2 = vunpack.c.l.b16 %v1515_v54  ;;  %v1864_v13 = vrot.slane %v1205_v60, 9  ;;  %v1274_v55 = vmax.f32 %v1204_v62, %v1863_v7  ;;  %v1504_v22 = vpack.c.bf16 %v1385_v40, %v1385_v40 }
 0x144   : > { %v2494_v16 = vunpack.c.l.b16 %v1517_v14  ;;  %v1506_v59 = vpack.c.bf16 %v1393_v44, %v1393_v44  ;;  %v1612_v28 = vrot.slane %v1570_v6, 6  ;;  %v1508_v39 = vpack.c.bf16 %v1401_v5, %v1401_v5 }
 0x145   : > { %v1627_v32 = vrot.slane %v2492_v2, 6  ;;  %v1275_v33 = vmax.f32 %v1205_v60, %v1864_v13  ;;  %v1328_v23 = vadd.f32 %v2297_v4, %v1274_v55  ;;  %v1516_v38 = vpack.c.bf16 %v1433_v0, %v1433_v0 }
 0x146   : > { %v1518_v45 = vpack.c.bf16 %v1441_v9, %v1441_v9  ;;  %v1520_v47 = vpack.c.bf16 %v1449_v46, %v1449_v46  ;;  %v1556_v48 = vunpack.c.l.b16 %v1500_v15  ;;  %v1558_v10 = vunpack.c.l.b16 %v1502_v20 }
 0x147   : > { %v1329_v50 = vadd.f32 %v1306_v18, %v1275_v33  ;;  %v1560_v52 = vunpack.c.l.b16 %v1504_v22  ;;  %v1342_v40 = vmax.f32 %v1328_v23, 0.0  ;;  %v1562_v44 = vunpack.c.l.b16 %v1506_v59 }
 0x148   : > { %v1564_v1 = vunpack.c.l.b16 %v1508_v39  ;;  %v1572_v35 = vunpack.c.l.b16 %v1516_v38  ;;  %v1574_v61 = vunpack.c.l.b16 %v1518_v45  ;;  %v1576_v62 = vunpack.c.l.b16 %v1520_v47 }
 0x149   : > { %v1343_v53 = vmax.f32 %v1329_v50, 0.0  ;;  %v1582_v5 = vrot.slane %v2423_v58, 6  ;;  %v1457_v12 = vrot.slane %v1342_v40, %v2612_v36  ;;  %v1583_v0 = vrot.slane %v1556_v48, 5 }
 0x14a   : > { %v1586_v9 = vrot.slane %v1558_v10, 4  ;;  %v1589_v49 = vrot.slane %v1560_v52, 3  ;;  %v1592_v18 = vrot.slane %v1562_v44, 2  ;;  %v1595_v15 = vrot.slane %v1564_v1, 1 }
 0x14b   : > { %v1465_v4 = vrot.slane %v1343_v53, %v2612_v36  ;;  %v1611_v54 = vsel %vm1610_vm5, %v1609_v34, %v2440_v24  ;;  %v1522_v60 = vpack.c.bf16 %v1457_v12, %v1457_v12  ;;  %v1585_v14 = vsel %vm1584_vm6, %v1583_v0, %v1582_v5 }
 0x14c   : > { %v1614_v58 = vsel %vm1613_vm7, %v1612_v28, %v1611_v54  ;;  %v1615_v7 = vrot.slane %v1572_v35, 5  ;;  %v1588_v20 = vsel %vm1587_vm8, %v1586_v9, %v1585_v14  ;;  %v1617_v6 = vrot.slane %v1574_v61, 4 }
 0x14d   : > { %v1524_v46 = vpack.c.bf16 %v1465_v4, %v1465_v4  ;;  %v1619_v13 = vrot.slane %v1576_v62, 3  ;;  %v1578_v36 = vunpack.c.l.b16 %v1522_v60  ;;  %v1591_v55 = vsel %vm1590_vm9, %v1589_v49, %v1588_v20  ;;  %v1655_v4 = vpop.permute.xlu1 %1654 }
 0x14e   : > { %v1616_v22 = vsel %vm1584_vm6, %v1615_v7, %v1614_v58  ;;  %v1389_v24 = vrot.slane %v1333_v31, %v2321_v11  ;;  %v1594_v34 = vsel %vm1593_vm10, %v1592_v18, %v1591_v55  ;;  %v1397_v28 = vrot.slane %v1334_v57, %v2321_v11 }
 0x14f   : > { %v1580_v21 = vunpack.c.l.b16 %v1524_v46  ;;  %v1618_v59 = vsel %vm1587_vm8, %v1617_v6, %v1616_v22  ;;  %v1597_v33 = vsel %vm1596_vm11, %v1595_v15, %v1594_v34  ;;  %v1621_v23 = vrot.slane %v1578_v36, 2 }
 0x150   : > { %v1620_v39 = vsel %vm1590_vm9, %v1619_v13, %v1618_v59  ;;  %v1405_v38 = vrot.slane %v1335_v56, %v2321_v11  ;;  %v1453_v31 = vrot.slane %v1341_v17, %v2321_v11  ;;  %v1461_v45 = vrot.slane %v1342_v40, %v2321_v11 }
 0x151   : > { %v1623_v30 = vrot.slane %v1580_v21, 1  ;;  %v1469_v47 = vrot.slane %v1343_v53, %v2321_v11  ;;  %v1622_v26 = vsel %vm1593_vm10, %v1621_v23, %v1620_v39  ;;  %v1505_v57 = vpack.c.bf16 %v1389_v24, %v1389_v24 }
 0x152   : > { %v1507_v50 = vpack.c.bf16 %v1397_v28, %v1397_v28  ;;  %v1509_v48 = vpack.c.bf16 %v1405_v38, %v1405_v38  ;;  %v1521_v52 = vpack.c.bf16 %v1453_v31, %v1453_v31  ;;  %v1523_v43 = vpack.c.bf16 %v1461_v45, %v1461_v45 }
 0x153   : > { %v1624_v10 = vsel %vm1596_vm11, %v1623_v30, %v1622_v26  ;;  %v1525_v56 = vpack.c.bf16 %v1469_v47, %v1469_v47  ;;  %v1559_v42 = vunpack.c.l.b16 %v1503_v51  ;;  %v1561_v17 = vunpack.c.l.b16 %v1505_v57 }
 0x154   : > { %v1639_v44 = vpack.c.b16 %v1624_v10, %v1597_v33  ;;  %v1563_v40 = vunpack.c.l.b16 %v1507_v50  ;;  %v1565_v1 = vunpack.c.l.b16 %v1509_v48  ;;  %v1575_v11 = vunpack.c.l.b16 %v1519_v8 }
 0x155   : > { %v1577_v35 = vunpack.c.l.b16 %v1521_v52  ;;  %v1579_v53 = vunpack.c.l.b16 %v1523_v43  ;;  %v1581_v62 = vunpack.c.l.b16 %v1525_v56  ;;  %v1599_v5 = vrot.slane %v2428_v63, 5 }
 0x156   : > { %v1644_v61 = vsel %vm1641_vm12, 0, %v1639_v44  ;;  %v1601_v12 = vrot.slane %v1559_v42, 4  ;;  %v1603_v41 = vrot.slane %v1561_v17, 3  ;;  %v1605_v51 = vrot.slane %v1563_v40, 2 }
 0x157   : > { %1650 = vrot.lane.b32.xlu0 %v1644_v61, %s1960_s8  ;;  %v1607_v0 = vrot.slane %v1565_v1, 1  ;;  %v1626_v19 = vsel %vm1610_vm5, %v1625_v37, %v2442_v27  ;;  %v1600_v8 = vsel %vm1584_vm6, %v1599_v5, %v1598_v3  ;;  %v1629_v9 = vrot.slane %v2494_v16, 5 }
 0x158   : > { %v1628_v63 = vsel %vm1613_vm7, %v1627_v32, %v1626_v19  ;;  %v1631_v49 = vrot.slane %v1575_v11, 4  ;;  %v1602_v18 = vsel %vm1587_vm8, %v1601_v12, %v1600_v8  ;;  %v1633_v15 = vrot.slane %v1577_v35, 3 }
 0x159   : > { %v1635_v54 = vrot.slane %v1579_v53, 2  ;;  %v1637_v60 = vrot.slane %v1581_v62, 1  ;;  %v1604_v25 = vsel %vm1590_vm9, %v1603_v41, %v1602_v18  ;;  %v1630_v27 = vsel %vm1584_vm6, %v1629_v9, %v1628_v63 }
 0x15a   : > { %v1606_v29 = vsel %vm1593_vm10, %v1605_v51, %v1604_v25  ;;  %v1632_v3 = vsel %vm1587_vm8, %v1631_v49, %v1630_v27  ;;  %v1661_v37 = vsel %vm263_vm0, 0, %v1655_v4  ;;  %v2615_v2 = vmov 0  }
 0x15b   : > { %v1866_v16 = vcombine.low %v2615_v2, %v2615_v2  ;;  %v1634_v32 = vsel %vm1590_vm9, %v1633_v15, %v1632_v3  ;;  %v1868_v14 = vcombine.high %v2615_v2, %v2615_v2  ;;  %v1869_v58 = vcombine.low %v1661_v37, %v1655_v4 }
 0x15c   : > { %v1636_v7 = vsel %vm1593_vm10, %v1635_v54, %v1634_v32  ;;  %v1608_v46 = vsel %vm1596_vm11, %v1607_v0, %v1606_v29 }
 0x15d   : > { %1684 = vst.msk [vmem:[%s197_s10 + $0x8] sm:$0xf] %vm1683_vm13, %v1866_v16  ;;  %v1638_v20 = vsel %vm1596_vm11, %v1637_v60, %v1636_v7  ;;  %1686 = vst.msk [vmem:[%s197_s10 + $0x14] sm:$0xf] %vm1683_vm13, %v1868_v14 }
 0x15e   : > { %1689 = vst.msk [vmem:[%s197_s10 + $0x20] sm:$0x1] %vm1688_vm14, %v1866_v16  ;;  %1687 = vst [vmem:[%s197_s10 + $0x18] sm:$0x11] %v1869_v58  ;;  %v1640_v6 = vpack.c.b16 %v1638_v20, %v1608_v46 }
 0x160   : > { %v1646_v13 = vsel %vm1641_vm12, 0, %v1640_v6 }
 0x161   : > { %1652 = vrot.lane.b32.xlu0 %v1646_v13, %s1960_s8 }
 0x1c9   : > { %v1651_v36 = vpop.permute.xlu0 %1650 }
 0x1ca   : > { %v1659_v22 = vsel %vm263_vm0, 0, %v1651_v36 }
 0x1d3   : > { %v1653_v55 = vpop.permute.xlu0 %1652 }
 0x1d4   : > { %v1657_v24 = vsel %vm263_vm0, %v1651_v36, %v1653_v55 }
 0x1d5   : > { %v1865_v21 = vcombine.low %v1659_v22, %v1657_v24  ;;  %v1867_v34 = vcombine.high %v1659_v22, %v1657_v24 }
 0x1d7   : > { %1682 = vst [vmem:[%s197_s10] sm:$0xff] %v1865_v21  ;;  %1685 = vst [vmem:[%s197_s10 + $0xc] sm:$0xff] %v1867_v34 }
 0x1d8 PF: > { %s14_s15 = sadd.s32 1, %s1957_s15  }
 0x1d9   : > { %p11_p4 = scmp.ge.s32.totalorder %s14_s15, 4  }
 0x1db   :  { %13 = sbr.rel (!%p11_p4) target bundleno = 1 (0x1), region = 74 }

// kernel: tile.18
= control target key start
LH: loop header
LB: loop body
LE: loop exit
PB: predicated region body
PF: predicated region fallthrough
CT: control target
= control target key end

     0   :  { %s22_s0 = inlined_call_operand.vmem [shape: f32[32], index: 0, kind: input, shape index: {}]   ;;  %s23_s1 = inlined_call_operand.vmem [shape: f32[7,32], index: 1, kind: output, shape index: {}]  }
   0x1   :  { %v4_v0 = vld [vmem:[%s22_s0] ss:$0 sm:$0xff] }
   0x2   :  { %5 = vst [vmem:[%s23_s1] sm:$0xff] %v4_v0 }

// kernel: tile.19
= control target key start
LH: loop header
LB: loop body
LE: loop exit
PB: predicated region body
PF: predicated region fallthrough
CT: control target
= control target key end

     0   :  { %s13_s8 = smov 3  ;;  %s47_s9 = smov 96   ;;  %vm4_vm0 = vcmask 261120   ;;  %vm10_vm1 = vcmask 1048320   ;;  %vm17_vm2 = vcmask 785920   ;;  %vm24_vm3 = vcmask 523520   ;;  %s78_s0 = inlined_call_operand.vmem [shape: f32[7,32], index: 0, kind: input, shape index: {}]   ;;  %s79_s1 = inlined_call_operand.vmem [shape: f32[1,224], index: 1, kind: output, shape index: {}]  }
   0x1   :  { %v40_v0 = vld [vmem:[%s78_s0 + $0x3] sm:$0x1]   ;;  %s20_s10 = smov 3  ;;  %v41_v1 = vld [vmem:[%s78_s0 + $0x2] ss:$4 sm:%s13_s8]   ;;  %s2_s15 = smov 3 }
   0x2   :  { %8 = vrot.lane.b32.xlu0 %v40_v0, %s47_s9  ;;  %v42_v2 = vld [vmem:[%s78_s0 + $0x1] ss:$4 sm:%s20_s10]   ;;  %s48_s16 = smov 32  }
   0x3   :  { %22 = vrot.lane.b32.xlu1 %v42_v2, %s48_s16  ;;  %v3_v3 = vld [vmem:[%s78_s0] ss:$4 sm:%s2_s15]   ;;  %s49_s0 = smov 64  }
   0x4   :  { %5 = vst.msk [vmem:[#allocation0] ss:$8 sm:$0x3] %vm4_vm0, %v3_v3  }
   0x6   :  { %15 = vrot.lane.b32.xlu0 %v41_v1, %s49_s0 }
  0x74   :  { %v9_v4 = vpop.permute.xlu0 %8  }
  0x75   :  { %11 = vst.msk [vmem:[#allocation0] sm:$0x1] %vm10_vm1, %v9_v4   ;;  %v23_v5 = vpop.permute.xlu1 %22  }
  0x78   :  { %v16_v6 = vpop.permute.xlu0 %15  }
  0x79   :  { %18 = vst.msk [vmem:[#allocation0] ss:$8 sm:$0x3] %vm17_vm2, %v16_v6  }
  0x7a   :  { %25 = vst.msk [vmem:[#allocation0] ss:$8 sm:$0x3] %vm24_vm3, %v23_v5  }
  0x81   :  { %v30_v7 = vld [vmem:[#allocation0] sm:$0x1]  ;;  %v35_v8 = vld [vmem:[#allocation0 + $0x8] sm:$0x1] }
  0x82   :  { %33 = vst [vmem:[%s79_s1] sm:$0x1] %v30_v7  ;;  %43 = vst [vmem:[%s79_s1 + $0x1] sm:$0x1] %v35_v8 }

// kernel: cnn_mnist_forward.4
= control target key start
LH: loop header
LB: loop body
LE: loop exit
PB: predicated region body
PF: predicated region fallthrough
CT: control target
= control target key end

     0   :  { %s5106_s15 = smov 0   ;;  %s6481_s0 = inlined_call_operand.vmem [shape: bf16[2,18,288], index: 0, kind: input, shape index: {}]   ;;  %s6482_s1 = inlined_call_operand.vmem [shape: bf16[5,288,224], index: 1, kind: input, shape index: {}]   ;;  %s6483_s2 = inlined_call_operand.vmem [shape: bf16[5,288,224], index: 2, kind: input, shape index: {}]   ;;  %s6484_s3 = inlined_call_operand.vmem [shape: f32[1,224], index: 3, kind: input, shape index: {}]   ;;  %s6485_s4 = inlined_call_operand.vmem [shape: bf16[2,7,224], index: 4, kind: output, shape index: {}]  }
   0x1 LB: > { %s3792_s16 = sadd.s32 4294967295, %s5077_s15   ;;  %p3796_p0 = scmp.ge.s32.totalorder %s5077_s15, 1  ;;  %s5077_s15 = sphi %s5106_s15, %s14_s15  }
   0x2   : > { %p162_p1 = scmp.lt.s32.totalorder %s5077_s15, 3 }
   0x4   : > { %p163_p2 = pnand %p3796_p0, %p162_p1 }
   0x6   : > { %166 = sbr.rel (%p163_p2) target bundleno = 615 (0x267), region = 36 }
   0xb   : > { %v4511_v0 = vld [vmem:[%s6482_s1 + $0x194] ss:$8 sps:$4 sm:$0xff]   ;;  %p188_p3 = scmp.lt.s32.totalorder %s3792_s16, 1  ;;  %v4513_v1 = vld [vmem:[%s6482_s1 + $0x190] ss:$8 sps:$4 sm:$0xff]   ;;  %v5079_v2 = vmov 0  }
   0xc   : > { %609 = vmatprep.mubr.bf16.mxu1 %v5079_v2  ;;  %534 = vmatprep.subr.bf16.mxu0 %v4511_v0  ;;  %v4514_v3 = vld [vmem:[%s6482_s1 + $0x184] ss:$8 sps:$4 sm:$0xff]   ;;  %v4516_v4 = vld [vmem:[%s6482_s1 + $0x234] ss:$8 sps:$4 sm:$0xff]   ;;  %v4518_v5 = vld [vmem:[%s6482_s1 + $0x180] ss:$8 sps:$4 sm:$0xff]  }
   0xd   : > { %s6515_s16 = smov (!%p188_p3, %s3792_s16), 1  ;;  %535 = vmatpush1.bf16.msra.mxu0 %v4513_v1  ;;  %v4519_v6 = vld [vmem:[%s6482_s1 + $0x230] ss:$8 sps:$4 sm:$0xff]   ;;  %v4520_v7 = vld [vmem:[%s6482_s1 + $0x174] ss:$8 sps:$4 sm:$0xff]   ;;  %589 = vmatprep.subr.bf16.mxu1 %v4516_v4  ;;  %vm530_vm0 = vcmask 261120  }
   0xe   : > { %536 = vmatprep.subr.bf16.mxu0 %v4514_v3  ;;  %s4500_s5 = smul.u32 36, %s6515_s16  ;;  %v4522_v8 = vld [vmem:[%s6482_s1 + $0x224] ss:$8 sps:$4 sm:$0xff]   ;;  %590 = vmatpush1.bf16.msra.mxu1 %v4519_v6  ;;  %v4525_v9 = vld [vmem:[%s6482_s1 + $0x220] ss:$8 sps:$4 sm:$0xff]   ;;  %vm2833_vm1 = vcmask 1045504  }
   0xf   : > { %591 = vmatprep.subr.bf16.mxu1 %v4522_v8  ;;  %v4524_v10 = vld [vmem:[%s6482_s1 + $0x170] ss:$8 sps:$4 sm:$0xff]   ;;  %v4526_v11 = vld [vmem:[%s6482_s1 + $0x164] ss:$8 sps:$4 sm:$0xff]   ;;  %v4530_v12 = vld [vmem:[%s6482_s1 + $0x74] ss:$8 sps:$4 sm:$0xff]  }
  0x10   : > { %s5148_s12 = scalar_lea.vmem %s6481_s0, %s4500_s5  ;;  %v4531_v16 = vld [vmem:[%s6482_s1 + $0x160] ss:$8 sps:$4 sm:$0xff]   ;;  %v4533_v19 = vld [vmem:[%s6482_s1 + $0x154] ss:$8 sps:$4 sm:$0xff]   ;;  %v4528_v20 = vld [vmem:[%s6482_s1 + $0x70] ss:$8 sps:$4 sm:$0xff]  }
  0x11   : > { %537 = vmatpush1.bf16.msra.mxu0 %v4518_v5  ;;  %v5160_v13 = vld [vmem:[%s5148_s12 + $0x8] sm:$0xf]  ;;  %v276_v14 = vld [vmem:[%s5148_s12 + $0x14] sm:$0xf]  ;;  %v4537_v22 = vld [vmem:[%s6482_s1 + $0x64] ss:$8 sps:$4 sm:$0xff]  }
  0x12   : > { %538 = vmatprep.subr.bf16.mxu0 %v4520_v7  ;;  %592 = vmatpush1.bf16.msra.mxu1 %v4525_v9  ;;  %v3838_v15 = vcombine.low %v5160_v13, %v276_v14  ;;  %v4538_v23 = vld [vmem:[%s6482_s1 + $0x150] ss:$8 sps:$4 sm:$0xff]   ;;  %v4539_v25 = vld [vmem:[%s6482_s1 + $0x144] ss:$8 sps:$4 sm:$0xff]   ;;  %v4535_v26 = vld [vmem:[%s6482_s1 + $0x60] ss:$8 sps:$4 sm:$0xff]  }
  0x13   : > { %813 = vmatprep.subr.bf16.mxu1 %v4530_v12  ;;  %v4544_v27 = vld [vmem:[%s6482_s1 + $0x140] ss:$8 sps:$4 sm:$0xff]   ;;  %v4543_v28 = vld [vmem:[%s6482_s1 + $0x54] ss:$8 sps:$4 sm:$0xff]   ;;  %v4541_v30 = vld [vmem:[%s6482_s1 + $0x50] ss:$8 sps:$4 sm:$0xff]  }
  0x14   : > { %v342_v17 = vshrl.u32 %v3838_v15, 16  ;;  %v344_v18 = vshll.u32 %v3838_v15, 16  ;;  %v4545_v29 = vld [vmem:[%s6482_s1 + $0x134] ss:$8 sps:$4 sm:$0xff]   ;;  %v4549_v31 = vld [vmem:[%s6482_s1 + $0x44] ss:$8 sps:$4 sm:$0xff]  }
  0x15   : > { %539 = vmatpush1.bf16.msra.mxu0 %v4524_v10  ;;  %v4550_v32 = vld [vmem:[%s6482_s1 + $0x130] ss:$8 sps:$4 sm:$0xff]   ;;  %v4551_v33 = vld [vmem:[%s6482_s1 + $0x124] ss:$8 sps:$4 sm:$0xff]   ;;  %v4547_v34 = vld [vmem:[%s6482_s1 + $0x40] ss:$8 sps:$4 sm:$0xff]  }
  0x16   : > { %540 = vmatprep.subr.bf16.mxu0 %v4526_v11  ;;  %v346_v21 = vrot.slane %v344_v18, 1  ;;  %v4556_v35 = vld [vmem:[%s6482_s1 + $0x120] ss:$8 sps:$4 sm:$0xff]   ;;  %v4555_v36 = vld [vmem:[%s6482_s1 + $0x34] ss:$8 sps:$4 sm:$0xff]   ;;  %v5268_v53 = vld [vmem:[%s5148_s12 + $0xc] sm:$0xff] }
  0x17   : > { %v4557_v37 = vld [vmem:[%s6482_s1 + $0x214] ss:$8 sps:$4 sm:$0xff]   ;;  %v4553_v38 = vld [vmem:[%s6482_s1 + $0x30] ss:$8 sps:$4 sm:$0xff]   ;;  %v4561_v39 = vld [vmem:[%s6482_s1 + $0x24] ss:$8 sps:$4 sm:$0xff]  }
  0x18   : > { %v5179_v24 = vor.u32 %v346_v21, %v342_v17  ;;  %v4562_v40 = vld [vmem:[%s6482_s1 + $0x210] ss:$8 sps:$4 sm:$0xff]   ;;  %v4563_v41 = vld [vmem:[%s6482_s1 + $0x204] ss:$8 sps:$4 sm:$0xff]   ;;  %v4559_v42 = vld [vmem:[%s6482_s1 + $0x20] ss:$8 sps:$4 sm:$0xff]  }
  0x19   : > { %541 = vmatpush1.bf16.msra.mxu0 %v4531_v16  ;;  %v4568_v43 = vld [vmem:[%s6482_s1 + $0x200] ss:$8 sps:$4 sm:$0xff]   ;;  %v4567_v44 = vld [vmem:[%s6482_s1 + $0x14] ss:$8 sps:$4 sm:$0xff]   ;;  %v4565_v46 = vld [vmem:[%s6482_s1 + $0x10] ss:$8 sps:$4 sm:$0xff]  }
  0x1a   : > { %542 = vmatprep.subr.bf16.mxu0 %v4533_v19  ;;  %3875 = vmatmul.mubr.msk.bf16.vlgmr.msra.gmra.mxu1 %vm530_vm0, %v5179_v24  ;;  %v4569_v45 = vld [vmem:[%s6482_s1 + $0x1f4] ss:$8 sps:$4 sm:$0xff]   ;;  %v4573_v47 = vld [vmem:[%s6482_s1 + $0x4] ss:$8 sps:$4 sm:$0xff]   ;;  %v4574_v48 = vld [vmem:[%s6482_s1 + $0x1f0] ss:$8 sps:$4 sm:$0xff]  }
  0x1b   : > { %814 = vmatpush1.bf16.msra.mxu1 %v4528_v20  ;;  %v4575_v49 = vld [vmem:[%s6482_s1 + $0x1e4] ss:$8 sps:$4 sm:$0xff]   ;;  %v4571_v50 = vld [vmem:[%s6482_s1] ss:$8 sps:$4 sm:$0xff]   ;;  %v4579_v51 = vld [vmem:[%s6482_s1 + $0xf4] ss:$8 sps:$4 sm:$0xff]  }
  0x1c   : > { %815 = vmatprep.subr.bf16.mxu1 %v4537_v22  ;;  %v5265_v52 = vld [vmem:[%s5148_s12] sm:$0xff]  ;;  %v4581_v56 = vld [vmem:[%s6482_s1 + $0x1d4] ss:$8 sps:$4 sm:$0xff]   ;;  %v4577_v59 = vld [vmem:[%s6482_s1 + $0xf0] ss:$8 sps:$4 sm:$0xff]   ;;  %vm3696_vm3 = vcmask 1041409  }
  0x1d   : > { %543 = vmatpush1.bf16.msra.mxu0 %v4538_v23  ;;  %v4580_v54 = vld [vmem:[%s6482_s1 + $0x1e0] ss:$8 sps:$4 sm:$0xff]   ;;  %v3837_v55 = vcombine.high %v5265_v52, %v5268_v53  ;;  %v4585_v60 = vld [vmem:[%s6482_s1 + $0xe4] ss:$8 sps:$4 sm:$0xff]   ;;  %v4586_v61 = vld [vmem:[%s6482_s1 + $0x1d0] ss:$8 sps:$4 sm:$0xff]   ;;  %v3836_v4 = vcombine.low %v5265_v52, %v5268_v53 }
  0x1e   : > { %544 = vmatprep.subr.bf16.mxu0 %v4539_v25  ;;  %v4587_v63 = vld [vmem:[%s6482_s1 + $0x1c4] ss:$8 sps:$4 sm:$0xff]   ;;  %v4583_v1 = vld [vmem:[%s6482_s1 + $0xe0] ss:$8 sps:$4 sm:$0xff]   ;;  %v4591_v3 = vld [vmem:[%s6482_s1 + $0xd4] ss:$8 sps:$4 sm:$0xff]  }
  0x1f   : > { %816 = vmatpush1.bf16.msra.mxu1 %v4535_v26  ;;  %v335_v57 = vshrl.u32 %v3837_v55, 16  ;;  %v337_v58 = vshll.u32 %v3837_v55, 16  ;;  %v4592_v5 = vld [vmem:[%s6482_s1 + $0x1c0] ss:$8 sps:$4 sm:$0xff]   ;;  %v4593_v6 = vld [vmem:[%s6482_s1 + $0x1b4] ss:$8 sps:$4 sm:$0xff]  }
  0x20   : > { %817 = vmatprep.subr.bf16.mxu1 %v4543_v28  ;;  %v201_v7 = vld [vmem:[%s5148_s12 + $0xc] sm:$0x77]  ;;  %v330_v10 = vshll.u32 %v3836_v4, 16  ;;  %v4595_v15 = vld [vmem:[%s6482_s1 + $0xc0] ss:$8 sps:$4 sm:$0xff]   ;;  %v328_v16 = vshrl.u32 %v3836_v4, 16 }
  0x21   : > { %545 = vmatpush1.bf16.msra.mxu0 %v4544_v27  ;;  %v339_v62 = vrot.slane %v337_v58, 1  ;;  %v5309_v8 = vcombine.high %v5265_v52, %v201_v7  ;;  %v4589_v9 = vld [vmem:[%s6482_s1 + $0xd0] ss:$8 sps:$4 sm:$0xff]   ;;  %v4597_v12 = vld [vmem:[%s6482_s1 + $0xc4] ss:$8 sps:$4 sm:$0xff]   ;;  %vm3699_vm4 = vcmask 1042434  }
  0x22   : > { %546 = vmatprep.subr.bf16.mxu0 %v4545_v29  ;;  %v4598_v11 = vld [vmem:[%s6482_s1 + $0x1b0] ss:$8 sps:$4 sm:$0xff]   ;;  %v4599_v14 = vld [vmem:[%s6482_s1 + $0x1a4] ss:$8 sps:$4 sm:$0xff]   ;;  %v332_v17 = vrot.slane %v330_v10, 1  ;;  %vm3702_vm5 = vcmask 1043459  }
  0x23   : > { %818 = vmatpush1.bf16.msra.mxu1 %v4541_v30  ;;  %v5290_v0 = vor.u32 %v339_v62, %v335_v57  ;;  %845 = vmatprep.mubr.bf16.mxu1 %v5309_v8  ;;  %v4604_v18 = vld [vmem:[%s6482_s1 + $0x1a0] ss:$8 sps:$4 sm:$0xff]   ;;  %v4603_v19 = vld [vmem:[%s6482_s1 + $0xb4] ss:$8 sps:$4 sm:$0xff]   ;;  %v4601_v21 = vld [vmem:[%s6482_s1 + $0xb0] ss:$8 sps:$4 sm:$0xff]  }
  0x24   : > { %819 = vmatprep.subr.bf16.mxu1 %v4549_v31  ;;  %v4612_v20 = vld [vmem:[%s6482_s1 + $0x114] ss:$8 sps:$4 sm:$0xff]   ;;  %v5339_v22 = vor.u32 %v332_v17, %v328_v16  ;;  %v4610_v23 = vld [vmem:[%s6482_s1 + $0x110] ss:$8 sps:$4 sm:$0xff]   ;;  %v4609_v25 = vld [vmem:[%s6482_s1 + $0xa4] ss:$8 sps:$4 sm:$0xff]  }
  0x25   : > { %547 = vmatpush1.bf16.msra.mxu0 %v4550_v32  ;;  %566 = vmatprep.mubr.bf16.mxu0 %v5290_v0  ;;  %v4618_v26 = vld [vmem:[%s6482_s1 + $0x104] ss:$8 sps:$4 sm:$0xff]   ;;  %v4607_v27 = vld [vmem:[%s6482_s1 + $0xa0] ss:$8 sps:$4 sm:$0xff]   ;;  %v202_v29 = vld [vmem:[%s5148_s12 + $0x14] sm:$0x7] }
  0x26   : > { %548 = vmatprep.subr.bf16.mxu0 %v4551_v33  ;;  %v4616_v28 = vld [vmem:[%s6482_s1 + $0x100] ss:$8 sps:$4 sm:$0xff]   ;;  %v4615_v30 = vld [vmem:[%s6482_s1 + $0x94] ss:$8 sps:$4 sm:$0xff]   ;;  %v4613_v32 = vld [vmem:[%s6482_s1 + $0x90] ss:$8 sps:$4 sm:$0xff]   ;;  %v5369_v33 = vcombine.low %v5160_v13, %v202_v29 }
  0x27   : > { %820 = vmatpush1.bf16.msra.mxu1 %v4547_v34  ;;  %v4625_v31 = vld [vmem:[%s6483_s2 + $0x194] ss:$8 sps:$4 sm:$0xff]   ;;  %v4623_v34 = vld [vmem:[%s6483_s2 + $0x190] ss:$8 sps:$4 sm:$0xff]   ;;  %v4619_v13 = vld [vmem:[%s6482_s1 + $0x80] ss:$8 sps:$4 sm:$0xff]  }
  0x28   : > { %821 = vmatprep.subr.bf16.mxu1 %v4555_v36  ;;  %v4630_v36 = vld [vmem:[%s6483_s2 + $0x184] ss:$8 sps:$4 sm:$0xff]   ;;  %v4652_v55 = vld [vmem:[%s6483_s2 + $0x140] ss:$8 sps:$4 sm:$0xff]   ;;  %v4655_v57 = vld [vmem:[%s6483_s2 + $0x50] ss:$8 sps:$4 sm:$0xff]  }
  0x29   : > { %549 = vmatpush1.bf16.msra.mxu0 %v4556_v35  ;;  %v4621_v35 = vld [vmem:[%s6482_s1 + $0x84] ss:$8 sps:$4 sm:$0xff]   ;;  %v4658_v58 = vld [vmem:[%s6483_s2 + $0x130] ss:$8 sps:$4 sm:$0xff]   ;;  %v4664_v62 = vld [vmem:[%s6483_s2 + $0x120] ss:$8 sps:$4 sm:$0xff]  }
  0x2a   : > { %550 = vmatprep.subr.bf16.mxu0 %v4557_v37  ;;  %v4628_v37 = vld [vmem:[%s6483_s2 + $0x180] ss:$8 sps:$4 sm:$0xff]   ;;  %v4675_v4 = vld [vmem:[%s6483_s2 + $0x24] ss:$8 sps:$4 sm:$0xff]   ;;  %v4679_v10 = vld [vmem:[%s6483_s2 + $0x10] ss:$8 sps:$4 sm:$0xff]  }
  0x2b   : > { %822 = vmatpush1.bf16.msra.mxu1 %v4553_v38  ;;  %v4633_v38 = vld [vmem:[%s6483_s2 + $0x234] ss:$8 sps:$4 sm:$0xff]   ;;  %v4688_v16 = vld [vmem:[%s6483_s2 + $0x1e0] ss:$8 sps:$4 sm:$0xff]   ;;  %v4703_v29 = vld [vmem:[%s6483_s2 + $0xd0] ss:$8 sps:$4 sm:$0xff]  }
  0x2c   : > { %823 = vmatprep.subr.bf16.mxu1 %v4561_v39  ;;  %v4636_v39 = vld [vmem:[%s6483_s2 + $0x174] ss:$8 sps:$4 sm:$0xff]   ;;  %vm2164_vm2 = vsmask.f32 6400  ;;  %vm3727_vm6 = vcmask 1043456   ;;  %vm3730_vm8 = vcmask 785412  }
  0x2d   : > { %551 = vmatpush2.bf16.msra.mxu0 %v4562_v40  ;;  %v5396_v40 = vcombine.low %v5265_v52, %v201_v7  ;;  %v4654_v52 = vld [vmem:[%s6483_s2 + $0x144] ss:$8 sps:$4 sm:$0xff]   ;;  %v4676_v7 = vld [vmem:[%s6483_s2 + $0x200] ss:$8 sps:$4 sm:$0xff]   ;;  %v4693_v17 = vld [vmem:[%s6483_s2 + $0xf4] ss:$8 sps:$4 sm:$0xff]  }
  0x2e   : > { %552 = vmatprep.subr.bf16.mxu0 %v4563_v41  ;;  %v4631_v41 = vld [vmem:[%s6483_s2 + $0x230] ss:$8 sps:$4 sm:$0xff]   ;;  %vm3728_vm7 = vsmask.f32 3328  ;;  %vm3731_vm9 = vsmask.f32 7424 }
  0x2f   : > { %824 = vmatpush1.bf16.msra.mxu1 %v4559_v42  ;;  %v4634_v42 = vld [vmem:[%s6483_s2 + $0x170] ss:$8 sps:$4 sm:$0xff]   ;;  %s4492_s19 = sshll.u32 %s6515_s16, 3  ;;  %vm3705_vm10 = vcmask 1044484   ;;  %vm3708_vm11 = vcmask 1045509   ;;  %vm6467_vm12 = vmand %vm3727_vm6, %vm3728_vm7  ;;  %vm3711_vm13 = vcmask 1046534  }
  0x30   : > { %825 = vmatprep.subr.bf16.mxu1 %v4567_v44  ;;  %v4642_v44 = vld [vmem:[%s6483_s2 + $0x164] ss:$8 sps:$4 sm:$0xff]   ;;  %s197_s21 = scalar_lea.vmem %s6485_s4, %s4492_s19  ;;  %vm3732_vm14 = vmand %vm3730_vm8, %vm3731_vm9 }
  0x31   : > { %553 = vmatpush2.bf16.msra.mxu0 %v4568_v43  ;;  %v4639_v43 = vld [vmem:[%s6483_s2 + $0x224] ss:$8 sps:$4 sm:$0xff]   ;;  %vm3733_vm15 = vmor %vm3732_vm14, %vm6467_vm12 }
  0x32   : > { %554 = vmatprep.subr.bf16.mxu0 %v4569_v45  ;;  %v4637_v45 = vld [vmem:[%s6483_s2 + $0x220] ss:$8 sps:$4 sm:$0xff]  }
  0x33   : > { %826 = vmatpush1.bf16.msra.mxu1 %v4565_v46  ;;  %v4640_v46 = vld [vmem:[%s6483_s2 + $0x160] ss:$8 sps:$4 sm:$0xff]  }
  0x34   : > { %827 = vmatprep.subr.bf16.mxu1 %v4573_v47  ;;  %v4645_v47 = vld [vmem:[%s6483_s2 + $0x74] ss:$8 sps:$4 sm:$0xff]  }
  0x35   : > { %555 = vmatpush2.bf16.msra.mxu0 %v4574_v48  ;;  %v4648_v48 = vld [vmem:[%s6483_s2 + $0x154] ss:$8 sps:$4 sm:$0xff]  }
  0x36   : > { %556 = vmatprep.subr.bf16.mxu0 %v4575_v49  ;;  %v4643_v49 = vld [vmem:[%s6483_s2 + $0x70] ss:$8 sps:$4 sm:$0xff]  }
  0x37   : > { %828 = vmatpush1.bf16.msra.mxu1 %v4571_v50  ;;  %v4646_v50 = vld [vmem:[%s6483_s2 + $0x150] ss:$8 sps:$4 sm:$0xff]  }
  0x38   : > { %829 = vmatprep.subr.bf16.mxu1 %v4579_v51  ;;  %v4651_v51 = vld [vmem:[%s6483_s2 + $0x64] ss:$8 sps:$4 sm:$0xff]  }
  0x39   : > { %557 = vmatpush2.bf16.msra.mxu0 %v4580_v54  ;;  %v4649_v54 = vld [vmem:[%s6483_s2 + $0x60] ss:$8 sps:$4 sm:$0xff]  }
  0x3a   : > { %558 = vmatprep.subr.bf16.mxu0 %v4581_v56  ;;  %v4657_v56 = vld [vmem:[%s6483_s2 + $0x54] ss:$8 sps:$4 sm:$0xff]  }
  0x3b   : > { %830 = vmatpush2.bf16.msra.mxu1 %v4577_v59  ;;  %v4663_v59 = vld [vmem:[%s6483_s2 + $0x44] ss:$8 sps:$4 sm:$0xff]  }
  0x3c   : > { %831 = vmatprep.subr.bf16.mxu1 %v4585_v60  ;;  %v4666_v60 = vld [vmem:[%s6483_s2 + $0x124] ss:$8 sps:$4 sm:$0xff]  }
  0x3d   : > { %559 = vmatpush2.bf16.msra.mxu0 %v4586_v61  ;;  %v4661_v61 = vld [vmem:[%s6483_s2 + $0x40] ss:$8 sps:$4 sm:$0xff]  }
  0x3e   : > { %560 = vmatprep.subr.bf16.mxu0 %v4587_v63  ;;  %v4669_v63 = vld [vmem:[%s6483_s2 + $0x34] ss:$8 sps:$4 sm:$0xff]  }
  0x3f   : > { %832 = vmatpush2.bf16.msra.mxu1 %v4583_v1  ;;  %v4667_v1 = vld [vmem:[%s6483_s2 + $0x30] ss:$8 sps:$4 sm:$0xff]  }
  0x40   : > { %833 = vmatprep.subr.bf16.mxu1 %v4591_v3  ;;  %v4670_v3 = vld [vmem:[%s6483_s2 + $0x210] ss:$8 sps:$4 sm:$0xff]  }
  0x41   : > { %561 = vmatpush2.bf16.msra.mxu0 %v4592_v5  ;;  %v4678_v5 = vld [vmem:[%s6483_s2 + $0x204] ss:$8 sps:$4 sm:$0xff]  }
  0x42   : > { %562 = vmatprep.subr.bf16.mxu0 %v4593_v6  ;;  %v4673_v6 = vld [vmem:[%s6483_s2 + $0x20] ss:$8 sps:$4 sm:$0xff]  }
  0x43   : > { %834 = vmatpush2.bf16.msra.mxu1 %v4589_v9  ;;  %v4684_v9 = vld [vmem:[%s6483_s2 + $0x1f4] ss:$8 sps:$4 sm:$0xff]  }
  0x44   : > { %835 = vmatprep.subr.bf16.mxu1 %v4597_v12  ;;  %v4687_v12 = vld [vmem:[%s6483_s2 + $0x4] ss:$8 sps:$4 sm:$0xff]  }
  0x45   : > { %563 = vmatpush2.bf16.msra.mxu0 %v4598_v11  ;;  %v4682_v11 = vld [vmem:[%s6483_s2 + $0x1f0] ss:$8 sps:$4 sm:$0xff]  }
  0x46   : > { %564 = vmatprep.subr.bf16.mxu0 %v4599_v14  ;;  %v4690_v14 = vld [vmem:[%s6483_s2 + $0x1e4] ss:$8 sps:$4 sm:$0xff]  }
  0x47   : > { %836 = vmatpush2.bf16.msra.mxu1 %v4595_v15  ;;  %v4685_v15 = vld [vmem:[%s6483_s2] ss:$8 sps:$4 sm:$0xff]  }
  0x48   : > { %837 = vmatprep.subr.bf16.mxu1 %v4603_v19  ;;  %v4691_v19 = vld [vmem:[%s6483_s2 + $0xf0] ss:$8 sps:$4 sm:$0xff]  }
  0x49   : > { %565 = vmatpush2.bf16.msra.mxu0 %v4604_v18  ;;  %v4696_v18 = vld [vmem:[%s6483_s2 + $0x1d4] ss:$8 sps:$4 sm:$0xff]  }
  0x4a   : > { %868 = vmatprep.subr.bf16.mxu0 %v4612_v20  ;;  %v4694_v20 = vld [vmem:[%s6483_s2 + $0x1d0] ss:$8 sps:$4 sm:$0xff]  }
  0x4b   : > { %838 = vmatpush2.bf16.msra.mxu1 %v4601_v21  ;;  %v4699_v21 = vld [vmem:[%s6483_s2 + $0xe4] ss:$8 sps:$4 sm:$0xff]  }
  0x4c   : > { %567 = vmatmul.mubr.bf16.vlgmr.msra.gmra.mxu0 %v5339_v22  ;;  %839 = vmatprep.subr.bf16.mxu1 %v4609_v25  ;;  %v4697_v25 = vld [vmem:[%s6483_s2 + $0xe0] ss:$8 sps:$4 sm:$0xff]  }
  0x4d   : > { %869 = vmatpush1.bf16.msra.mxu0 %v4610_v23  ;;  %888 = vmatprep.mubr.bf16.mxu0 %v5079_v2  ;;  %v4702_v23 = vld [vmem:[%s6483_s2 + $0x1c4] ss:$8 sps:$4 sm:$0xff]  }
  0x4e   : > { %870 = vmatprep.subr.bf16.mxu0 %v4618_v26  ;;  %v4700_v26 = vld [vmem:[%s6483_s2 + $0x1c0] ss:$8 sps:$4 sm:$0xff]  }
  0x4f   : > { %840 = vmatpush2.bf16.msra.mxu1 %v4607_v27  ;;  %v4705_v27 = vld [vmem:[%s6483_s2 + $0xd4] ss:$8 sps:$4 sm:$0xff]  }
  0x50   : > { %841 = vmatprep.subr.bf16.mxu1 %v4615_v30  ;;  %v4706_v30 = vld [vmem:[%s6483_s2 + $0x1b0] ss:$8 sps:$4 sm:$0xff]  }
  0x51   : > { %871 = vmatpush1.bf16.msra.mxu0 %v4616_v28  ;;  %v4708_v28 = vld [vmem:[%s6483_s2 + $0x1b4] ss:$8 sps:$4 sm:$0xff]  }
  0x52   : > { %1116 = vmatprep.subr.bf16.mxu0 %v4625_v31  ;;  %v4711_v31 = vld [vmem:[%s6483_s2 + $0xc4] ss:$8 sps:$4 sm:$0xff]  }
  0x53   : > { %842 = vmatpush2.bf16.msra.mxu1 %v4613_v32  ;;  %v4714_v32 = vld [vmem:[%s6483_s2 + $0x1a4] ss:$8 sps:$4 sm:$0xff]  }
  0x54   : > { %3915 = vmatmul.mubr.msk.bf16.vlgmr.msra.gmra.mxu0 %vm530_vm0, %v5369_v33  ;;  %843 = vmatprep.subr.bf16.mxu1 %v4621_v35  ;;  %v4712_v35 = vld [vmem:[%s6483_s2 + $0x1a0] ss:$8 sps:$4 sm:$0xff]  }
  0x55   : > { %1117 = vmatpush1.bf16.msra.mxu0 %v4623_v34  ;;  %1148 = vmatprep.mubr.bf16.mxu0 %v5290_v0  ;;  %v4672_v0 = vld [vmem:[%s6483_s2 + $0x214] ss:$8 sps:$4 sm:$0xff]   ;;  %v4709_v34 = vld [vmem:[%s6483_s2 + $0xc0] ss:$8 sps:$4 sm:$0xff]  }
  0x56   : > { %1118 = vmatprep.subr.bf16.mxu0 %v4630_v36  ;;  %v4717_v36 = vld [vmem:[%s6483_s2 + $0xb4] ss:$8 sps:$4 sm:$0xff]  }
  0x57   : > { %844 = vmatpush2.bf16.msra.mxu1 %v4619_v13  ;;  %v4723_v13 = vld [vmem:[%s6483_s2 + $0x114] ss:$8 sps:$4 sm:$0xff]  }
  0x58   : > { %1171 = vmatprep.subr.bf16.mxu1 %v4633_v38  ;;  %v4721_v38 = vld [vmem:[%s6483_s2 + $0x110] ss:$8 sps:$4 sm:$0xff]  }
  0x59   : > { %1119 = vmatpush1.bf16.msra.mxu0 %v4628_v37  ;;  %v4715_v37 = vld [vmem:[%s6483_s2 + $0xb0] ss:$8 sps:$4 sm:$0xff]  }
  0x5a   : > { %1120 = vmatprep.subr.bf16.mxu0 %v4636_v39  ;;  %846 = vmatmul.mubr.bf16.vlgmr.msra.gmra.mxu1 %v5396_v40  ;;  %v4720_v39 = vld [vmem:[%s6483_s2 + $0xa4] ss:$8 sps:$4 sm:$0xff]  }
  0x5b   : > { %1172 = vmatpush1.bf16.msra.mxu1 %v4631_v41  ;;  %1191 = vmatprep.mubr.bf16.mxu1 %v5079_v2  ;;  %v4729_v41 = vld [vmem:[%s6483_s2 + $0x104] ss:$8 sps:$4 sm:$0xff]  }
  0x5c   : > { %1173 = vmatprep.subr.bf16.mxu1 %v4639_v43  ;;  %v4727_v43 = vld [vmem:[%s6483_s2 + $0x100] ss:$8 sps:$4 sm:$0xff]  }
  0x5d   : > { %1121 = vmatpush1.bf16.msra.mxu0 %v4634_v42  ;;  %v4718_v42 = vld [vmem:[%s6483_s2 + $0xa0] ss:$8 sps:$4 sm:$0xff]  }
  0x5e   : > { %1122 = vmatprep.subr.bf16.mxu0 %v4642_v44  ;;  %v4726_v44 = vld [vmem:[%s6483_s2 + $0x94] ss:$8 sps:$4 sm:$0xff]  }
  0x5f   : > { %1174 = vmatpush1.bf16.msra.mxu1 %v4637_v45  ;;  %v5598_v45 = vld [vmem:[%s5148_s12] sm:$0xee] }
  0x60   : > { %1382 = vmatprep.subr.bf16.mxu1 %v4645_v47  ;;  %v4063_v47 = vcombine.high %v5598_v45, %v5268_v53  ;;  %v4730_v53 = vld [vmem:[%s6483_s2 + $0x80] ss:$8 sps:$4 sm:$0xff]  }
  0x61   : > { %1123 = vmatpush1.bf16.msra.mxu0 %v4640_v46  ;;  %v4724_v46 = vld [vmem:[%s6483_s2 + $0x90] ss:$8 sps:$4 sm:$0xff]  }
  0x62   : > { %1124 = vmatprep.subr.bf16.mxu0 %v4648_v48  ;;  %3988 = vmatmul.mubr.msk.bf16.vlgmr.msra.gmra.mxu1 %vm530_vm0, %v5179_v24  ;;  %v4660_v24 = vld [vmem:[%s6483_s2 + $0x134] ss:$8 sps:$4 sm:$0xff]   ;;  %v4732_v48 = vld [vmem:[%s6483_s2 + $0x84] ss:$8 sps:$4 sm:$0xff]  }
  0x63   : > { %1383 = vmatpush1.bf16.msra.mxu1 %v4643_v49  ;;  %1414 = vmatprep.mubr.bf16.mxu1 %v5309_v8  ;;  %v4681_v8 = vld [vmem:[%s6483_s2 + $0x14] ss:$8 sps:$4 sm:$0xff]   ;;  %v4733_v49 = vld [vmem:[%s6482_s1 + $0x2b0] ss:$8 sps:$4 sm:$0xff]  }
  0x64   : > { %1384 = vmatprep.subr.bf16.mxu1 %v4651_v51  ;;  %v1516_v51 = vrot.slane %v4063_v47, 1  ;;  %v4815_v47 = vld [vmem:[%s6482_s1 + $0x2d0] ss:$8 sps:$4 sm:$0xff]  }
  0x65   : > { %1125 = vmatpush1.bf16.msra.mxu0 %v4646_v50  ;;  %v4738_v50 = vld [vmem:[%s6482_s1 + $0x2a4] ss:$8 sps:$4 sm:$0xff]  }
  0x66   : > { %1126 = vmatprep.subr.bf16.mxu0 %v4654_v52  ;;  %v4736_v52 = vld [vmem:[%s6482_s1 + $0x2a0] ss:$8 sps:$4 sm:$0xff]  }
  0x67   : > { %1385 = vmatpush1.bf16.msra.mxu1 %v4649_v54  ;;  %v4741_v54 = vld [vmem:[%s6482_s1 + $0x354] ss:$8 sps:$4 sm:$0xff]  }
  0x68   : > { %1386 = vmatprep.subr.bf16.mxu1 %v4657_v56  ;;  %v4742_v56 = vld [vmem:[%s6482_s1 + $0x290] ss:$8 sps:$4 sm:$0xff]  }
  0x69   : > { %1127 = vmatpush1.bf16.msra.mxu0 %v4652_v55  ;;  %v4744_v55 = vld [vmem:[%s6482_s1 + $0x294] ss:$8 sps:$4 sm:$0xff]  }
  0x6a   : > { %1128 = vmatprep.subr.bf16.mxu0 %v4660_v24  ;;  %v1469_v24 = vld [vmem:[%s5148_s12 + $0x8] sm:$0xe] }
  0x6b   : > { %1387 = vmatpush1.bf16.msra.mxu1 %v4655_v57  ;;  %v4747_v57 = vld [vmem:[%s6482_s1 + $0x344] ss:$8 sps:$4 sm:$0xff]  }
  0x6c   : > { %1388 = vmatprep.subr.bf16.mxu1 %v4663_v59  ;;  %v5069_v59 = vld [vmem:[%s5148_s12 + $0x14] sm:$0xf] }
  0x6d   : > { %1129 = vmatpush1.bf16.msra.mxu0 %v4658_v58  ;;  %v4750_v58 = vld [vmem:[%s6482_s1 + $0x284] ss:$8 sps:$4 sm:$0xff]  }
  0x6e   : > { %1130 = vmatprep.subr.bf16.mxu0 %v4666_v60  ;;  %v4064_v60 = vcombine.low %v1469_v24, %v5069_v59  ;;  %v5812_v24 = vld [vmem:[%s5148_s12 + $0x18] sm:$0x11] }
  0x6f   : > { %1389 = vmatpush1.bf16.msra.mxu1 %v4661_v61  ;;  %v4745_v61 = vld [vmem:[%s6482_s1 + $0x340] ss:$8 sps:$4 sm:$0xff]  }
  0x70   : > { %1390 = vmatprep.subr.bf16.mxu1 %v4669_v63  ;;  %v4754_v63 = vld [vmem:[%s6483_s2 + $0x2b4] ss:$8 sps:$4 sm:$0xff]  }
  0x71   : > { %1131 = vmatpush1.bf16.msra.mxu0 %v4664_v62  ;;  %v4748_v62 = vld [vmem:[%s6482_s1 + $0x280] ss:$8 sps:$4 sm:$0xff]  }
  0x72   : > { %1132 = vmatprep.subr.bf16.mxu0 %v4672_v0  ;;  %v5656_v0 = vrot.slane %v4064_v60, 1  ;;  %v4831_v60 = vld [vmem:[%s6483_s2 + $0x2e4] ss:$8 sps:$4 sm:$0xff]  }
  0x73   : > { %1391 = vmatpush1.bf16.msra.mxu1 %v4667_v1  ;;  %v4752_v1 = vld [vmem:[%s6483_s2 + $0x2b0] ss:$8 sps:$4 sm:$0xff]  }
  0x74   : > { %1392 = vmatprep.subr.bf16.mxu1 %v4675_v4  ;;  %v4760_v4 = vld [vmem:[%s6483_s2 + $0x2a4] ss:$8 sps:$4 sm:$0xff]  }
  0x75   : > { %1133 = vmatpush2.bf16.msra.mxu0 %v4670_v3  ;;  %v4755_v3 = vld [vmem:[%s6482_s1 + $0x270] ss:$8 sps:$4 sm:$0xff]  }
  0x76   : > { %1134 = vmatprep.subr.bf16.mxu0 %v4678_v5  ;;  %v4763_v5 = vld [vmem:[%s6482_s1 + $0x264] ss:$8 sps:$4 sm:$0xff]  }
  0x77   : > { %1393 = vmatpush1.bf16.msra.mxu1 %v4673_v6  ;;  %v4758_v6 = vld [vmem:[%s6483_s2 + $0x2a0] ss:$8 sps:$4 sm:$0xff]  }
  0x78   : > { %1394 = vmatprep.subr.bf16.mxu1 %v4681_v8  ;;  %v4766_v8 = vld [vmem:[%s6483_s2 + $0x294] ss:$8 sps:$4 sm:$0xff]  }
  0x79   : > { %1135 = vmatpush2.bf16.msra.mxu0 %v4676_v7  ;;  %v4761_v7 = vld [vmem:[%s6482_s1 + $0x260] ss:$8 sps:$4 sm:$0xff]  }
  0x7a   : > { %1136 = vmatprep.subr.bf16.mxu0 %v4684_v9  ;;  %v4769_v9 = vld [vmem:[%s6482_s1 + $0x254] ss:$8 sps:$4 sm:$0xff]  }
  0x7b   : > { %1395 = vmatpush1.bf16.msra.mxu1 %v4679_v10  ;;  %v4764_v10 = vld [vmem:[%s6483_s2 + $0x290] ss:$8 sps:$4 sm:$0xff]  }
  0x7c   : > { %1396 = vmatprep.subr.bf16.mxu1 %v4687_v12  ;;  %v4772_v12 = vld [vmem:[%s6483_s2 + $0x284] ss:$8 sps:$4 sm:$0xff]  }
  0x7d   : > { %1137 = vmatpush2.bf16.msra.mxu0 %v4682_v11  ;;  %v4767_v11 = vld [vmem:[%s6482_s1 + $0x250] ss:$8 sps:$4 sm:$0xff]  }
  0x7e   : > { %1138 = vmatprep.subr.bf16.mxu0 %v4690_v14  ;;  %v4775_v14 = vld [vmem:[%s6482_s1 + $0x244] ss:$8 sps:$4 sm:$0xff]  }
  0x7f   : > { %1397 = vmatpush1.bf16.msra.mxu1 %v4685_v15  ;;  %v4770_v15 = vld [vmem:[%s6483_s2 + $0x280] ss:$8 sps:$4 sm:$0xff]  }
  0x80   : > { %1398 = vmatprep.subr.bf16.mxu1 %v4693_v17  ;;  %v4778_v17 = vld [vmem:[%s6483_s2 + $0x274] ss:$8 sps:$4 sm:$0xff]  }
  0x81   : > { %1139 = vmatpush2.bf16.msra.mxu0 %v4688_v16  ;;  %v4773_v16 = vld [vmem:[%s6482_s1 + $0x240] ss:$8 sps:$4 sm:$0xff]  }
  0x82   : > { %1140 = vmatprep.subr.bf16.mxu0 %v4696_v18  ;;  %v4781_v18 = vld [vmem:[%s6482_s1 + $0x334] ss:$8 sps:$4 sm:$0xff]  }
  0x83   : > { %1399 = vmatpush2.bf16.msra.mxu1 %v4691_v19  ;;  %v4776_v19 = vld [vmem:[%s6483_s2 + $0x270] ss:$8 sps:$4 sm:$0xff]  }
  0x84   : > { %1400 = vmatprep.subr.bf16.mxu1 %v4699_v21  ;;  %v4784_v21 = vld [vmem:[%s6483_s2 + $0x264] ss:$8 sps:$4 sm:$0xff]  }
  0x85   : > { %1141 = vmatpush2.bf16.msra.mxu0 %v4694_v20  ;;  %v4779_v20 = vld [vmem:[%s6482_s1 + $0x330] ss:$8 sps:$4 sm:$0xff]  }
  0x86   : > { %1142 = vmatprep.subr.bf16.mxu0 %v4702_v23  ;;  %v4787_v23 = vld [vmem:[%s6482_s1 + $0x324] ss:$8 sps:$4 sm:$0xff]  }
  0x87   : > { %1401 = vmatpush2.bf16.msra.mxu1 %v4697_v25  ;;  %v4782_v25 = vld [vmem:[%s6483_s2 + $0x260] ss:$8 sps:$4 sm:$0xff]  }
  0x88   : > { %1402 = vmatprep.subr.bf16.mxu1 %v4705_v27  ;;  %v4790_v27 = vld [vmem:[%s6483_s2 + $0x254] ss:$8 sps:$4 sm:$0xff]  }
  0x89   : > { %1143 = vmatpush2.bf16.msra.mxu0 %v4700_v26  ;;  %v4785_v26 = vld [vmem:[%s6482_s1 + $0x320] ss:$8 sps:$4 sm:$0xff]  }
  0x8a   : > { %1144 = vmatprep.subr.bf16.mxu0 %v4708_v28  ;;  %v4793_v28 = vld [vmem:[%s6482_s1 + $0x314] ss:$8 sps:$4 sm:$0xff]  }
  0x8b   : > { %1403 = vmatpush2.bf16.msra.mxu1 %v4703_v29  ;;  %v4788_v29 = vld [vmem:[%s6483_s2 + $0x250] ss:$8 sps:$4 sm:$0xff]  }
  0x8c   : > { %1404 = vmatprep.subr.bf16.mxu1 %v4711_v31  ;;  %v4796_v31 = vld [vmem:[%s6483_s2 + $0x244] ss:$8 sps:$4 sm:$0xff]  }
  0x8d   : > { %1145 = vmatpush2.bf16.msra.mxu0 %v4706_v30  ;;  %v4791_v30 = vld [vmem:[%s6482_s1 + $0x310] ss:$8 sps:$4 sm:$0xff]  }
  0x8e   : > { %1146 = vmatprep.subr.bf16.mxu0 %v4714_v32  ;;  %v4799_v32 = vld [vmem:[%s6482_s1 + $0x304] ss:$8 sps:$4 sm:$0xff]  }
  0x8f   : > { %1405 = vmatpush2.bf16.msra.mxu1 %v4709_v34  ;;  %v4794_v34 = vld [vmem:[%s6483_s2 + $0x240] ss:$8 sps:$4 sm:$0xff]  }
  0x90   : > { %1406 = vmatprep.subr.bf16.mxu1 %v4717_v36  ;;  %v4802_v36 = vld [vmem:[%s6483_s2 + $0x334] ss:$8 sps:$4 sm:$0xff]  }
  0x91   : > { %1147 = vmatpush2.bf16.msra.mxu0 %v4712_v35  ;;  %v4797_v35 = vld [vmem:[%s6482_s1 + $0x300] ss:$8 sps:$4 sm:$0xff]  }
  0x92   : > { %1437 = vmatprep.subr.bf16.mxu0 %v4723_v13  ;;  %v4805_v13 = vld [vmem:[%s6482_s1 + $0x2f4] ss:$8 sps:$4 sm:$0xff]  }
  0x93   : > { %1407 = vmatpush2.bf16.msra.mxu1 %v4715_v37  ;;  %v4800_v37 = vld [vmem:[%s6483_s2 + $0x330] ss:$8 sps:$4 sm:$0xff]  }
  0x94   : > { %1149 = vmatmul.mubr.bf16.vlgmr.msra.gmra.mxu0 %v5339_v22  ;;  %1408 = vmatprep.subr.bf16.mxu1 %v4720_v39  ;;  %v4735_v22 = vld [vmem:[%s6482_s1 + $0x2b4] ss:$8 sps:$4 sm:$0xff]   ;;  %v4808_v39 = vld [vmem:[%s6483_s2 + $0x324] ss:$8 sps:$4 sm:$0xff]  }
  0x95   : > { %1438 = vmatpush1.bf16.msra.mxu0 %v4721_v38  ;;  %1457 = vmatprep.mubr.bf16.mxu0 %v5079_v2  ;;  %v4803_v38 = vld [vmem:[%s6482_s1 + $0x2f0] ss:$8 sps:$4 sm:$0xff]  }
  0x96   : > { %1439 = vmatprep.subr.bf16.mxu0 %v4729_v41  ;;  %v4811_v41 = vld [vmem:[%s6482_s1 + $0x2e4] ss:$8 sps:$4 sm:$0xff]  }
  0x97   : > { %1409 = vmatpush2.bf16.msra.mxu1 %v4718_v42  ;;  %v4806_v42 = vld [vmem:[%s6483_s2 + $0x320] ss:$8 sps:$4 sm:$0xff]  }
  0x98   : > { %1410 = vmatprep.subr.bf16.mxu1 %v4726_v44  ;;  %v4814_v44 = vld [vmem:[%s6483_s2 + $0x314] ss:$8 sps:$4 sm:$0xff]  }
  0x99   : > { %1440 = vmatpush1.bf16.msra.mxu0 %v4727_v43  ;;  %v4809_v43 = vld [vmem:[%s6482_s1 + $0x2e0] ss:$8 sps:$4 sm:$0xff]  }
  0x9a   : > { %1703 = vmatprep.subr.bf16.mxu0 %v4735_v22  ;;  %v4817_v22 = vld [vmem:[%s6482_s1 + $0x2d4] ss:$8 sps:$4 sm:$0xff]  }
  0x9b   : > { %1411 = vmatpush2.bf16.msra.mxu1 %v4724_v46  ;;  %v4812_v46 = vld [vmem:[%s6483_s2 + $0x310] ss:$8 sps:$4 sm:$0xff]  }
  0x9c   : > { %4025 = vmatmul.mubr.msk.bf16.vlgmr.msra.gmra.mxu0 %vm530_vm0, %v5369_v33  ;;  %1412 = vmatprep.subr.bf16.mxu1 %v4732_v48  ;;  %v4739_v33 = vld [vmem:[%s6482_s1 + $0x350] ss:$8 sps:$4 sm:$0xff]   ;;  %v4820_v48 = vld [vmem:[%s6483_s2 + $0x304] ss:$8 sps:$4 sm:$0xff]  }
  0x9d   : > { %1704 = vmatpush1.bf16.msra.mxu0 %v4733_v49  ;;  %1735 = vmatprep.mubr.bf16.mxu0 %v1516_v51  ;;  %v5790_v49 = vld [vmem:[%s5148_s12] sm:$0xee] }
  0x9e   : > { %1705 = vmatprep.subr.bf16.mxu0 %v4738_v50  ;;  %v5793_v50 = vld [vmem:[%s5148_s12 + $0xc] sm:$0xff] }
  0x9f   : > { %1413 = vmatpush2.bf16.msra.mxu1 %v4730_v53  ;;  %v4818_v53 = vld [vmem:[%s6483_s2 + $0x300] ss:$8 sps:$4 sm:$0xff]  }
  0xa0   : > { %1758 = vmatprep.subr.bf16.mxu1 %v4741_v54  ;;  %v4826_v54 = vld [vmem:[%s6483_s2 + $0x2f4] ss:$8 sps:$4 sm:$0xff]  }
  0xa1   : > { %1706 = vmatpush1.bf16.msra.mxu0 %v4736_v52  ;;  %v4821_v52 = vld [vmem:[%s6482_s1 + $0x2c0] ss:$8 sps:$4 sm:$0xff]  }
  0xa2   : > { %1707 = vmatprep.subr.bf16.mxu0 %v4744_v55  ;;  %1415 = vmatmul.mubr.bf16.vlgmr.msra.gmra.mxu1 %v5396_v40  ;;  %v4757_v40 = vld [vmem:[%s6482_s1 + $0x274] ss:$8 sps:$4 sm:$0xff]   ;;  %v5070_v55 = vld [vmem:[%s5148_s12 + $0xc] sm:$0xff] }
  0xa3   : > { %1759 = vmatpush1.bf16.msra.mxu1 %v4739_v33  ;;  %1778 = vmatprep.mubr.bf16.mxu1 %v5079_v2  ;;  %v4062_v33 = vcombine.low %v5598_v45, %v5070_v55  ;;  %v4824_v45 = vld [vmem:[%s6483_s2 + $0x2f0] ss:$8 sps:$4 sm:$0xff]   ;;  %v4873_v55 = vld [vmem:[%s6482_s1 + $0x380] ss:$8 sps:$4 sm:$0xff]  }
  0xa4   : > { %1760 = vmatprep.subr.bf16.mxu1 %v4747_v57  ;;  %v4834_v57 = vld [vmem:[%s6483_s2 + $0x354] ss:$8 sps:$4 sm:$0xff]  }
  0xa5   : > { %1708 = vmatpush1.bf16.msra.mxu0 %v4742_v56  ;;  %v4212_v56 = vcombine.high %v5790_v49, %v5793_v50  ;;  %v5823_v59 = vrot.slane %v4062_v33, 1  ;;  %v4878_v33 = vld [vmem:[%s6483_s2 + $0x3b4] ss:$8 sps:$4 sm:$0xff]  }
  0xa6   : > { %1709 = vmatprep.subr.bf16.mxu0 %v4750_v58  ;;  %v4832_v58 = vld [vmem:[%s6483_s2 + $0x350] ss:$8 sps:$4 sm:$0xff]  }
  0xa7   : > { %1761 = vmatpush1.bf16.msra.mxu1 %v4745_v61  ;;  %v4840_v61 = vld [vmem:[%s6483_s2 + $0x344] ss:$8 sps:$4 sm:$0xff]  }
  0xa8   : > { %2010 = vmatprep.subr.bf16.mxu1 %v4754_v63  ;;  %v2179_v63 = vshrl.u32 %v4212_v56, 16 }
  0xa9   : > { %1710 = vmatpush1.bf16.msra.mxu0 %v4748_v62  ;;  %v5833_v62 = vcombine.high %v5812_v24, %v5812_v24 }
  0xaa   : > { %1711 = vmatprep.subr.bf16.mxu0 %v4757_v40  ;;  %4101 = vmatmul.mubr.msk.bf16.vlgmr.msra.gmra.mxu1 %vm530_vm0, %v5656_v0  ;;  %v2182_v40 = vshll.u32 %v4212_v56, 16  ;;  %v4881_v56 = vld [vmem:[%s6482_s1 + $0x374] ss:$8 sps:$4 sm:$0xff]  }
  0xab   : > { %2011 = vmatpush1.bf16.msra.mxu1 %v4752_v1  ;;  %2042 = vmatprep.mubr.bf16.mxu1 %v1516_v51  ;;  %v4823_v51 = vld [vmem:[%s6482_s1 + $0x2c4] ss:$8 sps:$4 sm:$0xff]   ;;  %v5836_v1 = vld [vmem:[%s5148_s12 + $0x20] ss:$0 sps:$4 sm:$0x11]  }
  0xac   : > { %2012 = vmatprep.subr.bf16.mxu1 %v4760_v4  ;;  %v2787_v4 = vld [vmem:[%s5148_s12 + $0x8] sm:$0xc] }
  0xad   : > { %1712 = vmatpush1.bf16.msra.mxu0 %v4755_v3  ;;  %v2103_v3 = vld [vmem:[%s5148_s12 + $0x14] sm:$0xf] }
  0xae   : > { %1713 = vmatprep.subr.bf16.mxu0 %v4763_v5  ;;  %v4829_v5 = vld [vmem:[%s6483_s2 + $0x2e0] ss:$8 sps:$4 sm:$0xff]  }
  0xaf   : > { %2013 = vmatpush1.bf16.msra.mxu1 %v4758_v6  ;;  %v4365_v6 = vcombine.low %v2787_v4, %v2103_v3 }
  0xb0   : > { %2014 = vmatprep.subr.bf16.mxu1 %v4766_v8  ;;  %v4837_v8 = vld [vmem:[%s6483_s2 + $0x2d4] ss:$8 sps:$4 sm:$0xff]  }
  0xb1   : > { %1714 = vmatpush1.bf16.msra.mxu0 %v4761_v7  ;;  %v2841_v7 = vrot.slane %v5836_v1, 2 }
  0xb2   : > { %1715 = vmatprep.subr.bf16.mxu0 %v4769_v9  ;;  %v2181_v9 = vrot.slane %v2179_v63, 1  ;;  %v2786_v63 = vld [vmem:[%s5148_s12] sm:$0xcc] }
  0xb3   : > { %2015 = vmatpush1.bf16.msra.mxu1 %v4764_v10  ;;  %v2184_v10 = vrot.slane %v2182_v40, 2  ;;  %v4885_v40 = vld [vmem:[%s6482_s1 + $0x360] ss:$8 sps:$4 sm:$0xff]   ;;  %v4363_v4 = vcombine.low %v2786_v63, %v5793_v50 }
  0xb4   : > { %2016 = vmatprep.subr.bf16.mxu1 %v4772_v12  ;;  %v4838_v12 = vld [vmem:[%s6483_s2 + $0x340] ss:$8 sps:$4 sm:$0xff]  }
  0xb5   : > { %1716 = vmatpush1.bf16.msra.mxu0 %v4767_v11  ;;  %v2187_v11 = vshll.u32 %v5833_v62, 16 }
  0xb6   : > { %1717 = vmatprep.subr.bf16.mxu0 %v4775_v14  ;;  %v2840_v14 = vrot.slane %v4365_v6, 2  ;;  %v4893_v6 = vld [vmem:[%s6482_s1 + $0x454] ss:$8 sps:$4 sm:$0xff]  }
  0xb7   : > { %2017 = vmatpush1.bf16.msra.mxu1 %v4770_v15  ;;  %v4846_v15 = vld [vmem:[%s6482_s1 + $0x3d4] ss:$8 sps:$4 sm:$0xff]  }
  0xb8   : > { %2018 = vmatprep.subr.bf16.mxu1 %v4778_v17  ;;  %v5858_v17 = vsel %vm2833_vm1, %v2840_v14, %v2841_v7  ;;  %v4899_v14 = vld [vmem:[%s6482_s1 + $0x444] ss:$8 sps:$4 sm:$0xff]  }
  0xb9   : > { %1718 = vmatpush1.bf16.msra.mxu0 %v4773_v16  ;;  %v2101_v16 = vld [vmem:[%s5148_s12 + $0x8] sm:$0xe] }
  0xba   : > { %1719 = vmatprep.subr.bf16.mxu0 %v4781_v18  ;;  %v4835_v18 = vld [vmem:[%s6483_s2 + $0x2d0] ss:$8 sps:$4 sm:$0xff]  }
  0xbb   : > { %2019 = vmatpush1.bf16.msra.mxu1 %v4776_v19  ;;  %v2185_v19 = vor.u32 %v2184_v10, %v2181_v9  ;;  %v4891_v9 = vld [vmem:[%s6482_s1 + $0x450] ss:$8 sps:$4 sm:$0xff]  }
  0xbc   : > { %2020 = vmatprep.subr.bf16.mxu1 %v4784_v21  ;;  %v4844_v21 = vld [vmem:[%s6482_s1 + $0x3d0] ss:$8 sps:$4 sm:$0xff]  }
  0xbd   : > { %1720 = vmatpush2.bf16.msra.mxu0 %v4779_v20  ;;  %v2189_v20 = vrot.slane %v2187_v11, 2 }
  0xbe   : > { %1721 = vmatprep.subr.bf16.mxu0 %v4787_v23  ;;  %v4213_v23 = vcombine.low %v2101_v16, %v2103_v3  ;;  %v2838_v3 = vrot.slane %v5833_v62, 2  ;;  %v4888_v62 = vld [vmem:[%s6483_s2 + $0x390] ss:$8 sps:$4 sm:$0xff]   ;;  %v4897_v16 = vld [vmem:[%s6482_s1 + $0x440] ss:$8 sps:$4 sm:$0xff]  }
  0xbf   : > { %2021 = vmatpush1.bf16.msra.mxu1 %v4782_v25  ;;  %v4843_v25 = vld [vmem:[%s6483_s2 + $0x2c4] ss:$8 sps:$4 sm:$0xff]  }
  0xc0   : > { %2022 = vmatprep.subr.bf16.mxu1 %v4790_v27  ;;  %v4841_v27 = vld [vmem:[%s6483_s2 + $0x2c0] ss:$8 sps:$4 sm:$0xff]  }
  0xc1   : > { %1722 = vmatpush2.bf16.msra.mxu0 %v4785_v26  ;;  %v4849_v26 = vld [vmem:[%s6482_s1 + $0x3c4] ss:$8 sps:$4 sm:$0xff]  }
  0xc2   : > { %1723 = vmatprep.subr.bf16.mxu0 %v4793_v28  ;;  %v2190_v28 = vsel %vm2164_vm2, %v2185_v19, %v2189_v20  ;;  %v4902_v19 = vld [vmem:[%s6483_s2 + $0x374] ss:$8 sps:$4 sm:$0xff]  }
  0xc3   : > { %2023 = vmatpush1.bf16.msra.mxu1 %v4788_v29  ;;  %v4847_v29 = vld [vmem:[%s6482_s1 + $0x3c0] ss:$8 sps:$4 sm:$0xff]   ;;  %v4905_v20 = vld [vmem:[%s6482_s1 + $0x434] ss:$8 sps:$4 sm:$0xff]  }
  0xc4   : > { %2024 = vmatprep.subr.bf16.mxu1 %v4796_v31  ;;  %v2195_v31 = vshll.u32 %v4213_v23, 16 }
  0xc5   : > { %1724 = vmatpush2.bf16.msra.mxu0 %v4791_v30  ;;  %v2192_v30 = vshrl.u32 %v4213_v23, 16  ;;  %v4903_v23 = vld [vmem:[%s6482_s1 + $0x430] ss:$8 sps:$4 sm:$0xff]  }
  0xc6   : > { %1725 = vmatprep.subr.bf16.mxu0 %v4799_v32  ;;  %v4852_v32 = vld [vmem:[%s6482_s1 + $0x474] ss:$8 sps:$4 sm:$0xff]  }
  0xc7   : > { %2025 = vmatpush1.bf16.msra.mxu1 %v4794_v34  ;;  %v4850_v34 = vld [vmem:[%s6482_s1 + $0x470] ss:$8 sps:$4 sm:$0xff]  }
  0xc8   : > { %2026 = vmatprep.subr.bf16.mxu1 %v4802_v36  ;;  %v2194_v36 = vrot.slane %v2192_v30, 1  ;;  %v4906_v30 = vld [vmem:[%s6483_s2 + $0x360] ss:$8 sps:$4 sm:$0xff]  }
  0xc9   : > { %1726 = vmatpush2.bf16.msra.mxu0 %v4797_v35  ;;  %v4853_v35 = vld [vmem:[%s6482_s1 + $0x3b0] ss:$8 sps:$4 sm:$0xff]  }
  0xca   : > { %1727 = vmatprep.subr.bf16.mxu0 %v4805_v13  ;;  %v2197_v13 = vrot.slane %v2195_v31, 2  ;;  %v4909_v31 = vld [vmem:[%s6482_s1 + $0x420] ss:$8 sps:$4 sm:$0xff]  }
  0xcb   : > { %2027 = vmatpush2.bf16.msra.mxu1 %v4800_v37  ;;  %v2200_v37 = vshll.u32 %v5836_v1, 16  ;;  %v4364_v1 = vcombine.high %v2786_v63, %v5793_v50 }
  0xcc   : > { %2028 = vmatprep.subr.bf16.mxu1 %v4808_v39  ;;  %v4861_v39 = vld [vmem:[%s6482_s1 + $0x3a4] ss:$8 sps:$4 sm:$0xff]  }
  0xcd   : > { %1728 = vmatpush2.bf16.msra.mxu0 %v4803_v38  ;;  %v4858_v38 = vld [vmem:[%s6482_s1 + $0x464] ss:$8 sps:$4 sm:$0xff]   ;;  %v2837_v7 = vrot.slane %v4364_v1, 2  ;;  %v4948_v1 = vld [vmem:[%s6483_s2 + $0x474] ss:$8 sps:$4 sm:$0xff]  }
  0xce   : > { %1729 = vmatprep.subr.bf16.mxu0 %v4811_v41  ;;  %v4856_v41 = vld [vmem:[%s6482_s1 + $0x460] ss:$8 sps:$4 sm:$0xff]  }
  0xcf   : > { %2029 = vmatpush2.bf16.msra.mxu1 %v4806_v42  ;;  %v4859_v42 = vld [vmem:[%s6482_s1 + $0x3a0] ss:$8 sps:$4 sm:$0xff]   ;;  %v5983_v10 = vsel %vm2833_vm1, %v2837_v7, %v2838_v3  ;;  %v4936_v3 = vld [vmem:[%s6483_s2 + $0x410] ss:$8 sps:$4 sm:$0xff]  }
  0xd0   : > { %2030 = vmatprep.subr.bf16.mxu1 %v4814_v44  ;;  %v2202_v44 = vrot.slane %v2200_v37, 2  ;;  %v4943_v7 = vld [vmem:[%s6483_s2 + $0x400] ss:$8 sps:$4 sm:$0xff]  }
  0xd1   : > { %1730 = vmatpush2.bf16.msra.mxu0 %v4809_v43  ;;  %v2198_v43 = vor.u32 %v2197_v13, %v2194_v36 }
  0xd2   : > { %1731 = vmatprep.subr.bf16.mxu0 %v4817_v22  ;;  %v4866_v22 = vld [vmem:[%s6483_s2 + $0x3d4] ss:$8 sps:$4 sm:$0xff]  }
  0xd3   : > { %2031 = vmatpush2.bf16.msra.mxu1 %v4812_v46  ;;  %v4869_v46 = vld [vmem:[%s6482_s1 + $0x394] ss:$8 sps:$4 sm:$0xff]  }
  0xd4   : > { %2032 = vmatprep.subr.bf16.mxu1 %v4820_v48  ;;  %v5918_v48 = vsel %vm2164_vm2, %v2198_v43, %v2202_v44  ;;  %v4920_v44 = vld [vmem:[%s6483_s2 + $0x444] ss:$8 sps:$4 sm:$0xff]  }
  0xd5   : > { %1732 = vmatpush2.bf16.msra.mxu0 %v4815_v47  ;;  %v4864_v47 = vld [vmem:[%s6483_s2 + $0x3d0] ss:$8 sps:$4 sm:$0xff]  }
  0xd6   : > { %1733 = vmatprep.subr.bf16.mxu0 %v4823_v51  ;;  %v4867_v51 = vld [vmem:[%s6482_s1 + $0x390] ss:$8 sps:$4 sm:$0xff]  }
  0xd7   : > { %2033 = vmatpush2.bf16.msra.mxu1 %v4818_v53  ;;  %v4872_v53 = vld [vmem:[%s6483_s2 + $0x3c4] ss:$8 sps:$4 sm:$0xff]  }
  0xd8   : > { %2034 = vmatprep.subr.bf16.mxu1 %v4826_v54  ;;  %v4870_v54 = vld [vmem:[%s6483_s2 + $0x3c0] ss:$8 sps:$4 sm:$0xff]  }
  0xd9   : > { %1734 = vmatpush2.bf16.msra.mxu0 %v4821_v52  ;;  %v4875_v52 = vld [vmem:[%s6482_s1 + $0x384] ss:$8 sps:$4 sm:$0xff]  }
  0xda   : > { %2065 = vmatprep.subr.bf16.mxu0 %v4834_v57  ;;  %v4876_v57 = vld [vmem:[%s6483_s2 + $0x3b0] ss:$8 sps:$4 sm:$0xff]  }
  0xdb   : > { %2035 = vmatpush2.bf16.msra.mxu1 %v4824_v45  ;;  %v4879_v45 = vld [vmem:[%s6482_s1 + $0x370] ss:$8 sps:$4 sm:$0xff]  }
  0xdc   : > { %1736 = vmatmul.mubr.bf16.vlgmr.msra.gmra.mxu0 %v5823_v59  ;;  %2036 = vmatprep.subr.bf16.mxu1 %v4831_v60  ;;  %v4882_v60 = vld [vmem:[%s6483_s2 + $0x3a0] ss:$8 sps:$4 sm:$0xff]  }
  0xdd   : > { %2066 = vmatpush1.bf16.msra.mxu0 %v4832_v58  ;;  %2085 = vmatprep.mubr.bf16.mxu0 %v5079_v2  ;;  %v4884_v58 = vld [vmem:[%s6483_s2 + $0x3a4] ss:$8 sps:$4 sm:$0xff]  }
  0xde   : > { %2067 = vmatprep.subr.bf16.mxu0 %v4840_v61  ;;  %v5960_v61 = vcombine.low %v5812_v24, %v5812_v24  ;;  %v4890_v24 = vld [vmem:[%s6483_s2 + $0x394] ss:$8 sps:$4 sm:$0xff]  }
  0xdf   : > { %2037 = vmatpush2.bf16.msra.mxu1 %v4829_v5 }
  0xe0   : > { %2038 = vmatprep.subr.bf16.mxu1 %v4837_v8  ;;  %v2835_v5 = vrot.slane %v5960_v61, 2  ;;  %v2834_v8 = vrot.slane %v4363_v4, 2 }
  0xe1   : > { %2068 = vmatpush1.bf16.msra.mxu0 %v4838_v12  ;;  %v4896_v12 = vld [vmem:[%s6483_s2 + $0x384] ss:$8 sps:$4 sm:$0xff]  }
  0xe2   : > { %2389 = vmatprep.subr.bf16.mxu0 %v4846_v15  ;;  %v5986_v11 = vsel %vm2833_vm1, %v2834_v8, %v2835_v5  ;;  %v4894_v15 = vld [vmem:[%s6483_s2 + $0x380] ss:$8 sps:$4 sm:$0xff]   ;;  %v4946_v5 = vld [vmem:[%s6483_s2 + $0x470] ss:$8 sps:$4 sm:$0xff]  }
  0xe3   : > { %2039 = vmatpush2.bf16.msra.mxu1 %v4835_v18  ;;  %v611_v18 = vpop.f32.mrf.mxu1  ;;  %v4952_v8 = vld [vmem:[%s6483_s2 + $0x460] ss:$8 sps:$4 sm:$0xff]  }
  0xe4   : > { %4174 = vmatmul.mubr.msk.bf16.vlgmr.msra.gmra.mxu0 %vm530_vm0, %v5656_v0  ;;  %2040 = vmatprep.subr.bf16.mxu1 %v4843_v25  ;;  %v4855_v0 = vld [vmem:[%s6482_s1 + $0x3b4] ss:$8 sps:$4 sm:$0xff]  }
  0xe5   : > { %2390 = vmatpush1.bf16.msra.mxu0 %v4844_v21  ;;  %2421 = vmatprep.mubr.bf16.mxu0 %v2190_v28  ;;  %v4900_v21 = vld [vmem:[%s6483_s2 + $0x370] ss:$8 sps:$4 sm:$0xff]   ;;  %v613_v25 = vpop.f32.mrf.mxu1 }
  0xe6   : > { %2391 = vmatprep.subr.bf16.mxu0 %v4849_v26  ;;  %v4908_v26 = vld [vmem:[%s6483_s2 + $0x364] ss:$8 sps:$4 sm:$0xff]  }
  0xe7   : > { %2041 = vmatpush2.bf16.msra.mxu1 %v4841_v27  ;;  %v4911_v27 = vld [vmem:[%s6482_s1 + $0x424] ss:$8 sps:$4 sm:$0xff]  }
  0xe8   : > { %2444 = vmatprep.subr.bf16.mxu1 %v4852_v32  ;;  %v615_v32 = vpop.f32.mrf.mxu1 }
  0xe9   : > { %2392 = vmatpush1.bf16.msra.mxu0 %v4847_v29 }
  0xea   : > { %2393 = vmatprep.subr.bf16.mxu0 %v4855_v0  ;;  %2043 = vmatmul.mubr.bf16.vlgmr.msra.gmra.mxu1 %v5823_v59  ;;  %v4887_v59 = vld [vmem:[%s6482_s1 + $0x364] ss:$8 sps:$4 sm:$0xff]  }
  0xeb   : > { %2445 = vmatpush1.bf16.msra.mxu1 %v4850_v34  ;;  %2464 = vmatprep.mubr.bf16.mxu1 %v5079_v2  ;;  %v4914_v34 = vld [vmem:[%s6483_s2 + $0x454] ss:$8 sps:$4 sm:$0xff]  }
  0xec   : > { %2446 = vmatprep.subr.bf16.mxu1 %v4858_v38  ;;  %v4912_v38 = vld [vmem:[%s6483_s2 + $0x450] ss:$8 sps:$4 sm:$0xff]  }
  0xed   : > { %2394 = vmatpush1.bf16.msra.mxu0 %v4853_v35  ;;  %v4917_v35 = vld [vmem:[%s6482_s1 + $0x414] ss:$8 sps:$4 sm:$0xff]  }
  0xee   : > { %2395 = vmatprep.subr.bf16.mxu0 %v4861_v39  ;;  %v4915_v39 = vld [vmem:[%s6482_s1 + $0x410] ss:$8 sps:$4 sm:$0xff]  }
  0xef   : > { %2447 = vmatpush1.bf16.msra.mxu1 %v4856_v41  ;;  %v4211_v41 = vcombine.low %v5790_v49, %v5793_v50  ;;  %v4921_v49 = vld [vmem:[%s6482_s1 + $0x400] ss:$8 sps:$4 sm:$0xff]  }
  0xf0   : > { %2696 = vmatprep.subr.bf16.mxu1 %v4866_v22  ;;  %v4923_v22 = vld [vmem:[%s6482_s1 + $0x404] ss:$8 sps:$4 sm:$0xff]  }
  0xf1   : > { %2396 = vmatpush1.bf16.msra.mxu0 %v4859_v42  ;;  %v617_v42 = vpop.f32.mrf.mxu1  ;;  %v2166_v50 = vshrl.u32 %v4211_v41, 16 }
  0xf2   : > { %2397 = vmatprep.subr.bf16.mxu0 %v4869_v46  ;;  %4253 = vmatmul.mubr.msk.bf16.vlgmr.msra.gmra.mxu1 %vm530_vm0, %v5918_v48 }
  0xf3   : > { %2697 = vmatpush1.bf16.msra.mxu1 %v4864_v47  ;;  %2728 = vmatprep.mubr.bf16.mxu1 %v2190_v28  ;;  %v4918_v47 = vld [vmem:[%s6483_s2 + $0x440] ss:$8 sps:$4 sm:$0xff]  }
  0xf4   : > { %2698 = vmatprep.subr.bf16.mxu1 %v4872_v53  ;;  %v4926_v53 = vld [vmem:[%s6483_s2 + $0x434] ss:$8 sps:$4 sm:$0xff]  }
  0xf5   : > { %2398 = vmatpush1.bf16.msra.mxu0 %v4867_v51  ;;  %v2169_v51 = vshll.u32 %v4211_v41, 16  ;;  %v4994_v41 = vld [vmem:[%s6482_s1 + $0x494] ss:$8 sps:$4 sm:$0xff]  }
  0xf6   : > { %2399 = vmatprep.subr.bf16.mxu0 %v4875_v52  ;;  %v4929_v52 = vld [vmem:[%s6482_s1 + $0x3f4] ss:$8 sps:$4 sm:$0xff]  }
  0xf7   : > { %2699 = vmatpush1.bf16.msra.mxu1 %v4870_v54  ;;  %v4924_v54 = vld [vmem:[%s6483_s2 + $0x430] ss:$8 sps:$4 sm:$0xff]  }
  0xf8   : > { %2700 = vmatprep.subr.bf16.mxu1 %v4878_v33  ;;  %v2168_v33 = vrot.slane %v2166_v50, 1  ;;  %v5006_v50 = vld [vmem:[%s6482_s1 + $0x574] ss:$8 sps:$4 sm:$0xff]  }
  0xf9   : > { %2400 = vmatpush1.bf16.msra.mxu0 %v4873_v55  ;;  %v4927_v55 = vld [vmem:[%s6482_s1 + $0x3f0] ss:$8 sps:$4 sm:$0xff]  }
  0xfa   : > { %2401 = vmatprep.subr.bf16.mxu0 %v4881_v56  ;;  %v2171_v56 = vrot.slane %v2169_v51, 2  ;;  %v5001_v51 = vld [vmem:[%s6483_s2 + $0x4b0] ss:$8 sps:$4 sm:$0xff]  }
  0xfb   : > { %2701 = vmatpush1.bf16.msra.mxu1 %v4876_v57  ;;  %v2174_v57 = vshll.u32 %v5960_v61, 16 }
  0xfc   : > { %2702 = vmatprep.subr.bf16.mxu1 %v4884_v58  ;;  %v4935_v58 = vld [vmem:[%s6482_s1 + $0x3e4] ss:$8 sps:$4 sm:$0xff]   ;;  %v2172_v61 = vor.u32 %v2171_v56, %v2168_v33  ;;  %v5010_v33 = vld [vmem:[%s6482_s1 + $0x560] ss:$8 sps:$4 sm:$0xff]   ;;  %v5015_v56 = vld [vmem:[%s6483_s2 + $0x494] ss:$8 sps:$4 sm:$0xff]  }
  0xfd   : > { %2402 = vmatpush1.bf16.msra.mxu0 %v4879_v45  ;;  %v4932_v45 = vld [vmem:[%s6483_s2 + $0x424] ss:$8 sps:$4 sm:$0xff]   ;;  %v2176_v63 = vrot.slane %v2174_v57, 2  ;;  %v5018_v57 = vld [vmem:[%s6482_s1 + $0x554] ss:$8 sps:$4 sm:$0xff]  }
  0xfe   : > { %2403 = vmatprep.subr.bf16.mxu0 %v4887_v59  ;;  %v4930_v59 = vld [vmem:[%s6483_s2 + $0x420] ss:$8 sps:$4 sm:$0xff]  }
  0xff   : > { %2703 = vmatpush1.bf16.msra.mxu1 %v4882_v60  ;;  %v4933_v60 = vld [vmem:[%s6482_s1 + $0x3e0] ss:$8 sps:$4 sm:$0xff]   ;;  %v2177_v4 = vsel %vm2164_vm2, %v2172_v61, %v2176_v63 }
 0x100   : > { %2704 = vmatprep.subr.bf16.mxu1 %v4890_v24  ;;  %v4945_v24 = vld [vmem:[%s6483_s2 + $0x404] ss:$8 sps:$4 sm:$0xff]   ;;  %v5019_v61 = vld [vmem:[%s6483_s2 + $0x480] ss:$8 sps:$4 sm:$0xff]  }
 0x101   : > { %2404 = vmatpush1.bf16.msra.mxu0 %v4885_v40  ;;  %v4938_v40 = vld [vmem:[%s6483_s2 + $0x414] ss:$8 sps:$4 sm:$0xff]   ;;  %v5022_v63 = vld [vmem:[%s6482_s1 + $0x540] ss:$8 sps:$4 sm:$0xff]  }
 0x102   : > { %2405 = vmatprep.subr.bf16.mxu0 %v4893_v6  ;;  %v4954_v6 = vld [vmem:[%s6483_s2 + $0x464] ss:$8 sps:$4 sm:$0xff]  }
 0x103   : > { %2705 = vmatpush1.bf16.msra.mxu1 %v4888_v62  ;;  %v4951_v62 = vld [vmem:[%s6483_s2 + $0x3f4] ss:$8 sps:$4 sm:$0xff]  }
 0x104   : > { %2706 = vmatprep.subr.bf16.mxu1 %v4896_v12  ;;  %v4949_v12 = vld [vmem:[%s6483_s2 + $0x3f0] ss:$8 sps:$4 sm:$0xff]  }
 0x105   : > { %2406 = vmatpush2.bf16.msra.mxu0 %v4891_v9  ;;  %v4960_v9 = vld [vmem:[%s6482_s1 + $0x4f4] ss:$8 sps:$4 sm:$0xff]  }
 0x106   : > { %2407 = vmatprep.subr.bf16.mxu0 %v4899_v14  ;;  %v4958_v14 = vld [vmem:[%s6482_s1 + $0x4f0] ss:$8 sps:$4 sm:$0xff]  }
 0x107   : > { %2707 = vmatpush1.bf16.msra.mxu1 %v4894_v15  ;;  %v4957_v15 = vld [vmem:[%s6483_s2 + $0x3e4] ss:$8 sps:$4 sm:$0xff]  }
 0x108   : > { %2708 = vmatprep.subr.bf16.mxu1 %v4902_v19  ;;  %v4961_v19 = vld [vmem:[%s6482_s1 + $0x4e0] ss:$8 sps:$4 sm:$0xff]  }
 0x109   : > { %2408 = vmatpush2.bf16.msra.mxu0 %v4897_v16  ;;  %v4963_v16 = vld [vmem:[%s6482_s1 + $0x4e4] ss:$8 sps:$4 sm:$0xff]  }
 0x10a   : > { %2409 = vmatprep.subr.bf16.mxu0 %v4905_v20  ;;  %v4966_v20 = vld [vmem:[%s6482_s1 + $0x594] ss:$8 sps:$4 sm:$0xff]  }
 0x10b   : > { %2709 = vmatpush1.bf16.msra.mxu1 %v4900_v21  ;;  %v4964_v21 = vld [vmem:[%s6482_s1 + $0x590] ss:$8 sps:$4 sm:$0xff]  }
 0x10c   : > { %v568_v28 = vpop.f32.mrf.mxu0  ;;  %2710 = vmatprep.subr.bf16.mxu1 %v4908_v26  ;;  %v4975_v26 = vld [vmem:[%s6482_s1 + $0x4c4] ss:$8 sps:$4 sm:$0xff]  }
 0x10d   : > { %v6018_v29 = vadd.f32 %v611_v18, %v568_v28  ;;  %2410 = vmatpush2.bf16.msra.mxu0 %v4903_v23  ;;  %v4955_v18 = vld [vmem:[%s6483_s2 + $0x3e0] ss:$8 sps:$4 sm:$0xff]   ;;  %v4967_v23 = vld [vmem:[%s6482_s1 + $0x4d0] ss:$8 sps:$4 sm:$0xff]  }
 0x10e   : > { %v570_v0 = vpop.f32.mrf.mxu0  ;;  %2411 = vmatprep.subr.bf16.mxu0 %v4911_v27  ;;  %v4970_v27 = vld [vmem:[%s6482_s1 + $0x580] ss:$8 sps:$4 sm:$0xff]  }
 0x10f   : > { %v6032_v36 = vadd.f32 %v613_v25, %v570_v0  ;;  %2711 = vmatpush1.bf16.msra.mxu1 %v4906_v30  ;;  %v4972_v25 = vld [vmem:[%s6482_s1 + $0x584] ss:$8 sps:$4 sm:$0xff]   ;;  %v4973_v28 = vld [vmem:[%s6482_s1 + $0x4c0] ss:$8 sps:$4 sm:$0xff]   ;;  %v4979_v30 = vld [vmem:[%s6483_s2 + $0x4f4] ss:$8 sps:$4 sm:$0xff]  }
 0x110   : > { %v572_v13 = vpop.f32.mrf.mxu0  ;;  %2712 = vmatprep.subr.bf16.mxu1 %v4914_v34  ;;  %v4980_v0 = vld [vmem:[%s6482_s1 + $0x4b0] ss:$8 sps:$4 sm:$0xff]   ;;  %v4985_v34 = vld [vmem:[%s6483_s2 + $0x4e4] ss:$8 sps:$4 sm:$0xff]  }
 0x111   : > { %v6034_v37 = vadd.f32 %v615_v32, %v572_v13  ;;  %2412 = vmatpush2.bf16.msra.mxu0 %v4909_v31  ;;  %v4982_v31 = vld [vmem:[%s6482_s1 + $0x4b4] ss:$8 sps:$4 sm:$0xff]   ;;  %v4977_v32 = vld [vmem:[%s6483_s2 + $0x4f0] ss:$8 sps:$4 sm:$0xff]   ;;  %v4983_v13 = vld [vmem:[%s6483_s2 + $0x4e0] ss:$8 sps:$4 sm:$0xff]  }
 0x112   : > { %v574_v43 = vpop.f32.mrf.mxu0  ;;  %2413 = vmatprep.subr.bf16.mxu0 %v4917_v35  ;;  %v4988_v35 = vld [vmem:[%s6482_s1 + $0x4a4] ss:$8 sps:$4 sm:$0xff]  }
 0x113   : > { %v6050_v46 = vadd.f32 %v617_v42, %v574_v43  ;;  %2713 = vmatpush2.bf16.msra.mxu1 %v4912_v38  ;;  %v4986_v38 = vld [vmem:[%s6482_s1 + $0x4a0] ss:$8 sps:$4 sm:$0xff]   ;;  %v4989_v42 = vld [vmem:[%s6483_s2 + $0x4d0] ss:$8 sps:$4 sm:$0xff]  }
 0x114   : > { %2714 = vmatprep.subr.bf16.mxu1 %v4920_v44  ;;  %v4992_v43 = vld [vmem:[%s6482_s1 + $0x490] ss:$8 sps:$4 sm:$0xff]   ;;  %v4997_v44 = vld [vmem:[%s6483_s2 + $0x4c4] ss:$8 sps:$4 sm:$0xff]  }
 0x115   : > { %2414 = vmatpush2.bf16.msra.mxu0 %v4915_v39  ;;  %v4991_v39 = vld [vmem:[%s6483_s2 + $0x4d4] ss:$8 sps:$4 sm:$0xff]  }
 0x116   : > { %2415 = vmatprep.subr.bf16.mxu0 %v4923_v22  ;;  %v4995_v22 = vld [vmem:[%s6483_s2 + $0x4c0] ss:$8 sps:$4 sm:$0xff]  }
 0x117   : > { %2715 = vmatpush2.bf16.msra.mxu1 %v4918_v47  ;;  %v4998_v47 = vld [vmem:[%s6482_s1 + $0x480] ss:$8 sps:$4 sm:$0xff]  }
 0x118   : > { %2716 = vmatprep.subr.bf16.mxu1 %v4926_v53  ;;  %v5004_v53 = vld [vmem:[%s6482_s1 + $0x570] ss:$8 sps:$4 sm:$0xff]  }
 0x119   : > { %2416 = vmatpush2.bf16.msra.mxu0 %v4921_v49  ;;  %v5003_v49 = vld [vmem:[%s6483_s2 + $0x4b4] ss:$8 sps:$4 sm:$0xff]  }
 0x11a   : > { %2417 = vmatprep.subr.bf16.mxu0 %v4929_v52  ;;  %v5009_v52 = vld [vmem:[%s6483_s2 + $0x4a4] ss:$8 sps:$4 sm:$0xff]  }
 0x11b   : > { %2717 = vmatpush2.bf16.msra.mxu1 %v4924_v54  ;;  %v5012_v54 = vld [vmem:[%s6482_s1 + $0x564] ss:$8 sps:$4 sm:$0xff]  }
 0x11c   : > { %2718 = vmatprep.subr.bf16.mxu1 %v4932_v45  ;;  %v5013_v45 = vld [vmem:[%s6483_s2 + $0x490] ss:$8 sps:$4 sm:$0xff]  }
 0x11d   : > { %2418 = vmatpush2.bf16.msra.mxu0 %v4927_v55  ;;  %v5007_v55 = vld [vmem:[%s6483_s2 + $0x4a0] ss:$8 sps:$4 sm:$0xff]  }
 0x11e   : > { %2419 = vmatprep.subr.bf16.mxu0 %v4935_v58  ;;  %v5016_v58 = vld [vmem:[%s6482_s1 + $0x550] ss:$8 sps:$4 sm:$0xff]  }
 0x11f   : > { %2719 = vmatpush2.bf16.msra.mxu1 %v4930_v59  ;;  %v5021_v59 = vld [vmem:[%s6483_s2 + $0x484] ss:$8 sps:$4 sm:$0xff]  }
 0x120   : > { %2720 = vmatprep.subr.bf16.mxu1 %v4938_v40  ;;  %v5027_v40 = vld [vmem:[%s6483_s2 + $0x574] ss:$8 sps:$4 sm:$0xff]  }
 0x121   : > { %2420 = vmatpush2.bf16.msra.mxu0 %v4933_v60  ;;  %v5024_v60 = vld [vmem:[%s6482_s1 + $0x544] ss:$8 sps:$4 sm:$0xff]  }
 0x122   : > { %2751 = vmatprep.subr.bf16.mxu0 %v4948_v1  ;;  %v5030_v1 = vld [vmem:[%s6482_s1 + $0x534] ss:$8 sps:$4 sm:$0xff]  }
 0x123   : > { %2721 = vmatpush2.bf16.msra.mxu1 %v4936_v3  ;;  %v5025_v3 = vld [vmem:[%s6483_s2 + $0x570] ss:$8 sps:$4 sm:$0xff]  }
 0x124   : > { %2422 = vmatmul.mubr.bf16.vlgmr.msra.gmra.mxu0 %v2177_v4  ;;  %2722 = vmatprep.subr.bf16.mxu1 %v4945_v24  ;;  %v5036_v24 = vld [vmem:[%s6482_s1 + $0x524] ss:$8 sps:$4 sm:$0xff]  }
 0x125   : > { %2752 = vmatpush1.bf16.msra.mxu0 %v4946_v5  ;;  %2771 = vmatprep.mubr.bf16.mxu0 %v5079_v2  ;;  %v5033_v5 = vld [vmem:[%s6483_s2 + $0x564] ss:$8 sps:$4 sm:$0xff]  }
 0x126   : > { %2753 = vmatprep.subr.bf16.mxu0 %v4954_v6  ;;  %v5031_v6 = vld [vmem:[%s6483_s2 + $0x560] ss:$8 sps:$4 sm:$0xff]  }
 0x127   : > { %2723 = vmatpush2.bf16.msra.mxu1 %v4943_v7  ;;  %v5034_v7 = vld [vmem:[%s6482_s1 + $0x520] ss:$8 sps:$4 sm:$0xff]  }
 0x128   : > { %2724 = vmatprep.subr.bf16.mxu1 %v4951_v62  ;;  %v5042_v62 = vld [vmem:[%s6482_s1 + $0x514] ss:$8 sps:$4 sm:$0xff]  }
 0x129   : > { %2754 = vmatpush1.bf16.msra.mxu0 %v4952_v8  ;;  %v5039_v8 = vld [vmem:[%s6483_s2 + $0x554] ss:$8 sps:$4 sm:$0xff]  }
 0x12a   : > { %3028 = vmatprep.subr.bf16.mxu0 %v4960_v9  ;;  %v5037_v9 = vld [vmem:[%s6483_s2 + $0x550] ss:$8 sps:$4 sm:$0xff]  }
 0x12b   : > { %2725 = vmatpush2.bf16.msra.mxu1 %v4949_v12  ;;  %v5040_v12 = vld [vmem:[%s6482_s1 + $0x510] ss:$8 sps:$4 sm:$0xff]  }
 0x12c   : > { %4326 = vmatmul.mubr.msk.bf16.vlgmr.msra.gmra.mxu0 %vm530_vm0, %v5918_v48  ;;  %2726 = vmatprep.subr.bf16.mxu1 %v4957_v15  ;;  %v4969_v48 = vld [vmem:[%s6482_s1 + $0x4d4] ss:$8 sps:$4 sm:$0xff]   ;;  %v5048_v15 = vld [vmem:[%s6482_s1 + $0x504] ss:$8 sps:$4 sm:$0xff]  }
 0x12d   : > { %3029 = vmatpush1.bf16.msra.mxu0 %v4958_v14  ;;  %3060 = vmatprep.mubr.bf16.mxu0 %v5983_v10  ;;  %v5045_v14 = vld [vmem:[%s6483_s2 + $0x544] ss:$8 sps:$4 sm:$0xff]  }
 0x12e   : > { %3030 = vmatprep.subr.bf16.mxu0 %v4963_v16  ;;  %v5043_v16 = vld [vmem:[%s6483_s2 + $0x540] ss:$8 sps:$4 sm:$0xff]  }
 0x12f   : > { %2727 = vmatpush2.bf16.msra.mxu1 %v4955_v18  ;;  %v5046_v18 = vld [vmem:[%s6482_s1 + $0x500] ss:$8 sps:$4 sm:$0xff]  }
 0x130   : > { %3083 = vmatprep.subr.bf16.mxu1 %v4966_v20  ;;  %v5059_v20 = vld [vmem:[%s6483_s2 + $0x594] ss:$8 sps:$4 sm:$0xff]  }
 0x131   : > { %3031 = vmatpush1.bf16.msra.mxu0 %v4961_v19  ;;  %v5051_v19 = vld [vmem:[%s6483_s2 + $0x534] ss:$8 sps:$4 sm:$0xff]  }
 0x132   : > { %3032 = vmatprep.subr.bf16.mxu0 %v4969_v48  ;;  %2729 = vmatmul.mubr.bf16.vlgmr.msra.gmra.mxu1 %v2177_v4  ;;  %v5028_v4 = vld [vmem:[%s6482_s1 + $0x530] ss:$8 sps:$4 sm:$0xff]  }
 0x133   : > { %3084 = vmatpush1.bf16.msra.mxu1 %v4964_v21  ;;  %3103 = vmatprep.mubr.bf16.mxu1 %v5079_v2  ;;  %v5049_v48 = vld [vmem:[%s6483_s2 + $0x530] ss:$8 sps:$4 sm:$0xff]  }
 0x134   : > { %3085 = vmatprep.subr.bf16.mxu1 %v4972_v25  ;;  %v5057_v21 = vld [vmem:[%s6483_s2 + $0x590] ss:$8 sps:$4 sm:$0xff]   ;;  %v5065_v25 = vld [vmem:[%s6483_s2 + $0x584] ss:$8 sps:$4 sm:$0xff]  }
 0x135   : > { %3033 = vmatpush1.bf16.msra.mxu0 %v4967_v23  ;;  %v5056_v23 = vld [vmem:[%s6483_s2 + $0x524] ss:$8 sps:$4 sm:$0xff]  }
 0x136   : > { %3034 = vmatprep.subr.bf16.mxu0 %v4975_v26  ;;  %v5054_v26 = vld [vmem:[%s6483_s2 + $0x520] ss:$8 sps:$4 sm:$0xff]  }
 0x137   : > { %3086 = vmatpush1.bf16.msra.mxu1 %v4970_v27  ;;  %v5063_v27 = vld [vmem:[%s6483_s2 + $0x580] ss:$8 sps:$4 sm:$0xff]  }
 0x138   : > { %3335 = vmatprep.subr.bf16.mxu1 %v4979_v30  ;;  %v5060_v30 = vld [vmem:[%s6483_s2 + $0x510] ss:$8 sps:$4 sm:$0xff]  }
 0x139   : > { %3035 = vmatpush1.bf16.msra.mxu0 %v4973_v28  ;;  %v5062_v28 = vld [vmem:[%s6483_s2 + $0x514] ss:$8 sps:$4 sm:$0xff]  }
 0x13a   : > { %3036 = vmatprep.subr.bf16.mxu0 %v4982_v31  ;;  %4402 = vmatmul.mubr.msk.bf16.vlgmr.msra.gmra.mxu1 %vm530_vm0, %v5858_v17  ;;  %v5068_v31 = vld [vmem:[%s6483_s2 + $0x504] ss:$8 sps:$4 sm:$0xff]  }
 0x13b   : > { %3336 = vmatpush1.bf16.msra.mxu1 %v4977_v32  ;;  %3367 = vmatprep.mubr.bf16.mxu1 %v5983_v10  ;;  %v5000_v10 = vld [vmem:[%s6482_s1 + $0x484] ss:$8 sps:$4 sm:$0xff]   ;;  %v5066_v32 = vld [vmem:[%s6483_s2 + $0x500] ss:$8 sps:$4 sm:$0xff]  }
 0x13c   : > { %3337 = vmatprep.subr.bf16.mxu1 %v4985_v34 }
 0x13d   : > { %3037 = vmatpush1.bf16.msra.mxu0 %v4980_v0  ;;  %v847_v0 = vpop.f32.mrf.mxu1 }
 0x13e   : > { %3038 = vmatprep.subr.bf16.mxu0 %v4988_v35 }
 0x13f   : > { %3338 = vmatpush1.bf16.msra.mxu1 %v4983_v13  ;;  %v849_v35 = vpop.f32.mrf.mxu1 }
 0x140   : > { %3339 = vmatprep.subr.bf16.mxu1 %v4991_v39 }
 0x141   : > { %3039 = vmatpush1.bf16.msra.mxu0 %v4986_v38  ;;  %v851_v38 = vpop.f32.mrf.mxu1 }
 0x142   : > { %3040 = vmatprep.subr.bf16.mxu0 %v4994_v41 }
 0x143   : > { %3340 = vmatpush1.bf16.msra.mxu1 %v4989_v42 }
 0x144   : > { %3341 = vmatprep.subr.bf16.mxu1 %v4997_v44 }
 0x145   : > { %3041 = vmatpush1.bf16.msra.mxu0 %v4992_v43 }
 0x146   : > { %3042 = vmatprep.subr.bf16.mxu0 %v5000_v10 }
 0x147   : > { %3342 = vmatpush1.bf16.msra.mxu1 %v4995_v22 }
 0x148   : > { %3343 = vmatprep.subr.bf16.mxu1 %v5003_v49 }
 0x149   : > { %3043 = vmatpush1.bf16.msra.mxu0 %v4998_v47 }
 0x14a   : > { %3044 = vmatprep.subr.bf16.mxu0 %v5006_v50 }
 0x14b   : > { %3344 = vmatpush1.bf16.msra.mxu1 %v5001_v51 }
 0x14c   : > { %3345 = vmatprep.subr.bf16.mxu1 %v5009_v52 }
 0x14d   : > { %3045 = vmatpush2.bf16.msra.mxu0 %v5004_v53 }
 0x14e   : > { %3046 = vmatprep.subr.bf16.mxu0 %v5012_v54 }
 0x14f   : > { %3346 = vmatpush1.bf16.msra.mxu1 %v5007_v55 }
 0x150   : > { %3347 = vmatprep.subr.bf16.mxu1 %v5015_v56 }
 0x151   : > { %3047 = vmatpush2.bf16.msra.mxu0 %v5010_v33 }
 0x152   : > { %3048 = vmatprep.subr.bf16.mxu0 %v5018_v57 }
 0x153   : > { %3348 = vmatpush1.bf16.msra.mxu1 %v5013_v45 }
 0x154   : > { %3349 = vmatprep.subr.bf16.mxu1 %v5021_v59 }
 0x155   : > { %3049 = vmatpush2.bf16.msra.mxu0 %v5016_v58 }
 0x156   : > { %3050 = vmatprep.subr.bf16.mxu0 %v5024_v60 }
 0x157   : > { %3350 = vmatpush1.bf16.msra.mxu1 %v5019_v61 }
 0x158   : > { %3351 = vmatprep.subr.bf16.mxu1 %v5027_v40 }
 0x159   : > { %3051 = vmatpush2.bf16.msra.mxu0 %v5022_v63 }
 0x15a   : > { %3052 = vmatprep.subr.bf16.mxu0 %v5030_v1 }
 0x15b   : > { %3352 = vmatpush2.bf16.msra.mxu1 %v5025_v3 }
 0x15c   : > { %3353 = vmatprep.subr.bf16.mxu1 %v5033_v5 }
 0x15d   : > { %3053 = vmatpush2.bf16.msra.mxu0 %v5028_v4 }
 0x15e   : > { %3054 = vmatprep.subr.bf16.mxu0 %v5036_v24 }
 0x15f   : > { %3354 = vmatpush2.bf16.msra.mxu1 %v5031_v6 }
 0x160   : > { %3355 = vmatprep.subr.bf16.mxu1 %v5039_v8 }
 0x161   : > { %3055 = vmatpush2.bf16.msra.mxu0 %v5034_v7 }
 0x162   : > { %3056 = vmatprep.subr.bf16.mxu0 %v5042_v62 }
 0x163   : > { %3356 = vmatpush2.bf16.msra.mxu1 %v5037_v9 }
 0x164   : > { %3357 = vmatprep.subr.bf16.mxu1 %v5045_v14 }
 0x165   : > { %3057 = vmatpush2.bf16.msra.mxu0 %v5040_v12 }
 0x166   : > { %3058 = vmatprep.subr.bf16.mxu0 %v5048_v15 }
 0x167   : > { %3358 = vmatpush2.bf16.msra.mxu1 %v5043_v16 }
 0x168   : > { %3359 = vmatprep.subr.bf16.mxu1 %v5051_v19 }
 0x169   : > { %3059 = vmatpush2.bf16.msra.mxu0 %v5046_v18 }
 0x16a   : > { %3390 = vmatprep.subr.bf16.mxu0 %v5059_v20 }
 0x16b   : > { %3360 = vmatpush2.bf16.msra.mxu1 %v5049_v48 }
 0x16c   : > { %3061 = vmatmul.mubr.bf16.vlgmr.msra.gmra.mxu0 %v5986_v11  ;;  %3361 = vmatprep.subr.bf16.mxu1 %v5056_v23 }
 0x16d   : > { %3391 = vmatpush1.bf16.msra.mxu0 %v5057_v21  ;;  %3410 = vmatprep.mubr.bf16.mxu0 %v5079_v2  ;;  %v6349_v2 = vpop.f32.mrf.mxu0 }
 0x16e   : > { %3392 = vmatprep.subr.bf16.mxu0 %v5065_v25 }
 0x16f   : > { %3362 = vmatpush2.bf16.msra.mxu1 %v5054_v26  ;;  %v6351_v34 = vpop.f32.mrf.mxu0 }
 0x170   : > { %3363 = vmatprep.subr.bf16.mxu1 %v5062_v28 }
 0x171   : > { %3393 = vmatpush1.bf16.msra.mxu0 %v5063_v27  ;;  %v6353_v13 = vpop.f32.mrf.mxu0 }
 0x173   : > { %3364 = vmatpush2.bf16.msra.mxu1 %v5060_v30  ;;  %v6355_v39 = vpop.f32.mrf.mxu0  ;;  %v3438_v30 = vlaneseq }
 0x174   : > { %4475 = vmatmul.mubr.msk.bf16.vlgmr.msra.gmra.mxu0 %vm530_vm0, %v5858_v17  ;;  %3365 = vmatprep.subr.bf16.mxu1 %v5068_v31  ;;  %v853_v17 = vpop.f32.mrf.mxu1 }
 0x175   : > { %v1150_v41 = vpop.f32.mrf.mxu0 }
 0x176   : > { %v1193_v42 = vpop.f32.mrf.mxu1 }
 0x177   : > { %3366 = vmatpush2.bf16.msra.mxu1 %v5066_v32  ;;  %v1152_v43 = vpop.f32.mrf.mxu0 }
 0x178   : > { %v1195_v44 = vpop.f32.mrf.mxu1 }
 0x179   : > { %v1154_v10 = vpop.f32.mrf.mxu0 }
 0x17a   : > { %3368 = vmatmul.mubr.bf16.vlgmr.msra.gmra.mxu1 %v5986_v11  ;;  %v1197_v22 = vpop.f32.mrf.mxu1 }
 0x17b   : > { %v1156_v47 = vpop.f32.mrf.mxu0 }
 0x17c   : > { %v1199_v11 = vpop.f32.mrf.mxu1 }
 0x17d   : > { %v6357_v49 = vpop.f32.mrf.mxu0 }
 0x17e   : > { %v1416_v50 = vpop.f32.mrf.mxu1 }
 0x17f   : > { %v6359_v51 = vpop.f32.mrf.mxu0 }
 0x180   : > { %v1418_v53 = vpop.f32.mrf.mxu1 }
 0x181   : > { %v6361_v52 = vpop.f32.mrf.mxu0 }
 0x182   : > { %v1420_v54 = vpop.f32.mrf.mxu1 }
 0x183   : > { %v6363_v55 = vpop.f32.mrf.mxu0 }
 0x184   : > { %v1422_v33 = vpop.f32.mrf.mxu1 }
 0x186   : > { %v1780_v57 = vpop.f32.mrf.mxu1 }
 0x188   : > { %v1782_v58 = vpop.f32.mrf.mxu1 }
 0x18a   : > { %v1784_v60 = vpop.f32.mrf.mxu1 }
 0x18c   : > { %v1786_v63 = vpop.f32.mrf.mxu1 }
 0x19c   : > { %v1737_v56 = vpop.f32.mrf.mxu0 }
 0x19e   : > { %v1739_v45 = vpop.f32.mrf.mxu0 }
 0x1a0   : > { %v1741_v59 = vpop.f32.mrf.mxu0 }
 0x1a2   : > { %v1743_v61 = vpop.f32.mrf.mxu0 }
 0x1a4   : > { %v2087_v40 = vpop.f32.mrf.mxu0 }
 0x1a6   : > { %v2089_v3 = vpop.f32.mrf.mxu0 }
 0x1a8   : > { %v2091_v5 = vpop.f32.mrf.mxu0 }
 0x1aa   : > { %v2044_v1 = vpop.f32.mrf.mxu1  ;;  %v6365_v6 = vpop.f32.mrf.mxu0 }
 0x1ab   : > { %6486 = vst [vmem:[#allocation2_spill] sm:$0xff] %v6365_v6 }
 0x1ac   : > { %v2046_v4 = vpop.f32.mrf.mxu1 }
 0x1ae   : > { %v2048_v24 = vpop.f32.mrf.mxu1 }
 0x1b0   : > { %v6367_v7 = vpop.f32.mrf.mxu1 }
 0x1b1   : > { %6487 = vst [vmem:[#allocation3_spill] sm:$0xff] %v6367_v7  ;;  %v6396_v7 = vshrl.u32 %v3438_v30, 7 }
 0x1b2   : > { %v6371_v62 = vpop.f32.mrf.mxu1 }
 0x1b3   : > { %6489 = vst [vmem:[#allocation5_spill] sm:$0xff] %v6371_v62 }
 0x1b4   : > { %v2468_v12 = vpop.f32.mrf.mxu1 }
 0x1b6   : > { %v6377_v15 = vpop.f32.mrf.mxu1 }
 0x1b7   : > { %6492 = vst [vmem:[#allocation8_spill] sm:$0xff] %v6377_v15  ;;  %v848_v15 = vadd.f32 %v847_v0, %v6018_v29 }
 0x1b8   : > { %v6381_v18 = vpop.f32.mrf.mxu1 }
 0x1b9   : > { %6494 = vst [vmem:[#allocation10_spill] sm:$0xff] %v6381_v18  ;;  %v852_v18 = vadd.f32 %v851_v38, %v6034_v37  ;;  %v891_v29 = vadd.f32 %v6349_v2, %v848_v15  ;;  %v6503_v15 = vld [vmem:[#allocation2_spill] sm:$0xff] }
 0x1bb   : > { %v895_v37 = vadd.f32 %v6353_v13, %v852_v18 }
 0x1e4   : > { %v6369_v8 = vpop.f32.mrf.mxu0 }
 0x1e5   : > { %6488 = vst [vmem:[#allocation4_spill] sm:$0xff] %v6369_v8 }
 0x1e6   : > { %v6373_v9 = vpop.f32.mrf.mxu0 }
 0x1e7   : > { %6490 = vst [vmem:[#allocation6_spill] sm:$0xff] %v6373_v9 }
 0x1e8   : > { %v6375_v14 = vpop.f32.mrf.mxu0 }
 0x1e9   : > { %6491 = vst [vmem:[#allocation7_spill] sm:$0xff] %v6375_v14  ;;  %v850_v14 = vadd.f32 %v849_v35, %v6032_v36 }
 0x1ea   : > { %v6379_v16 = vpop.f32.mrf.mxu0 }
 0x1eb   : > { %6493 = vst [vmem:[#allocation9_spill] sm:$0xff] %v6379_v16  ;;  %v1194_v16 = vadd.f32 %v1193_v42, %v1150_v41  ;;  %v893_v36 = vadd.f32 %v6351_v34, %v850_v14  ;;  %v1781_v41 = vadd.f32 %v1780_v57, %v1737_v56  ;;  %v6405_v42 = vsub.s32 0, %v6396_v7  ;;  %v3503_v34 = vld [vmem:[%s6484_s3] sm:$0x3]  ;;  %v6502_v14 = vld [vmem:[#allocation3_spill] sm:$0xff] }
 0x1ec   : > { %v2773_v19 = vpop.f32.mrf.mxu0 }
 0x1ed   : > { %v1417_v9 = vadd.f32 %v1416_v50, %v1194_v16  ;;  %v2090_v50 = vadd.f32 %v2089_v3, %v2046_v4  ;;  %v1789_v56 = vadd.f32 %v1781_v41, %v891_v29  ;;  %v2094_v16 = vadd.f32 %v6503_v15, %v6502_v14 }
 0x1ee   : > { %v2775_v48 = vpop.f32.mrf.mxu0 }
 0x1f0   : > { %v6383_v23 = vpop.f32.mrf.mxu0 }
 0x1f1   : > { %6495 = vst [vmem:[#allocation11_spill] sm:$0xff] %v6383_v23  ;;  %v1196_v23 = vadd.f32 %v1195_v44, %v1152_v43  ;;  %v1460_v43 = vadd.f32 %v6357_v49, %v1417_v9  ;;  %v1783_v44 = vadd.f32 %v1782_v58, %v1739_v45  ;;  %v6417_v45 = vrot.slane %v3503_v34, %v6405_v42 }
 0x1f2   : > { %v2730_v20 = vpop.f32.mrf.mxu1  ;;  %v6387_v26 = vpop.f32.mrf.mxu0  ;;  %v6504_v29 = vld [vmem:[#allocation9_spill] sm:$0xff] }
 0x1f3   : > { %6497 = vst [vmem:[#allocation13_spill] sm:$0xff] %v6387_v26  ;;  %v854_v26 = vadd.f32 %v853_v17, %v6050_v46  ;;  %v1419_v0 = vadd.f32 %v1418_v53, %v1196_v23  ;;  %v3511_v46 = vsub.s32 1, %v6396_v7  ;;  %v2774_v57 = vadd.f32 %v2773_v19, %v2730_v20 }
 0x1f4   : > { %v2732_v21 = vpop.f32.mrf.mxu1 }
 0x1f5   : > { %v897_v17 = vadd.f32 %v6355_v39, %v854_v26  ;;  %v1462_v13 = vadd.f32 %v6359_v51, %v1419_v0  ;;  %v2092_v39 = vadd.f32 %v2091_v5, %v2048_v24  ;;  %v6419_v58 = vrot.slane %v3503_v34, %v3511_v46  ;;  %v6499_v51 = vld [vmem:[#allocation4_spill] sm:$0xff]  ;;  %v6505_v0 = vld [vmem:[#allocation10_spill] sm:$0xff] }
 0x1f6   : > { %v6385_v25 = vpop.f32.mrf.mxu1  ;;  %v2776_v24 = vadd.f32 %v2775_v48, %v2732_v21 }
 0x1f7   : > { %6496 = vst [vmem:[#allocation12_spill] sm:$0xff] %v6385_v25  ;;  %v1198_v25 = vadd.f32 %v1197_v22, %v1154_v10  ;;  %v1785_v10 = vadd.f32 %v1784_v60, %v1741_v59  ;;  %v1790_v59 = vadd.f32 %v1783_v44, %v893_v36  ;;  %v2097_v5 = vadd.f32 %v2090_v50, %v1462_v13  ;;  %v6511_v44 = vld [vmem:[#allocation8_spill] sm:$0xff] }
 0x1f8   : > { %v6389_v27 = vpop.f32.mrf.mxu1  ;;  %v2473_v36 = vadd.f32 %v6505_v0, %v6504_v29  ;;  %v6507_v48 = vld [vmem:[#allocation11_spill] sm:$0xff] }
 0x1f9   : > { %6498 = vst [vmem:[#allocation14_spill] sm:$0xff] %v6389_v27  ;;  %v1200_v27 = vadd.f32 %v1199_v11, %v1156_v47  ;;  %v1421_v35 = vadd.f32 %v1420_v54, %v1198_v25  ;;  %v1787_v47 = vadd.f32 %v1786_v63, %v1743_v61  ;;  %v2088_v11 = vadd.f32 %v2087_v40, %v2044_v1  ;;  %v6500_v61 = vld [vmem:[#allocation5_spill] sm:$0xff]  ;;  %v6501_v40 = vld [vmem:[#allocation6_spill] sm:$0xff] }
 0x1fa   : > { %v3105_v31 = vpop.f32.mrf.mxu1  ;;  %v1791_v60 = vadd.f32 %v1785_v10, %v895_v37  ;;  %v2467_v63 = vadd.f32 %v6500_v61, %v6499_v51  ;;  %v2469_v1 = vadd.f32 %v2468_v12, %v6501_v40  ;;  %v2783_v41 = vadd.f32 %v2776_v24, %v2097_v5 }
 0x1fb   : > { %v1423_v38 = vadd.f32 %v1422_v33, %v1200_v27  ;;  %v1464_v53 = vadd.f32 %v6361_v52, %v1421_v35  ;;  %v5080_v33 = vmov 1983009808   ;;  %v2096_v4 = vadd.f32 %v2088_v11, %v1460_v43  ;;  %v6510_v43 = vld [vmem:[#allocation7_spill] sm:$0xff] }
 0x1fc   : > { %v3107_v62 = vpop.f32.mrf.mxu1  ;;  %v3436_v49 = vunpack.c.l.s4 %v5080_v33  ;;  %v3513_v27 = vcombine.low %v6417_v45, %v6419_v58  ;;  %v2475_v12 = vadd.f32 %v2467_v63, %v1789_v56  ;;  %v2476_v30 = vadd.f32 %v2469_v1, %v1790_v59 }
 0x1fd   : > { %v1466_v54 = vadd.f32 %v6363_v55, %v1423_v38  ;;  %v1792_v55 = vadd.f32 %v1787_v47, %v897_v17  ;;  %v2098_v9 = vadd.f32 %v2092_v39, %v1464_v53  ;;  %v2782_v23 = vadd.f32 %v2774_v57, %v2096_v4 }
 0x1fe   : > { %v3109_v2 = vpop.f32.mrf.mxu1  ;;  %v3437_v20 = vunpack.c.0.s8 %v3436_v49  ;;  %v6506_v37 = vld [vmem:[#allocation12_spill] sm:$0xff]  ;;  %v2471_v10 = vadd.f32 %v6511_v44, %v6510_v43 }
 0x1ff   : > { %v2778_v21 = vadd.f32 %v6507_v48, %v6506_v37  ;;  %v2478_v39 = vadd.f32 %v2473_v36, %v1792_v55 }
 0x200   : > { %v3111_v52 = vpop.f32.mrf.mxu1  ;;  %v3440_v34 = vsub.s32 %v3437_v20, %v6396_v7  ;;  %v2477_v40 = vadd.f32 %v2471_v10, %v1791_v60 }
 0x201   : > { %v2784_v33 = vadd.f32 %v2778_v21, %v2098_v9 }
 0x202   : > { %v3521_v56 = vrot.slane %v3513_v27, %v3440_v34 }
 0x204   : > { %v3529_v24 = vcombine.high %v3521_v56, %v3521_v56  ;;  %v3531_v60 = vrot.slane %v3521_v56, 1 }
 0x22c   : > { %v3062_v28 = vpop.f32.mrf.mxu0 }
 0x22d   : > { %v3106_v18 = vadd.f32 %v3105_v31, %v3062_v28  ;;  %v6508_v28 = vld [vmem:[#allocation14_spill] sm:$0xff]  ;;  %v6509_v31 = vld [vmem:[#allocation13_spill] sm:$0xff] }
 0x22e   : > { %v3064_v32 = vpop.f32.mrf.mxu0  ;;  %v2780_v46 = vadd.f32 %v6509_v31, %v6508_v28 }
 0x22f   : > { %v3108_v25 = vadd.f32 %v3107_v62, %v3064_v32  ;;  %v2099_v32 = vadd.f32 %v2094_v16, %v1466_v54 }
 0x230   : > { %v6394_v6 = vpop.f32.mrf.mxu0 }
 0x231   : > { %v3115_v47 = vadd.f32 %v3108_v25, %v2476_v30  ;;  %v3110_v49 = vadd.f32 %v3109_v2, %v6394_v6  ;;  %v2785_v54 = vadd.f32 %v2780_v46, %v2099_v32  ;;  %v6442_v30 = vsub.s32 2, %v6396_v7 }
 0x232   : > { %v6399_v8 = vpop.f32.mrf.mxu0 }
 0x233   : > { %v3112_v11 = vadd.f32 %v3111_v52, %v6399_v8  ;;  %v3116_v55 = vadd.f32 %v3110_v49, %v2477_v40 }
 0x234   : > { %v3412_v22 = vpop.f32.mrf.mxu0 }
 0x235   : > { %v3117_v4 = vadd.f32 %v3112_v11, %v2478_v39 }
 0x236   : > { %v3414_v3 = vpop.f32.mrf.mxu0 }
 0x238   : > { %v3416_v35 = vpop.f32.mrf.mxu0 }
 0x23a   : > { %v3369_v19 = vpop.f32.mrf.mxu1  ;;  %v3418_v57 = vpop.f32.mrf.mxu0 }
 0x23b   : > { %v3413_v26 = vadd.f32 %v3412_v22, %v3369_v19  ;;  %v3114_v22 = vadd.f32 %v3106_v18, %v2475_v12 }
 0x23c   : > { %v3371_v38 = vpop.f32.mrf.mxu1 }
 0x23d   : > { %v3421_v17 = vadd.f32 %v3413_v26, %v2782_v23  ;;  %v3415_v62 = vadd.f32 %v3414_v3, %v3371_v38  ;;  %v3514_v3 = vcombine.high %v6417_v45, %v6419_v58  ;;  %v3532_v23 = vrot.slane %v3529_v24, 1 }
 0x23e   : > { %v3373_v13 = vpop.f32.mrf.mxu1 }
 0x23f   : > { %v3422_v50 = vadd.f32 %v3415_v62, %v2783_v41  ;;  %v3417_v53 = vadd.f32 %v3416_v35, %v3373_v13  ;;  %v3425_v51 = vmax.f32 %v3114_v22, %v3421_v17  ;;  %v3528_v15 = vrot.slane %v3514_v3, %v3440_v34 }
 0x240   : > { %v3375_v59 = vpop.f32.mrf.mxu1 }
 0x241   : > { %v3426_v61 = vmax.f32 %v3115_v47, %v3422_v50  ;;  %v3419_v63 = vadd.f32 %v3418_v57, %v3375_v59  ;;  %v3423_v1 = vadd.f32 %v3417_v53, %v2784_v33  ;;  %v3530_v36 = vcombine.high %v3528_v15, %v3528_v15 }
 0x242   : > { %v3533_v31 = vrot.slane %v3528_v15, 1 }
 0x243   : > { %v3433_v8 = vcombine.low %v3425_v51, %v3426_v61  ;;  %v3434_v52 = vcombine.high %v3425_v51, %v3426_v61  ;;  %v3424_v5 = vadd.f32 %v3419_v63, %v2785_v54  ;;  %v3427_v14 = vmax.f32 %v3116_v55, %v3423_v1 }
 0x245   : > { %v3441_v9 = vrot.slane %v3433_v8, %v3440_v34  ;;  %v3448_v6 = vrot.slane %v3434_v52, %v3440_v34  ;;  %v3428_v2 = vmax.f32 %v3117_v4, %v3424_v5 }
 0x247   : > { %v3449_v16 = vcombine.high %v3441_v9, %v3441_v9  ;;  %v3450_v18 = vcombine.high %v3448_v6, %v3448_v6  ;;  %v4476_v19 = vrot.slane %v3441_v9, 9  ;;  %v4478_v20 = vrot.slane %v3448_v6, 9 }
 0x248   : > { %v3451_v25 = vcombine.low %v3427_v14, %v3428_v2  ;;  %v3452_v26 = vcombine.high %v3427_v14, %v3428_v2 }
 0x249   : > { %v4477_v45 = vrot.slane %v3449_v16, 9  ;;  %v4479_v58 = vrot.slane %v3450_v18, 9  ;;  %v3496_v27 = vmax.f32 %v3441_v9, %v4476_v19  ;;  %v3498_v12 = vmax.f32 %v3448_v6, %v4478_v20 }
 0x24a   : > { %v3459_v29 = vrot.slane %v3451_v25, %v3440_v34  ;;  %v3466_v0 = vrot.slane %v3452_v26, %v3440_v34 }
 0x24b   : > { %v3497_v37 = vmax.f32 %v3449_v16, %v4477_v45  ;;  %v3499_v48 = vmax.f32 %v3450_v18, %v4479_v58  ;;  %v3541_v21 = vadd.f32 %v3521_v56, %v3496_v27  ;;  %v3543_v35 = vadd.f32 %v3529_v24, %v3498_v12 }
 0x24c   : > { %v3467_v38 = vcombine.high %v3459_v29, %v3459_v29  ;;  %v4480_v41 = vrot.slane %v3459_v29, 9  ;;  %v4482_v28 = vrot.slane %v3466_v0, 9 }
 0x24d   : > { %v3542_v46 = vadd.f32 %v3531_v60, %v3497_v37  ;;  %v3544_v17 = vadd.f32 %v3532_v23, %v3499_v48  ;;  %v3548_v62 = vmax.f32 %v3541_v21, 0.0  ;;  %v3550_v32 = vmax.f32 %v3543_v35, 0.0 }
 0x24e   : > { %v4481_v43 = vrot.slane %v3467_v38, 9  ;;  %v3500_v44 = vmax.f32 %v3459_v29, %v4480_v41  ;;  %v3502_v7 = vmax.f32 %v3466_v0, %v4482_v28 }
 0x24f   : > { %v3549_v10 = vmax.f32 %v3542_v46, 0.0  ;;  %v3551_v22 = vmax.f32 %v3544_v17, 0.0  ;;  %v3565_v34 = vrot.slane %v3548_v62, %v6405_v42  ;;  %v3569_v13 = vrot.slane %v3548_v62, %v6442_v30 }
 0x250   : > { %v3581_v47 = vrot.slane %v3550_v32, %v6405_v42  ;;  %v3585_v11 = vrot.slane %v3550_v32, %v6442_v30  ;;  %v3501_v50 = vmax.f32 %v3467_v38, %v4481_v43  ;;  %v3545_v53 = vadd.f32 %v3528_v15, %v3500_v44 }
 0x251   : > { %v3573_v39 = vrot.slane %v3549_v10, %v6405_v42  ;;  %v3577_v33 = vrot.slane %v3549_v10, %v6442_v30  ;;  %v3589_v49 = vrot.slane %v3551_v22, %v6405_v42  ;;  %v3593_v56 = vrot.slane %v3551_v22, %v6442_v30 }
 0x252   : > { %v4493_v57 = vpack.c.bf16 %v3569_v13, %v3565_v34  ;;  %v4495_v59 = vpack.c.bf16 %v3585_v11, %v3581_v47  ;;  %v3546_v54 = vadd.f32 %v3533_v31, %v3501_v50  ;;  %v3547_v51 = vadd.f32 %v3530_v36, %v3502_v7  ;;  %v3734_v11 = vld [vmem:[%s197_s21] sm:$0xff] }
 0x253   : > { %v4494_v61 = vpack.c.bf16 %v3577_v33, %v3573_v39  ;;  %v4496_v63 = vpack.c.bf16 %v3593_v56, %v3589_v49  ;;  %v3552_v40 = vmax.f32 %v3545_v53, 0.0 }
 0x254   : > { %v3681_v1 = vunpack.c.l.b16 %v4493_v57  ;;  %v3682_v3 = vunpack.c.h.b16 %v4493_v57  ;;  %v3685_v4 = vunpack.c.l.b16 %v4495_v59  ;;  %v3686_v8 = vunpack.c.h.b16 %v4495_v59 }
 0x255   : > { %v3683_v52 = vunpack.c.l.b16 %v4494_v61  ;;  %v3684_v5 = vunpack.c.h.b16 %v4494_v61  ;;  %v3687_v55 = vunpack.c.l.b16 %v4496_v63  ;;  %v3688_v24 = vunpack.c.h.b16 %v4496_v63 }
 0x256   : > { %v3698_v9 = vrot.slane %v3685_v4, 6  ;;  %v3715_v6 = vrot.slane %v3686_v8, 6  ;;  %v3553_v2 = vmax.f32 %v3546_v54, 0.0  ;;  %v3554_v14 = vmax.f32 %v3547_v51, 0.0 }
 0x257   : > { %v3695_v15 = vrot.slane %v3683_v52, 7  ;;  %v3701_v16 = vrot.slane %v3687_v55, 5  ;;  %v3713_v18 = vrot.slane %v3684_v5, 7  ;;  %v3717_v19 = vrot.slane %v3688_v24, 5 }
 0x258   : > { %v3597_v20 = vrot.slane %v3552_v40, %v6405_v42  ;;  %v3601_v60 = vrot.slane %v3552_v40, %v6442_v30  ;;  %v3605_v23 = vrot.slane %v3553_v2, %v6405_v42  ;;  %v3609_v25 = vrot.slane %v3553_v2, %v6442_v30 }
 0x259   : > { %v3697_v26 = vsel %vm3696_vm3, %v3695_v15, %v3681_v1  ;;  %v3714_v45 = vsel %vm3696_vm3, %v3713_v18, %v3682_v3  ;;  %v3613_v58 = vrot.slane %v3554_v14, %v6405_v42  ;;  %v3617_v27 = vrot.slane %v3554_v14, %v6442_v30 }
 0x25a   : > { %v3700_v12 = vsel %vm3699_vm4, %v3698_v9, %v3697_v26  ;;  %v3716_v29 = vsel %vm3699_vm4, %v3715_v6, %v3714_v45  ;;  %v4497_v0 = vpack.c.bf16 %v3601_v60, %v3597_v20  ;;  %v4498_v36 = vpack.c.bf16 %v3609_v25, %v3605_v23 }
 0x25b   : > { %v3703_v37 = vsel %vm3702_vm5, %v3701_v16, %v3700_v12  ;;  %v3718_v48 = vsel %vm3702_vm5, %v3717_v19, %v3716_v29  ;;  %v4499_v21 = vpack.c.bf16 %v3617_v27, %v3613_v58 }
 0x25c   : > { %v3689_v35 = vunpack.c.l.b16 %v4497_v0  ;;  %v3690_v38 = vunpack.c.h.b16 %v4497_v0  ;;  %v3691_v41 = vunpack.c.l.b16 %v4498_v36  ;;  %v3692_v28 = vunpack.c.h.b16 %v4498_v36 }
 0x25d   : > { %v3693_v42 = vunpack.c.l.b16 %v4499_v21  ;;  %v3694_v31 = vunpack.c.h.b16 %v4499_v21 }
 0x25e   : > { %v3704_v30 = vrot.slane %v3689_v35, 4  ;;  %v3707_v46 = vrot.slane %v3691_v41, 3  ;;  %v3719_v17 = vrot.slane %v3690_v38, 4  ;;  %v3721_v62 = vrot.slane %v3692_v28, 3 }
 0x25f   : > { %v3710_v44 = vrot.slane %v3693_v42, 2  ;;  %v3723_v10 = vrot.slane %v3694_v31, 2 }
 0x260   : > { %v3706_v43 = vsel %vm3705_vm10, %v3704_v30, %v3703_v37  ;;  %v3720_v7 = vsel %vm3705_vm10, %v3719_v17, %v3718_v48 }
 0x261   : > { %v3709_v22 = vsel %vm3708_vm11, %v3707_v46, %v3706_v43  ;;  %v3722_v34 = vsel %vm3708_vm11, %v3721_v62, %v3720_v7 }
 0x262   : > { %v3712_v13 = vsel %vm3711_vm13, %v3710_v44, %v3709_v22  ;;  %v3724_v47 = vsel %vm3711_vm13, %v3723_v10, %v3722_v34 }
 0x263   : > { %v3725_v50 = vpack.c.b16 %v3724_v47, %v3712_v13 }
 0x265   : > { %v3735_v53 = vsel %vm3733_vm15, %v3725_v50, %v3734_v11 }
 0x266   : > { %3736 = vst [vmem:[%s197_s21] sm:$0xff] %v3735_v53 }
 0x267 PF: > { %s14_s15 = sadd.s32 1, %s5077_s15  }
 0x268   : > { %p11_p4 = scmp.ge.s32.totalorder %s14_s15, 4  }
 0x26a   :  { %13 = sbr.rel (!%p11_p4) target bundleno = 1 (0x1), region = 74 }

// kernel: cnn_mnist_forward.5
= control target key start
LH: loop header
LB: loop body
LE: loop exit
PB: predicated region body
PF: predicated region fallthrough
CT: control target
= control target key end

     0   :  { %vm1682_vm0 = vmmov 0   ;;  %vm864_vm1 = vcmask 261120   ;;  %s2061_s1 = inlined_call_operand.vmem [shape: bf16[1568,128], index: 1, kind: input, shape index: {}]   ;;  %s2062_s0 = inlined_call_operand.vmem [shape: bf16[8,1568], index: 0, kind: input, shape index: {}]   ;;  %s2063_s3 = inlined_call_operand.vmem [shape: bf16[128,128], index: 3, kind: input, shape index: {}]   ;;  %s2064_s2 = inlined_call_operand.vmem [shape: f32[1,128], index: 2, kind: input, shape index: {}]   ;;  %s2065_s4 = inlined_call_operand.vmem [shape: f32[1,128], index: 4, kind: input, shape index: {}]   ;;  %s2066_s5 = inlined_call_operand.vmem [shape: f32[8,128], index: 5, kind: output, shape index: {}]  }
   0x1   :  { %v1562_v0 = vld [vmem:[%s2061_s1 + $0x78] sm:$0xff]   ;;  %v1566_v4 = vld [vmem:[%s2061_s1 + $0x70] sm:$0xff]   ;;  %v1570_v8 = vld [vmem:[%s2061_s1 + $0x68] sm:$0xff]  }
   0x2   :  { %v1563_v1 = vld [vmem:[%s2061_s1 + $0xf8] sm:$0xff]   ;;  %1388 = vmatprep.subr.bf16.mxu0 %v1562_v0  ;;  %v1567_v5 = vld [vmem:[%s2061_s1 + $0xf0] sm:$0xff]   ;;  %v1571_v9 = vld [vmem:[%s2061_s1 + $0xe8] sm:$0xff]  }
   0x3   :  { %v1564_v2 = vld [vmem:[%s2061_s1 + $0x38] sm:$0xff]   ;;  %1410 = vmatprep.subr.bf16.mxu1 %v1563_v1  ;;  %v1568_v6 = vld [vmem:[%s2061_s1 + $0x30] sm:$0xff]   ;;  %v1572_v10 = vld [vmem:[%s2061_s1 + $0x28] sm:$0xff]  }
   0x4   :  { %v1565_v3 = vld [vmem:[%s2061_s1 + $0xb8] sm:$0xff]   ;;  %1389 = vmatpush3.bf16.msra.mxu0 %v1564_v2  ;;  %v1569_v7 = vld [vmem:[%s2061_s1 + $0xb0] sm:$0xff]   ;;  %v1573_v11 = vld [vmem:[%s2061_s1 + $0xa8] sm:$0xff]  }
   0x5   :  { %1411 = vmatpush3.bf16.msra.mxu1 %v1565_v3  ;;  %1390 = vmatprep.subr.bf16.mxu0 %v1566_v4  ;;  %v1574_v12 = vld [vmem:[%s2061_s1 + $0x60] sm:$0xff]   ;;  %v1578_v16 = vld [vmem:[%s2061_s1 + $0x58] sm:$0xff]   ;;  %v1582_v20 = vld [vmem:[%s2061_s1 + $0x50] sm:$0xff]  }
   0x6   :  { %1412 = vmatprep.subr.bf16.mxu1 %v1567_v5  ;;  %v1575_v13 = vld [vmem:[%s2061_s1 + $0xe0] sm:$0xff]   ;;  %v1579_v17 = vld [vmem:[%s2061_s1 + $0xd8] sm:$0xff]   ;;  %v1583_v21 = vld [vmem:[%s2061_s1 + $0xd0] sm:$0xff]  }
   0x7   :  { %v1576_v14 = vld [vmem:[%s2061_s1 + $0x20] sm:$0xff]   ;;  %v1580_v18 = vld [vmem:[%s2061_s1 + $0x18] sm:$0xff]   ;;  %v1584_v22 = vld [vmem:[%s2061_s1 + $0x10] sm:$0xff]  }
   0x8   :  { %1391 = vmatpush3.bf16.msra.mxu0 %v1568_v6  ;;  %v1577_v15 = vld [vmem:[%s2061_s1 + $0xa0] sm:$0xff]   ;;  %v1581_v19 = vld [vmem:[%s2061_s1 + $0x98] sm:$0xff]   ;;  %v1585_v23 = vld [vmem:[%s2061_s1 + $0x90] sm:$0xff]  }
   0x9   :  { %1413 = vmatpush3.bf16.msra.mxu1 %v1569_v7  ;;  %1392 = vmatprep.subr.bf16.mxu0 %v1570_v8  ;;  %v1586_v24 = vld [vmem:[%s2061_s1 + $0x48] sm:$0xff]   ;;  %v1590_v28 = vld [vmem:[%s2061_s1 + $0x40] sm:$0xff]   ;;  %v1598_v38 = vld [vmem:[%s2061_s1 + $0x178] sm:$0xff]  }
   0xa   :  { %1414 = vmatprep.subr.bf16.mxu1 %v1571_v9  ;;  %v1587_v25 = vld [vmem:[%s2061_s1 + $0xc8] sm:$0xff]   ;;  %v1591_v29 = vld [vmem:[%s2061_s1 + $0xc0] sm:$0xff]   ;;  %v1599_v39 = vld [vmem:[%s2061_s1 + $0x1f8] sm:$0xff]  }
   0xb   :  { %v1588_v26 = vld [vmem:[%s2061_s1 + $0x8] sm:$0xff]   ;;  %v1592_v30 = vld [vmem:[%s2061_s1] sm:$0xff]   ;;  %v1600_v40 = vld [vmem:[%s2061_s1 + $0x138] sm:$0xff]  }
   0xc   :  { %1393 = vmatpush3.bf16.msra.mxu0 %v1572_v10  ;;  %v1589_v27 = vld [vmem:[%s2061_s1 + $0x88] sm:$0xff]   ;;  %v1593_v31 = vld [vmem:[%s2061_s1 + $0x80] sm:$0xff]   ;;  %v1601_v41 = vld [vmem:[%s2061_s1 + $0x1b8] sm:$0xff]  }
   0xd   :  { %1415 = vmatpush3.bf16.msra.mxu1 %v1573_v11  ;;  %1394 = vmatprep.subr.bf16.mxu0 %v1574_v12  ;;  %v21_v32 = vld [vmem:[%s2062_s0] sm:$0xff]  ;;  %v22_v33 = vld [vmem:[%s2062_s0 + $0x8] sm:$0xff]  ;;  %v1602_v42 = vld [vmem:[%s2061_s1 + $0x170] sm:$0xff]  }
   0xe   :  { %1416 = vmatprep.subr.bf16.mxu1 %v1575_v13  ;;  %v1267_v34 = vcombine.low %v21_v32, %v21_v32  ;;  %v1268_v35 = vcombine.high %v21_v32, %v21_v32  ;;  %v1269_v36 = vcombine.low %v22_v33, %v22_v33  ;;  %v1270_v37 = vcombine.high %v22_v33, %v22_v33  ;;  %v1603_v43 = vld [vmem:[%s2061_s1 + $0x1f0] sm:$0xff]   ;;  %v1606_v46 = vld [vmem:[%s2061_s1 + $0x168] sm:$0xff]   ;;  %v1610_v50 = vld [vmem:[%s2061_s1 + $0x160] sm:$0xff]  }
   0xf   :  { %v1604_v44 = vld [vmem:[%s2061_s1 + $0x130] sm:$0xff]   ;;  %v1607_v47 = vld [vmem:[%s2061_s1 + $0x1e8] sm:$0xff]   ;;  %v1611_v51 = vld [vmem:[%s2061_s1 + $0x1e0] sm:$0xff]  }
  0x10   :  { %1395 = vmatpush3.bf16.msra.mxu0 %v1576_v14  ;;  %900 = vmatprep.mubr.bf16.mxu0 %v1268_v35  ;;  %v1605_v45 = vld [vmem:[%s2061_s1 + $0x1b0] sm:$0xff]   ;;  %v1608_v48 = vld [vmem:[%s2061_s1 + $0x128] sm:$0xff]   ;;  %v1612_v52 = vld [vmem:[%s2061_s1 + $0x120] sm:$0xff]  }
  0x11   :  { %1417 = vmatpush3.bf16.msra.mxu1 %v1577_v15  ;;  %1396 = vmatprep.subr.bf16.mxu0 %v1578_v16  ;;  %v1609_v49 = vld [vmem:[%s2061_s1 + $0x1a8] sm:$0xff]   ;;  %v1613_v53 = vld [vmem:[%s2061_s1 + $0x1a0] sm:$0xff]   ;;  %v1614_v54 = vld [vmem:[%s2061_s1 + $0x158] sm:$0xff]  }
  0x12   :  { %1418 = vmatprep.subr.bf16.mxu1 %v1579_v17  ;;  %940 = vmatprep.mubr.bf16.mxu1 %v1270_v37  ;;  %v1615_v55 = vld [vmem:[%s2061_s1 + $0x1d8] sm:$0xff]   ;;  %v1618_v58 = vld [vmem:[%s2061_s1 + $0x150] sm:$0xff]   ;;  %v1622_v62 = vld [vmem:[%s2061_s1 + $0x148] sm:$0xff]  }
  0x13   :  { %v1616_v56 = vld [vmem:[%s2061_s1 + $0x118] sm:$0xff]   ;;  %v1619_v59 = vld [vmem:[%s2061_s1 + $0x1d0] sm:$0xff]   ;;  %v1623_v63 = vld [vmem:[%s2061_s1 + $0x1c8] sm:$0xff]  }
  0x14   :  { %1397 = vmatpush3.bf16.msra.mxu0 %v1580_v18  ;;  %v1617_v57 = vld [vmem:[%s2061_s1 + $0x198] sm:$0xff]   ;;  %v1620_v60 = vld [vmem:[%s2061_s1 + $0x110] sm:$0xff]   ;;  %v1624_v0 = vld [vmem:[%s2061_s1 + $0x108] sm:$0xff]  }
  0x15   :  { %1419 = vmatpush3.bf16.msra.mxu1 %v1581_v19  ;;  %1398 = vmatprep.subr.bf16.mxu0 %v1582_v20  ;;  %v1621_v61 = vld [vmem:[%s2061_s1 + $0x190] sm:$0xff]   ;;  %v1625_v1 = vld [vmem:[%s2061_s1 + $0x188] sm:$0xff]   ;;  %v1626_v2 = vld [vmem:[%s2061_s1 + $0x140] sm:$0xff]  }
  0x16   :  { %1420 = vmatprep.subr.bf16.mxu1 %v1583_v21  ;;  %v1627_v3 = vld [vmem:[%s2061_s1 + $0x1c0] sm:$0xff]   ;;  %v23_v6 = vld [vmem:[%s2062_s0 + $0x10] sm:$0xff]  ;;  %v24_v9 = vld [vmem:[%s2062_s0 + $0x18] sm:$0xff] }
  0x17   :  { %v1628_v4 = vld [vmem:[%s2061_s1 + $0x100] sm:$0xff]   ;;  %v1271_v7 = vcombine.low %v23_v6, %v23_v6  ;;  %v1272_v8 = vcombine.high %v23_v6, %v23_v6  ;;  %v1273_v10 = vcombine.low %v24_v9, %v24_v9  ;;  %v1274_v11 = vcombine.high %v24_v9, %v24_v9  ;;  %v1634_v12 = vld [vmem:[%s2061_s1 + $0x278] sm:$0xff]   ;;  %v1638_v16 = vld [vmem:[%s2061_s1 + $0x270] sm:$0xff]  }
  0x18   :  { %1399 = vmatpush3.bf16.msra.mxu0 %v1584_v22  ;;  %v1629_v5 = vld [vmem:[%s2061_s1 + $0x180] sm:$0xff]   ;;  %v1635_v13 = vld [vmem:[%s2061_s1 + $0x2f8] sm:$0xff]   ;;  %v1639_v17 = vld [vmem:[%s2061_s1 + $0x2f0] sm:$0xff]  }
  0x19   :  { %1421 = vmatpush3.bf16.msra.mxu1 %v1585_v23  ;;  %1400 = vmatprep.subr.bf16.mxu0 %v1586_v24  ;;  %v1636_v14 = vld [vmem:[%s2061_s1 + $0x238] sm:$0xff]   ;;  %v1640_v18 = vld [vmem:[%s2061_s1 + $0x230] sm:$0xff]   ;;  %v1642_v20 = vld [vmem:[%s2061_s1 + $0x268] sm:$0xff]  }
  0x1a   :  { %1422 = vmatprep.subr.bf16.mxu1 %v1587_v25  ;;  %v1637_v15 = vld [vmem:[%s2061_s1 + $0x2b8] sm:$0xff]   ;;  %v1641_v19 = vld [vmem:[%s2061_s1 + $0x2b0] sm:$0xff]   ;;  %v1643_v21 = vld [vmem:[%s2061_s1 + $0x2e8] sm:$0xff]  }
  0x1b   :  { %v1644_v22 = vld [vmem:[%s2061_s1 + $0x228] sm:$0xff]   ;;  %v1646_v24 = vld [vmem:[%s2061_s1 + $0x260] sm:$0xff]   ;;  %v1654_v32 = vld [vmem:[%s2061_s1 + $0x250] sm:$0xff]  }
  0x1c   :  { %1401 = vmatpush3.bf16.msra.mxu0 %v1588_v26  ;;  %v1645_v23 = vld [vmem:[%s2061_s1 + $0x2a8] sm:$0xff]   ;;  %v1647_v25 = vld [vmem:[%s2061_s1 + $0x2e0] sm:$0xff]   ;;  %v1655_v33 = vld [vmem:[%s2061_s1 + $0x2d0] sm:$0xff]  }
  0x1d   :  { %1423 = vmatpush3.bf16.msra.mxu1 %v1589_v27  ;;  %1402 = vmatprep.subr.bf16.mxu0 %v1590_v28  ;;  %v1648_v26 = vld [vmem:[%s2061_s1 + $0x220] sm:$0xff]   ;;  %v1650_v28 = vld [vmem:[%s2061_s1 + $0x258] sm:$0xff]   ;;  %v1657_v35 = vld [vmem:[%s2061_s1 + $0x290] sm:$0xff]  }
  0x1e   :  { %1424 = vmatprep.subr.bf16.mxu1 %v1591_v29  ;;  %v1649_v27 = vld [vmem:[%s2061_s1 + $0x2a0] sm:$0xff]   ;;  %v1651_v29 = vld [vmem:[%s2061_s1 + $0x2d8] sm:$0xff]   ;;  %v1659_v37 = vld [vmem:[%s2061_s1 + $0x2c8] sm:$0xff]  }
  0x20   :  { %1403 = vmatpush3.bf16.msra.mxu0 %v1592_v30  ;;  %v1652_v30 = vld [vmem:[%s2061_s1 + $0x218] sm:$0xff]  }
  0x21   :  { %1425 = vmatpush3.bf16.msra.mxu1 %v1593_v31  ;;  %1432 = vmatprep.subr.bf16.mxu0 %v1598_v38  ;;  %v1653_v31 = vld [vmem:[%s2061_s1 + $0x298] sm:$0xff]   ;;  %v1660_v38 = vld [vmem:[%s2061_s1 + $0x208] sm:$0xff]  }
  0x22   :  { %1454 = vmatprep.subr.bf16.mxu1 %v1599_v39  ;;  %v1661_v39 = vld [vmem:[%s2061_s1 + $0x288] sm:$0xff]  }
  0x23   :  { %901 = vmatmul.mubr.bf16.vlgmr.msra.gmra.mxu0 %v1267_v34  ;;  %v1656_v34 = vld [vmem:[%s2061_s1 + $0x210] sm:$0xff]  }
  0x24   :  { %941 = vmatmul.mubr.bf16.vlgmr.msra.gmra.mxu1 %v1269_v36  ;;  %1433 = vmatpush3.bf16.msra.mxu0 %v1600_v40  ;;  %v1658_v36 = vld [vmem:[%s2061_s1 + $0x248] sm:$0xff]   ;;  %v1662_v40 = vld [vmem:[%s2061_s1 + $0x240] sm:$0xff]  }
  0x25   :  { %1455 = vmatpush3.bf16.msra.mxu1 %v1601_v41  ;;  %1434 = vmatprep.subr.bf16.mxu0 %v1602_v42  ;;  %v1663_v41 = vld [vmem:[%s2061_s1 + $0x2c0] sm:$0xff]  }
  0x26   :  { %1456 = vmatprep.subr.bf16.mxu1 %v1603_v43  ;;  %980 = vmatprep.mubr.bf16.mxu0 %v1272_v8  ;;  %v1664_v42 = vld [vmem:[%s2061_s1 + $0x200] sm:$0xff]  }
  0x27   :  { %1020 = vmatprep.mubr.bf16.mxu1 %v1274_v11  ;;  %v1665_v43 = vld [vmem:[%s2061_s1 + $0x280] sm:$0xff]  }
  0x28   :  { %1435 = vmatpush3.bf16.msra.mxu0 %v1604_v44  ;;  %v25_v44 = vld [vmem:[%s2062_s0 + $0x20] sm:$0xff] }
  0x29   :  { %1457 = vmatpush3.bf16.msra.mxu1 %v1605_v45  ;;  %1436 = vmatprep.subr.bf16.mxu0 %v1606_v46  ;;  %v26_v45 = vld [vmem:[%s2062_s0 + $0x28] sm:$0xff]  ;;  %v1275_v46 = vcombine.low %v25_v44, %v25_v44 }
  0x2a   :  { %1458 = vmatprep.subr.bf16.mxu1 %v1607_v47  ;;  %v1276_v47 = vcombine.high %v25_v44, %v25_v44 }
  0x2c   :  { %1437 = vmatpush3.bf16.msra.mxu0 %v1608_v48  ;;  %v1277_v48 = vcombine.low %v26_v45, %v26_v45 }
  0x2d   :  { %1459 = vmatpush3.bf16.msra.mxu1 %v1609_v49  ;;  %1438 = vmatprep.subr.bf16.mxu0 %v1610_v50  ;;  %v1278_v49 = vcombine.high %v26_v45, %v26_v45  ;;  %v1670_v50 = vld [vmem:[%s2061_s1 + $0x308] sm:$0xff]  }
  0x2e   :  { %1460 = vmatprep.subr.bf16.mxu1 %v1611_v51  ;;  %v1681_v51 = vmov 0.0  }
  0x30   :  { %1439 = vmatpush3.bf16.msra.mxu0 %v1612_v52  ;;  %v1671_v52 = vld [vmem:[%s2061_s1 + $0x300] sm:$0xff]  }
  0x31   :  { %1461 = vmatpush3.bf16.msra.mxu1 %v1613_v53  ;;  %1440 = vmatprep.subr.bf16.mxu0 %v1614_v54  ;;  %v1672_v53 = vld [vmem:[%s2062_s0 + $0x30] ss:$0 sps:$4 sm:$0xff]   ;;  %v1673_v54 = vld [vmem:[%s2063_s3 + $0x38] sm:$0xff]  }
  0x32   :  { %1462 = vmatprep.subr.bf16.mxu1 %v1615_v55  ;;  %v1674_v55 = vld [vmem:[%s2063_s3 + $0x30] sm:$0xff]  }
  0x34   :  { %1441 = vmatpush3.bf16.msra.mxu0 %v1616_v56  ;;  %v1675_v56 = vld [vmem:[%s2063_s3 + $0x28] sm:$0xff]  }
  0x35   :  { %1463 = vmatpush3.bf16.msra.mxu1 %v1617_v57  ;;  %1442 = vmatprep.subr.bf16.mxu0 %v1618_v58  ;;  %v1676_v57 = vld [vmem:[%s2063_s3 + $0x20] sm:$0xff]   ;;  %v1677_v58 = vld [vmem:[%s2063_s3 + $0x18] sm:$0xff]  }
  0x36   :  { %1464 = vmatprep.subr.bf16.mxu1 %v1619_v59  ;;  %v1678_v59 = vld [vmem:[%s2063_s3 + $0x10] sm:$0xff]  }
  0x38   :  { %1443 = vmatpush3.bf16.msra.mxu0 %v1620_v60  ;;  %v1679_v60 = vld [vmem:[%s2063_s3 + $0x8] sm:$0xff]  }
  0x39   :  { %1465 = vmatpush3.bf16.msra.mxu1 %v1621_v61  ;;  %1444 = vmatprep.subr.bf16.mxu0 %v1622_v62  ;;  %v1680_v61 = vld [vmem:[%s2063_s3] sm:$0xff]  }
  0x3a   :  { %1466 = vmatprep.subr.bf16.mxu1 %v1623_v63 }
  0x3c   :  { %1445 = vmatpush3.bf16.msra.mxu0 %v1624_v0 }
  0x3d   :  { %1467 = vmatpush3.bf16.msra.mxu1 %v1625_v1  ;;  %1446 = vmatprep.subr.bf16.mxu0 %v1626_v2 }
  0x3e   :  { %1468 = vmatprep.subr.bf16.mxu1 %v1627_v3 }
  0x40   :  { %1447 = vmatpush3.bf16.msra.mxu0 %v1628_v4 }
  0x41   :  { %1469 = vmatpush3.bf16.msra.mxu1 %v1629_v5  ;;  %1476 = vmatprep.subr.bf16.mxu0 %v1634_v12 }
  0x42   :  { %1498 = vmatprep.subr.bf16.mxu1 %v1635_v13 }
  0x43   :  { %981 = vmatmul.mubr.bf16.vlgmr.msra.gmra.mxu0 %v1271_v7 }
  0x44   :  { %1021 = vmatmul.mubr.bf16.vlgmr.msra.gmra.mxu1 %v1273_v10  ;;  %1477 = vmatpush3.bf16.msra.mxu0 %v1636_v14 }
  0x45   :  { %1499 = vmatpush3.bf16.msra.mxu1 %v1637_v15  ;;  %1478 = vmatprep.subr.bf16.mxu0 %v1638_v16  ;;  %v1266_v15 = vld [vmem:[%s2064_s2] ss:$0 sm:$0xff] }
  0x46   :  { %1500 = vmatprep.subr.bf16.mxu1 %v1639_v17  ;;  %1060 = vmatprep.mubr.bf16.mxu0 %v1276_v47 }
  0x47   :  { %1100 = vmatprep.mubr.bf16.mxu1 %v1278_v49 }
  0x48   :  { %1479 = vmatpush3.bf16.msra.mxu0 %v1640_v18 }
  0x49   :  { %1501 = vmatpush3.bf16.msra.mxu1 %v1641_v19  ;;  %1480 = vmatprep.subr.bf16.mxu0 %v1642_v20 }
  0x4a   :  { %1502 = vmatprep.subr.bf16.mxu1 %v1643_v21 }
  0x4c   :  { %1481 = vmatpush3.bf16.msra.mxu0 %v1644_v22 }
  0x4d   :  { %1503 = vmatpush3.bf16.msra.mxu1 %v1645_v23  ;;  %1482 = vmatprep.subr.bf16.mxu0 %v1646_v24 }
  0x4e   :  { %1504 = vmatprep.subr.bf16.mxu1 %v1647_v25 }
  0x50   :  { %1483 = vmatpush3.bf16.msra.mxu0 %v1648_v26 }
  0x51   :  { %1505 = vmatpush3.bf16.msra.mxu1 %v1649_v27  ;;  %1484 = vmatprep.subr.bf16.mxu0 %v1650_v28 }
  0x52   :  { %1506 = vmatprep.subr.bf16.mxu1 %v1651_v29 }
  0x54   :  { %1485 = vmatpush3.bf16.msra.mxu0 %v1652_v30 }
  0x55   :  { %1507 = vmatpush3.bf16.msra.mxu1 %v1653_v31  ;;  %1486 = vmatprep.subr.bf16.mxu0 %v1654_v32 }
  0x56   :  { %1508 = vmatprep.subr.bf16.mxu1 %v1655_v33 }
  0x58   :  { %1487 = vmatpush3.bf16.msra.mxu0 %v1656_v34 }
  0x59   :  { %1509 = vmatpush3.bf16.msra.mxu1 %v1657_v35  ;;  %1488 = vmatprep.subr.bf16.mxu0 %v1658_v36 }
  0x5a   :  { %1510 = vmatprep.subr.bf16.mxu1 %v1659_v37 }
  0x5c   :  { %1489 = vmatpush3.bf16.msra.mxu0 %v1660_v38 }
  0x5d   :  { %1511 = vmatpush3.bf16.msra.mxu1 %v1661_v39  ;;  %1490 = vmatprep.subr.bf16.mxu0 %v1662_v40 }
  0x5e   :  { %1512 = vmatprep.subr.bf16.mxu1 %v1663_v41 }
  0x60   :  { %1491 = vmatpush3.bf16.msra.mxu0 %v1664_v42  ;;  %v1379_v42 = vld [vmem:[%s2065_s4] ss:$0 sm:$0xff] }
  0x61   :  { %1513 = vmatpush3.bf16.msra.mxu1 %v1665_v43  ;;  %1532 = vmatprep.subr.bf16.mxu0 %v1681_v51 }
  0x62   :  { %1540 = vmatprep.subr.bf16.mxu1 %v1681_v51 }
  0x63   :  { %1061 = vmatmul.mubr.bf16.vlgmr.msra.gmra.mxu0 %v1275_v46 }
  0x64   :  { %1101 = vmatmul.mubr.bf16.vlgmr.msra.gmra.mxu1 %v1277_v48  ;;  %1533 = vmatpush3.bf16.msra.mxu0 %v1670_v50 }
  0x65   :  { %1534 = vmatprep.subr.bf16.mxu0 %v1681_v51  ;;  %1536 = vmatprep.mubr.msk.bf16.mxu0 %vm1682_vm0, %v1681_v51 }
  0x66   :  { %1556 = vmatprep.mubr.msk.bf16.mxu1 %vm1682_vm0, %v1681_v51  ;;  %1541 = vmatpush3.bf16.msra.mxu1 %v1673_v54 }
  0x67   :  { %1542 = vmatprep.subr.bf16.mxu1 %v1681_v51 }
  0x68   :  { %1535 = vmatpush3.bf16.msra.mxu0 %v1671_v52 }
  0x6a   :  { %1543 = vmatpush3.bf16.msra.mxu1 %v1674_v55 }
  0x6b   :  { %1537 = vmatmul.mubr.msk.bf16.vlgmr.msra.gmra.mxu0 %vm864_vm1, %v1672_v53  ;;  %1544 = vmatprep.subr.bf16.mxu1 %v1681_v51 }
  0x6e   :  { %1545 = vmatpush3.bf16.msra.mxu1 %v1675_v56 }
  0x6f   :  { %1546 = vmatprep.subr.bf16.mxu1 %v1681_v51 }
  0x72   :  { %1547 = vmatpush3.bf16.msra.mxu1 %v1676_v57 }
  0x73   :  { %1548 = vmatprep.subr.bf16.mxu1 %v1681_v51 }
  0x76   :  { %1549 = vmatpush3.bf16.msra.mxu1 %v1677_v58 }
  0x77   :  { %1550 = vmatprep.subr.bf16.mxu1 %v1681_v51 }
  0x7a   :  { %1551 = vmatpush3.bf16.msra.mxu1 %v1678_v59 }
  0x7b   :  { %1552 = vmatprep.subr.bf16.mxu1 %v1681_v51 }
  0x7e   :  { %1553 = vmatpush3.bf16.msra.mxu1 %v1679_v60 }
  0x7f   :  { %1554 = vmatprep.subr.bf16.mxu1 %v1681_v51 }
  0x82   :  { %1555 = vmatpush3.bf16.msra.mxu1 %v1680_v61 }
  0xe3   :  { %v1404_v62 = vpop.f32.mrf.mxu0 }
  0xe4   :  { %v1426_v63 = vpop.f32.mrf.mxu1 }
  0xe5   :  { %v1405_v0 = vpop.f32.mrf.mxu0 }
  0xe6   :  { %v1427_v1 = vpop.f32.mrf.mxu1  ;;  %v1406_v14 = vadd.f32 %v1405_v0, %v1404_v62 }
  0xe7   :  { %v1407_v2 = vpop.f32.mrf.mxu0  ;;  %v1428_v17 = vadd.f32 %v1427_v1, %v1426_v63 }
  0xe8   :  { %v1429_v3 = vpop.f32.mrf.mxu1  ;;  %v903_v16 = vadd.f32 %v1406_v14, %v1266_v15 }
  0xe9   :  { %v1408_v4 = vpop.f32.mrf.mxu0 }
  0xea   :  { %v1430_v5 = vpop.f32.mrf.mxu1  ;;  %v943_v19 = vadd.f32 %v1428_v17, %v903_v16 }
 0x103   :  { %v1448_v6 = vpop.f32.mrf.mxu0 }
 0x104   :  { %v1470_v7 = vpop.f32.mrf.mxu1 }
 0x105   :  { %v1449_v8 = vpop.f32.mrf.mxu0 }
 0x106   :  { %v1471_v9 = vpop.f32.mrf.mxu1  ;;  %v1450_v18 = vadd.f32 %v1449_v8, %v1448_v6 }
 0x107   :  { %v1451_v10 = vpop.f32.mrf.mxu0  ;;  %v1472_v21 = vadd.f32 %v1471_v9, %v1470_v7 }
 0x108   :  { %v1473_v11 = vpop.f32.mrf.mxu1  ;;  %v983_v20 = vadd.f32 %v1450_v18, %v943_v19 }
 0x109   :  { %v1452_v12 = vpop.f32.mrf.mxu0 }
 0x10a   :  { %v1474_v13 = vpop.f32.mrf.mxu1  ;;  %v1023_v25 = vadd.f32 %v1472_v21, %v983_v20 }
 0x123   :  { %v1492_v22 = vpop.f32.mrf.mxu0 }
 0x124   :  { %v1514_v23 = vpop.f32.mrf.mxu1 }
 0x125   :  { %v1493_v24 = vpop.f32.mrf.mxu0 }
 0x126   :  { %v1494_v26 = vadd.f32 %v1493_v24, %v1492_v22  ;;  %v1515_v27 = vpop.f32.mrf.mxu1 }
 0x127   :  { %v1495_v28 = vpop.f32.mrf.mxu0  ;;  %v1516_v30 = vadd.f32 %v1515_v27, %v1514_v23 }
 0x128   :  { %v1063_v29 = vadd.f32 %v1494_v26, %v1023_v25  ;;  %v1517_v31 = vpop.f32.mrf.mxu1 }
 0x129   :  { %v1496_v32 = vpop.f32.mrf.mxu0 }
 0x12a   :  { %v1518_v33 = vpop.f32.mrf.mxu1  ;;  %v1103_v34 = vadd.f32 %v1516_v30, %v1063_v29 }
 0x12b   :  { %v1142_v35 = vpop.f32.mrf.mxu0 }
 0x12c   :  { %v1143_v36 = vadd.f32 %v1142_v35, %v1103_v34 }
 0x12d   :  { %v1538_v37 = vpop.f32.mrf.mxu0 }
 0x12e   :  { %v1148_v38 = vmax.f32 %v1143_v36, 0.0 }
 0x12f   :  { %v1145_v39 = vpop.f32.mrf.mxu0 }
 0x130   :  { %v1149_v40 = vpack.c.bf16 %v1148_v38, %v1148_v38 }
 0x131   :  { %v1539_v41 = vpop.f32.mrf.mxu0 }
 0x132   :  { %1557 = vmatmul.mubr.bf16.vlgmr.msra.gmra.mxu1 %v1149_v40 }
 0x1f2   :  { %v1255_v43 = vpop.f32.mrf.mxu1 }
 0x1f3   :  { %v1256_v44 = vadd.f32 %v1379_v42, %v1255_v43 }
 0x1f4   :  { %v1558_v45 = vpop.f32.mrf.mxu1 }
 0x1f5   :  { %1261 = vst [vmem:[%s2066_s5] sm:$0xff] %v1256_v44 }
 0x1f6   :  { %v1258_v46 = vpop.f32.mrf.mxu1 }
 0x1f8   :  { %v1559_v47 = vpop.f32.mrf.mxu1 }

</bundles_post_ra>
